<compile_context>
chip_gen: v7x
topology: tpu7x:2x2x1
jax: 0.10.0
libtpu: 0.0.40
codegen_flags: <defaults>
</compile_context>

<pallas_src>
import jax
import jax.numpy as jnp
import numpy as np
from jax.experimental import pallas as pl
from jax.experimental.pallas import tpu as pltpu


# ----------------------------------------------------------------------------
# Fused LeNet5 kernel (one batch tile per grid step)
# ----------------------------------------------------------------------------
def _lenet5_kernel(x_ref, t1_ref, b1r_ref, m2_ref, b2r_ref,
                   wf1_ref, bf1_ref, wf2_ref, bf2_ref, wf3_ref, bf3_ref,
                   out_ref):
    tb = x_ref.shape[0]

    # ---- conv1: width-Toeplitz MXU dots, even/odd output-row streams --------
    # x_ref rows per example: [0:14] even original rows, [14:28] odd, [28:32] 0.
    e_off = (0, 14, 1, 15, 2)     # slab start (even output rows) for kh = 0..4
    o_off = (14, 1, 15, 2, 16)    # slab start (odd output rows)
    acc_e = None
    acc_o = None
    for kh in range(5):
        t1 = t1_ref[kh]                                              # (28, 144)
        ae = x_ref[:, e_off[kh]:e_off[kh] + 16, :].reshape(tb * 16, 28)
        ao = x_ref[:, o_off[kh]:o_off[kh] + 16, :].reshape(tb * 16, 28)
        de = jnp.dot(ae, t1, preferred_element_type=jnp.float32)
        do = jnp.dot(ao, t1, preferred_element_type=jnp.float32)
        acc_e = de if acc_e is None else acc_e + de
        acc_o = do if acc_o is None else acc_o + do
    b1r = b1r_ref[...]                                               # (1, 144)
    # relu(conv1 + b1) for both row parities, then the avg-pool1 H-pair SUM
    # (the 0.25 pooling factor is folded into the conv2 Toeplitz weights).
    rh = jnp.maximum(acc_e + b1r, 0.0) + jnp.maximum(acc_o + b1r, 0.0)
    rh = rh.reshape(tb, 16, 144)       # rows 0..11 valid, 12..15 unused padding

    # ---- conv2 (pool1 folded): 5 MXU dots, lane-dense (128 = j2*16+co) ------
    acc2 = None
    for kh in range(5):
        a = rh[:, kh:kh + 8, :].reshape(tb * 8, 144)
        d = jnp.dot(a, m2_ref[kh], preferred_element_type=jnp.float32)
        acc2 = d if acc2 is None else acc2 + d
    h2 = jnp.maximum(acc2 + b2r_ref[...], 0.0).reshape(tb, 8, 128)

    # ---- avgpool2 + flatten + fc1, folded into 8 accumulated K=128 dots -----
    accf = None
    for i2 in range(8):
        row = h2[:, i2:i2 + 1, :].reshape(tb, 128)
        d = jnp.dot(row, wf1_ref[i2], preferred_element_type=jnp.float32)
        accf = d if accf is None else accf + d
    f1 = jnp.maximum(accf + bf1_ref[...], 0.0)       # (tb, 128); lanes >=120 are 0

    # ---- fc2 + relu, fc3 (weights zero-padded to full 128 lanes) ------------
    f2 = jnp.maximum(
        jnp.dot(f1, wf2_ref[...], preferred_element_type=jnp.float32) + bf2_ref[...],
        0.0)
    f3 = jnp.dot(f2, wf3_ref[...], preferred_element_type=jnp.float32) + bf3_ref[...]
    out_ref[...] = f3.astype(out_ref.dtype)          # (tb, 128) lane-dense store


# ----------------------------------------------------------------------------
# Wrapper
# ----------------------------------------------------------------------------
def _pick_tile_b(batch):
    """Batch tile: multiple of 8, <=128, and (when the batch allows) >=2 grid
    steps so the 'parallel' axis can be split across v7x's two TensorCores."""
    if batch <= 8:
        return 8
    half = (batch + 1) // 2
    tb = ((half + 7) // 8) * 8
    return min(128, tb)


def _lenet5_pallas(xp, w, tile_b):
    bp = xp.shape[0]
    grid = (bp // tile_b,)
    c2 = lambda i: (0, 0)
    c3 = lambda i: (0, 0, 0)
    in_specs = [
        pl.BlockSpec((tile_b, 32, 28), lambda i: (i, 0, 0)),  # input (even|odd|pad rows)
        pl.BlockSpec((5, 28, 144), c3),                       # conv1 Toeplitz per kh
        pl.BlockSpec((1, 144), c2),                           # conv1 bias, tiled over w
        pl.BlockSpec((5, 144, 128), c3),                      # conv2 Toeplitz (pool1 folded)
        pl.BlockSpec((1, 128), c2),                           # conv2 bias, tiled over w
        pl.BlockSpec((8, 128, 128), c3),                      # fc1 (pool2 folded), padded
        pl.BlockSpec((1, 128), c2),                           # fc1 bias (padded 120->128)
        pl.BlockSpec((128, 128), c2),                         # fc2 (padded)
        pl.BlockSpec((1, 128), c2),                           # fc2 bias (padded 84->128)
        pl.BlockSpec((128, 128), c2),                         # fc3 (padded)
        pl.BlockSpec((1, 128), c2),                           # fc3 bias (padded 10->128)
    ]
    out_spec = pl.BlockSpec((tile_b, 128), lambda i: (i, 0))

    return pl.pallas_call(
        _lenet5_kernel,
        out_shape=jax.ShapeDtypeStruct((bp, 128), jnp.float32),
        grid_spec=pltpu.PrefetchScalarGridSpec(
            num_scalar_prefetch=0,
            grid=grid,
            in_specs=in_specs,
            out_specs=out_spec,
        ),
        compiler_params=pltpu.CompilerParams(
            dimension_semantics=("parallel",),
            vmem_limit_bytes=40 * 1024 * 1024,
        ),
    )(xp, w['t1'], w['b1r'], w['m2'], w['b2r'], w['wf1'], w['bf1'],
      w['wf2'], w['bf2'], w['wf3'], w['bf3'])


@jax.jit
def lenet5_forward(prepared, x):
    # x: (B, 1, 28, 28) NCHW float32 (LeNet5 needs 28x28x1 for fc1's 16*4*4 view).
    b, c, h, w = x.shape
    assert (c, h, w) == (1, 28, 28), x.shape
    x2 = x.reshape(b, 28, 28)
    # Layout prep in XLA (free relative to the kernel): split rows by parity and
    # pad to 32 rows so every in-kernel conv1 slab is a contiguous 16-row window.
    xp = jnp.concatenate(
        [x2[:, 0::2, :], x2[:, 1::2, :], jnp.zeros((b, 4, 28), x2.dtype)], axis=1)
    tile_b = _pick_tile_b(b)
    bp = ((b + tile_b - 1) // tile_b) * tile_b
    if bp != b:
        xp = jnp.concatenate([xp, jnp.zeros((bp - b, 32, 28), xp.dtype)], axis=0)
    out = _lenet5_pallas(xp, prepared, tile_b)
    return out[:b, :10]


# ----------------------------------------------------------------------------
# Parameter init (PyTorch-style) and one-time layout preparation
# ----------------------------------------------------------------------------
def init_params(key):
    ks = jax.random.split(key, 10)

    def u(k, shape, fan_in):
        bound = 1.0 / jnp.sqrt(float(fan_in))
        return jax.random.uniform(k, shape, jnp.float32, -bound, bound)

    return {
        'conv1_w': u(ks[0], (6, 1, 5, 5), 1 * 5 * 5),
        'conv1_b': u(ks[1], (6,), 1 * 5 * 5),
        'conv2_w': u(ks[2], (16, 6, 5, 5), 6 * 5 * 5),
        'conv2_b': u(ks[3], (16,), 6 * 5 * 5),
        'fc1_w':   u(ks[4], (120, 256), 256),
        'fc1_b':   u(ks[5], (120,), 256),
        'fc2_w':   u(ks[6], (84, 120), 120),
        'fc2_b':   u(ks[7], (84,), 120),
        'fc3_w':   u(ks[8], (10, 84), 84),
        'fc3_b':   u(ks[9], (10,), 84),
    }


def prepare_params(params):
    """One-time weight layout prep (numpy, kept OUT of the jitted forward)."""
    w1 = np.asarray(params['conv1_w'], np.float32)    # (6, 1, 5, 5)
    b1 = np.asarray(params['conv1_b'], np.float32)    # (6,)
    w2 = np.asarray(params['conv2_w'], np.float32)    # (16, 6, 5, 5)
    b2 = np.asarray(params['conv2_b'], np.float32)    # (16,)
    fc1w = np.asarray(params['fc1_w'], np.float32)    # (120, 256)
    fc1b = np.asarray(params['fc1_b'], np.float32)
    fc2w = np.asarray(params['fc2_w'], np.float32)    # (84, 120)
    fc2b = np.asarray(params['fc2_b'], np.float32)
    fc3w = np.asarray(params['fc3_w'], np.float32)    # (10, 84)
    fc3b = np.asarray(params['fc3_b'], np.float32)

    # conv1 width-Toeplitz (one per kernel row kh):
    #   t1[kh, vin, j*6+c] = w1[c, 0, kh, vin - j]  for 0 <= vin - j <= 4
    t1 = np.zeros((5, 28, 24, 6), np.float32)
    for kh in range(5):
        for j in range(24):
            for kw in range(5):
                t1[kh, j + kw, j, :] = w1[:, 0, kh, kw]
    t1 = t1.reshape(5, 28, 144)
    b1r = np.tile(b1[None, None, :], (1, 24, 1)).reshape(1, 144)

    # conv2 width-Toeplitz with the 2x2 avg-pool1 (x0.25) folded in:
    #   m2[kh, v*6+ci, j2*16+co] = 0.25 * w2[co, ci, kh, v//2 - j2]  (0 <= v//2-j2 <= 4)
    m2 = np.zeros((5, 24, 6, 8, 16), np.float32)
    for kh in range(5):
        for j2 in range(8):
            for kw in range(5):
                for dv in range(2):
                    v = 2 * (j2 + kw) + dv
                    m2[kh, v, :, j2, :] = 0.25 * w2[:, :, kh, kw].T   # (ci, co)
    m2 = m2.reshape(5, 144, 128)
    b2r = np.tile(b2[None, None, :], (1, 8, 1)).reshape(1, 128)

    # fc1 with avg-pool2 (x0.25) and the torch NCHW flatten folded in, blocked by
    # the conv2 output row i2; output padded 120 -> 128:
    #   wf1[i2, j2*16+co, n] = 0.25 * fc1w[n, co*16 + (i2//2)*4 + (j2//2)]
    wf1 = np.zeros((8, 8, 16, 128), np.float32)
    for i2 in range(8):
        for j2 in range(8):
            cols = np.arange(16) * 16 + (i2 // 2) * 4 + (j2 // 2)
            wf1[i2, j2, :, :120] = 0.25 * fc1w[:, cols].T             # (16, 120)
    wf1 = wf1.reshape(8, 128, 128)

    bf1 = np.zeros((1, 128), np.float32); bf1[0, :120] = fc1b
    wf2 = np.zeros((128, 128), np.float32); wf2[:120, :84] = fc2w.T
    bf2 = np.zeros((1, 128), np.float32); bf2[0, :84] = fc2b
    wf3 = np.zeros((128, 128), np.float32); wf3[:84, :10] = fc3w.T
    bf3 = np.zeros((1, 128), np.float32); bf3[0, :10] = fc3b

    packed = dict(t1=t1, b1r=b1r, m2=m2, b2r=b2r, wf1=wf1, bf1=bf1,
                  wf2=wf2, bf2=bf2, wf3=wf3, bf3=bf3)
    return {k: jnp.asarray(v, jnp.float32) for k, v in packed.items()}


# ----------------------------------------------------------------------------
# Pure-JAX reference (for self-verification)
# ----------------------------------------------------------------------------
def _reference_forward(params, x):
    dn = ('NCHW', 'OIHW', 'NCHW')
    h = jax.lax.conv_general_dilated(x, params['conv1_w'], (1, 1), 'VALID',
                                     dimension_numbers=dn)
    h = jax.nn.relu(h + params['conv1_b'][None, :, None, None])
    h = jax.lax.reduce_window(h, 0.0, jax.lax.add,
                              (1, 1, 2, 2), (1, 1, 2, 2), 'VALID') / 4.0
    h = jax.lax.conv_general_dilated(h, params['conv2_w'], (1, 1), 'VALID',
                                     dimension_numbers=dn)
    h = jax.nn.relu(h + params['conv2_b'][None, :, None, None])
    h = jax.lax.reduce_window(h, 0.0, jax.lax.add,
                              (1, 1, 2, 2), (1, 1, 2, 2), 'VALID') / 4.0
    h = h.reshape(h.shape[0], -1)
    h = jax.nn.relu(h @ params['fc1_w'].T + params['fc1_b'])
    h = jax.nn.relu(h @ params['fc2_w'].T + params['fc2_b'])
    return h @ params['fc3_w'].T + params['fc3_b']


if __name__ == "__main__":
    key = jax.random.PRNGKey(0)
    pkey, xkey = jax.random.split(key)
    params = init_params(pkey)
    prepared = prepare_params(params)

    # B=3 exercises the batch-padding single-tile path; B=16 exercises the tiled
    # path with 2 grid steps (batch index_map, megacore split).
    for b in (3, 16):
        x = jax.random.normal(jax.random.fold_in(xkey, b), (b, 1, 28, 28),
                              dtype=jnp.float32)
        out = lenet5_forward(prepared, x)
        jax.block_until_ready(out)
        assert out.shape == (b, 10), out.shape
        ref = _reference_forward(params, x)
        err = float(jnp.max(jnp.abs(out - ref)))
        assert err < 5e-2, err

    print("KERNEL_OK")
</pallas_src>

<mosaic_0001>
module attributes {stable_mosaic.version = 11 : i64} {
  func.func @_lenet5_kernel(%arg0: i32, %arg1: memref<8x32x28xf32, #tpu.memory_space<vmem>>, %arg2: memref<5x28x144xf32, #tpu.memory_space<vmem>>, %arg3: memref<1x144xf32, #tpu.memory_space<vmem>>, %arg4: memref<5x144x128xf32, #tpu.memory_space<vmem>>, %arg5: memref<1x128xf32, #tpu.memory_space<vmem>>, %arg6: memref<8x128x128xf32, #tpu.memory_space<vmem>>, %arg7: memref<1x128xf32, #tpu.memory_space<vmem>>, %arg8: memref<128x128xf32, #tpu.memory_space<vmem>>, %arg9: memref<1x128xf32, #tpu.memory_space<vmem>>, %arg10: memref<128x128xf32, #tpu.memory_space<vmem>>, %arg11: memref<1x128xf32, #tpu.memory_space<vmem>>, %arg12: memref<8x128xf32, #tpu.memory_space<vmem>>) attributes {dimension_semantics = [#tpu.dimension_semantics<parallel>], iteration_bounds = array<i64: 1>, scalar_prefetch = 0 : i64, scratch_operands = 0 : i64, tpu.core_type = #tpu.core_type<tc>, window_params = [{transform_indices = @transform_0, window_bounds = array<i64: 8, 32, 28>}, {pipeline_mode = #tpu.pipeline_mode<synchronous>, transform_indices = @transform_1, window_bounds = array<i64: 5, 28, 144>}, {pipeline_mode = #tpu.pipeline_mode<synchronous>, transform_indices = @transform_2, window_bounds = array<i64: 1, 144>}, {pipeline_mode = #tpu.pipeline_mode<synchronous>, transform_indices = @transform_3, window_bounds = array<i64: 5, 144, 128>}, {pipeline_mode = #tpu.pipeline_mode<synchronous>, transform_indices = @transform_4, window_bounds = array<i64: 1, 128>}, {pipeline_mode = #tpu.pipeline_mode<synchronous>, transform_indices = @transform_5, window_bounds = array<i64: 8, 128, 128>}, {pipeline_mode = #tpu.pipeline_mode<synchronous>, transform_indices = @transform_6, window_bounds = array<i64: 1, 128>}, {pipeline_mode = #tpu.pipeline_mode<synchronous>, transform_indices = @transform_7, window_bounds = array<i64: 128, 128>}, {pipeline_mode = #tpu.pipeline_mode<synchronous>, transform_indices = @transform_8, window_bounds = array<i64: 1, 128>}, {pipeline_mode = #tpu.pipeline_mode<synchronous>, transform_indices = @transform_9, window_bounds = array<i64: 128, 128>}, {pipeline_mode = #tpu.pipeline_mode<synchronous>, transform_indices = @transform_10, window_bounds = array<i64: 1, 128>}, {transform_indices = @transform_11, window_bounds = array<i64: 8, 128>}]} {
    %c0 = arith.constant 0 : index
    %c0_0 = arith.constant 0 : index
    %c0_1 = arith.constant 0 : index
    %0 = vector.load %arg2[%c0, %c0_0, %c0_1] : memref<5x28x144xf32, #tpu.memory_space<vmem>>, vector<1x28x144xf32>
    %1 = vector.shape_cast %0 : vector<1x28x144xf32> to vector<28x144xf32>
    %c0_2 = arith.constant 0 : index
    %c0_3 = arith.constant 0 : index
    %c0_4 = arith.constant 0 : index
    %2 = vector.load %arg1[%c0_2, %c0_3, %c0_4] : memref<8x32x28xf32, #tpu.memory_space<vmem>>, vector<8x16x28xf32>
    %3 = vector.shape_cast %2 : vector<8x16x28xf32> to vector<128x28xf32>
    %c0_5 = arith.constant 0 : index
    %c14 = arith.constant 14 : index
    %c0_6 = arith.constant 0 : index
    %4 = vector.load %arg1[%c0_5, %c14, %c0_6] : memref<8x32x28xf32, #tpu.memory_space<vmem>>, vector<8x16x28xf32>
    %5 = vector.shape_cast %4 : vector<8x16x28xf32> to vector<128x28xf32>
    %cst = arith.constant dense<0.000000e+00> : vector<128x144xf32>
    %6 = tpu.matmul %3, %1, %cst {dimension_numbers = #tpu.dot_dimension_numbers<[1], [0], [0], [1], [0, 0, 1, 1], [], []>} : vector<128x28xf32>, vector<28x144xf32>, vector<128x144xf32> -> vector<128x144xf32>
    %cst_7 = arith.constant dense<0.000000e+00> : vector<128x144xf32>
    %7 = tpu.matmul %5, %1, %cst_7 {dimension_numbers = #tpu.dot_dimension_numbers<[1], [0], [0], [1], [0, 0, 1, 1], [], []>} : vector<128x28xf32>, vector<28x144xf32>, vector<128x144xf32> -> vector<128x144xf32>
    %c1 = arith.constant 1 : index
    %c0_8 = arith.constant 0 : index
    %c0_9 = arith.constant 0 : index
    %8 = vector.load %arg2[%c1, %c0_8, %c0_9] : memref<5x28x144xf32, #tpu.memory_space<vmem>>, vector<1x28x144xf32>
    %9 = vector.shape_cast %8 : vector<1x28x144xf32> to vector<28x144xf32>
    %c0_10 = arith.constant 0 : index
    %c14_11 = arith.constant 14 : index
    %c0_12 = arith.constant 0 : index
    %10 = vector.load %arg1[%c0_10, %c14_11, %c0_12] : memref<8x32x28xf32, #tpu.memory_space<vmem>>, vector<8x16x28xf32>
    %11 = vector.shape_cast %10 : vector<8x16x28xf32> to vector<128x28xf32>
    %c0_13 = arith.constant 0 : index
    %c1_14 = arith.constant 1 : index
    %c0_15 = arith.constant 0 : index
    %12 = vector.load %arg1[%c0_13, %c1_14, %c0_15] : memref<8x32x28xf32, #tpu.memory_space<vmem>>, vector<8x16x28xf32>
    %13 = vector.shape_cast %12 : vector<8x16x28xf32> to vector<128x28xf32>
    %cst_16 = arith.constant dense<0.000000e+00> : vector<128x144xf32>
    %14 = tpu.matmul %11, %9, %cst_16 {dimension_numbers = #tpu.dot_dimension_numbers<[1], [0], [0], [1], [0, 0, 1, 1], [], []>} : vector<128x28xf32>, vector<28x144xf32>, vector<128x144xf32> -> vector<128x144xf32>
    %cst_17 = arith.constant dense<0.000000e+00> : vector<128x144xf32>
    %15 = tpu.matmul %13, %9, %cst_17 {dimension_numbers = #tpu.dot_dimension_numbers<[1], [0], [0], [1], [0, 0, 1, 1], [], []>} : vector<128x28xf32>, vector<28x144xf32>, vector<128x144xf32> -> vector<128x144xf32>
    %16 = arith.addf %6, %14 : vector<128x144xf32>
    %17 = arith.addf %7, %15 : vector<128x144xf32>
    %c2 = arith.constant 2 : index
    %c0_18 = arith.constant 0 : index
    %c0_19 = arith.constant 0 : index
    %18 = vector.load %arg2[%c2, %c0_18, %c0_19] : memref<5x28x144xf32, #tpu.memory_space<vmem>>, vector<1x28x144xf32>
    %19 = vector.shape_cast %18 : vector<1x28x144xf32> to vector<28x144xf32>
    %c0_20 = arith.constant 0 : index
    %c1_21 = arith.constant 1 : index
    %c0_22 = arith.constant 0 : index
    %20 = vector.load %arg1[%c0_20, %c1_21, %c0_22] : memref<8x32x28xf32, #tpu.memory_space<vmem>>, vector<8x16x28xf32>
    %21 = vector.shape_cast %20 : vector<8x16x28xf32> to vector<128x28xf32>
    %c0_23 = arith.constant 0 : index
    %c15 = arith.constant 15 : index
    %c0_24 = arith.constant 0 : index
    %22 = vector.load %arg1[%c0_23, %c15, %c0_24] : memref<8x32x28xf32, #tpu.memory_space<vmem>>, vector<8x16x28xf32>
    %23 = vector.shape_cast %22 : vector<8x16x28xf32> to vector<128x28xf32>
    %cst_25 = arith.constant dense<0.000000e+00> : vector<128x144xf32>
    %24 = tpu.matmul %21, %19, %cst_25 {dimension_numbers = #tpu.dot_dimension_numbers<[1], [0], [0], [1], [0, 0, 1, 1], [], []>} : vector<128x28xf32>, vector<28x144xf32>, vector<128x144xf32> -> vector<128x144xf32>
    %cst_26 = arith.constant dense<0.000000e+00> : vector<128x144xf32>
    %25 = tpu.matmul %23, %19, %cst_26 {dimension_numbers = #tpu.dot_dimension_numbers<[1], [0], [0], [1], [0, 0, 1, 1], [], []>} : vector<128x28xf32>, vector<28x144xf32>, vector<128x144xf32> -> vector<128x144xf32>
    %26 = arith.addf %16, %24 : vector<128x144xf32>
    %27 = arith.addf %17, %25 : vector<128x144xf32>
    %c3 = arith.constant 3 : index
    %c0_27 = arith.constant 0 : index
    %c0_28 = arith.constant 0 : index
    %28 = vector.load %arg2[%c3, %c0_27, %c0_28] : memref<5x28x144xf32, #tpu.memory_space<vmem>>, vector<1x28x144xf32>
    %29 = vector.shape_cast %28 : vector<1x28x144xf32> to vector<28x144xf32>
    %c0_29 = arith.constant 0 : index
    %c15_30 = arith.constant 15 : index
    %c0_31 = arith.constant 0 : index
    %30 = vector.load %arg1[%c0_29, %c15_30, %c0_31] : memref<8x32x28xf32, #tpu.memory_space<vmem>>, vector<8x16x28xf32>
    %31 = vector.shape_cast %30 : vector<8x16x28xf32> to vector<128x28xf32>
    %c0_32 = arith.constant 0 : index
    %c2_33 = arith.constant 2 : index
    %c0_34 = arith.constant 0 : index
    %32 = vector.load %arg1[%c0_32, %c2_33, %c0_34] : memref<8x32x28xf32, #tpu.memory_space<vmem>>, vector<8x16x28xf32>
    %33 = vector.shape_cast %32 : vector<8x16x28xf32> to vector<128x28xf32>
    %cst_35 = arith.constant dense<0.000000e+00> : vector<128x144xf32>
    %34 = tpu.matmul %31, %29, %cst_35 {dimension_numbers = #tpu.dot_dimension_numbers<[1], [0], [0], [1], [0, 0, 1, 1], [], []>} : vector<128x28xf32>, vector<28x144xf32>, vector<128x144xf32> -> vector<128x144xf32>
    %cst_36 = arith.constant dense<0.000000e+00> : vector<128x144xf32>
    %35 = tpu.matmul %33, %29, %cst_36 {dimension_numbers = #tpu.dot_dimension_numbers<[1], [0], [0], [1], [0, 0, 1, 1], [], []>} : vector<128x28xf32>, vector<28x144xf32>, vector<128x144xf32> -> vector<128x144xf32>
    %36 = arith.addf %26, %34 : vector<128x144xf32>
    %37 = arith.addf %27, %35 : vector<128x144xf32>
    %c4 = arith.constant 4 : index
    %c0_37 = arith.constant 0 : index
    %c0_38 = arith.constant 0 : index
    %38 = vector.load %arg2[%c4, %c0_37, %c0_38] : memref<5x28x144xf32, #tpu.memory_space<vmem>>, vector<1x28x144xf32>
    %39 = vector.shape_cast %38 : vector<1x28x144xf32> to vector<28x144xf32>
    %c0_39 = arith.constant 0 : index
    %c2_40 = arith.constant 2 : index
    %c0_41 = arith.constant 0 : index
    %40 = vector.load %arg1[%c0_39, %c2_40, %c0_41] : memref<8x32x28xf32, #tpu.memory_space<vmem>>, vector<8x16x28xf32>
    %41 = vector.shape_cast %40 : vector<8x16x28xf32> to vector<128x28xf32>
    %c0_42 = arith.constant 0 : index
    %c16 = arith.constant 16 : index
    %c0_43 = arith.constant 0 : index
    %42 = vector.load %arg1[%c0_42, %c16, %c0_43] : memref<8x32x28xf32, #tpu.memory_space<vmem>>, vector<8x16x28xf32>
    %43 = vector.shape_cast %42 : vector<8x16x28xf32> to vector<128x28xf32>
    %cst_44 = arith.constant dense<0.000000e+00> : vector<128x144xf32>
    %44 = tpu.matmul %41, %39, %cst_44 {dimension_numbers = #tpu.dot_dimension_numbers<[1], [0], [0], [1], [0, 0, 1, 1], [], []>} : vector<128x28xf32>, vector<28x144xf32>, vector<128x144xf32> -> vector<128x144xf32>
    %cst_45 = arith.constant dense<0.000000e+00> : vector<128x144xf32>
    %45 = tpu.matmul %43, %39, %cst_45 {dimension_numbers = #tpu.dot_dimension_numbers<[1], [0], [0], [1], [0, 0, 1, 1], [], []>} : vector<128x28xf32>, vector<28x144xf32>, vector<128x144xf32> -> vector<128x144xf32>
    %46 = arith.addf %36, %44 : vector<128x144xf32>
    %47 = arith.addf %37, %45 : vector<128x144xf32>
    %c0_46 = arith.constant 0 : index
    %c0_47 = arith.constant 0 : index
    %48 = vector.load %arg3[%c0_46, %c0_47] : memref<1x144xf32, #tpu.memory_space<vmem>>, vector<1x144xf32>
    %49 = vector.broadcast %48 : vector<1x144xf32> to vector<128x144xf32>
    %50 = arith.addf %46, %49 : vector<128x144xf32>
    %cst_48 = arith.constant 0.000000e+00 : f32
    %51 = vector.broadcast %cst_48 : f32 to vector<128x144xf32>
    %52 = arith.maximumf %50, %51 : vector<128x144xf32>
    %53 = vector.broadcast %48 : vector<1x144xf32> to vector<128x144xf32>
    %54 = arith.addf %47, %53 : vector<128x144xf32>
    %cst_49 = arith.constant 0.000000e+00 : f32
    %55 = vector.broadcast %cst_49 : f32 to vector<128x144xf32>
    %56 = arith.maximumf %54, %55 : vector<128x144xf32>
    %57 = arith.addf %52, %56 : vector<128x144xf32>
    %58 = vector.shape_cast %57 : vector<128x144xf32> to vector<8x16x144xf32>
    %59 = vector.extract_strided_slice %58 {offsets = [0, 0, 0], sizes = [8, 8, 144], strides = [1, 1, 1]} : vector<8x16x144xf32> to vector<8x8x144xf32>
    %60 = vector.shape_cast %59 : vector<8x8x144xf32> to vector<64x144xf32>
    %c0_50 = arith.constant 0 : index
    %c0_51 = arith.constant 0 : index
    %c0_52 = arith.constant 0 : index
    %61 = vector.load %arg4[%c0_50, %c0_51, %c0_52] : memref<5x144x128xf32, #tpu.memory_space<vmem>>, vector<1x144x128xf32>
    %62 = vector.shape_cast %61 : vector<1x144x128xf32> to vector<144x128xf32>
    %cst_53 = arith.constant dense<0.000000e+00> : vector<64x128xf32>
    %63 = tpu.matmul %60, %62, %cst_53 {dimension_numbers = #tpu.dot_dimension_numbers<[1], [0], [0], [1], [0, 0, 1, 1], [], []>} : vector<64x144xf32>, vector<144x128xf32>, vector<64x128xf32> -> vector<64x128xf32>
    %64 = vector.extract_strided_slice %58 {offsets = [0, 1, 0], sizes = [8, 8, 144], strides = [1, 1, 1]} : vector<8x16x144xf32> to vector<8x8x144xf32>
    %65 = vector.shape_cast %64 : vector<8x8x144xf32> to vector<64x144xf32>
    %c1_54 = arith.constant 1 : index
    %c0_55 = arith.constant 0 : index
    %c0_56 = arith.constant 0 : index
    %66 = vector.load %arg4[%c1_54, %c0_55, %c0_56] : memref<5x144x128xf32, #tpu.memory_space<vmem>>, vector<1x144x128xf32>
    %67 = vector.shape_cast %66 : vector<1x144x128xf32> to vector<144x128xf32>
    %cst_57 = arith.constant dense<0.000000e+00> : vector<64x128xf32>
    %68 = tpu.matmul %65, %67, %cst_57 {dimension_numbers = #tpu.dot_dimension_numbers<[1], [0], [0], [1], [0, 0, 1, 1], [], []>} : vector<64x144xf32>, vector<144x128xf32>, vector<64x128xf32> -> vector<64x128xf32>
    %69 = arith.addf %63, %68 : vector<64x128xf32>
    %70 = vector.extract_strided_slice %58 {offsets = [0, 2, 0], sizes = [8, 8, 144], strides = [1, 1, 1]} : vector<8x16x144xf32> to vector<8x8x144xf32>
    %71 = vector.shape_cast %70 : vector<8x8x144xf32> to vector<64x144xf32>
    %c2_58 = arith.constant 2 : index
    %c0_59 = arith.constant 0 : index
    %c0_60 = arith.constant 0 : index
    %72 = vector.load %arg4[%c2_58, %c0_59, %c0_60] : memref<5x144x128xf32, #tpu.memory_space<vmem>>, vector<1x144x128xf32>
    %73 = vector.shape_cast %72 : vector<1x144x128xf32> to vector<144x128xf32>
    %cst_61 = arith.constant dense<0.000000e+00> : vector<64x128xf32>
    %74 = tpu.matmul %71, %73, %cst_61 {dimension_numbers = #tpu.dot_dimension_numbers<[1], [0], [0], [1], [0, 0, 1, 1], [], []>} : vector<64x144xf32>, vector<144x128xf32>, vector<64x128xf32> -> vector<64x128xf32>
    %75 = arith.addf %69, %74 : vector<64x128xf32>
    %76 = vector.extract_strided_slice %58 {offsets = [0, 3, 0], sizes = [8, 8, 144], strides = [1, 1, 1]} : vector<8x16x144xf32> to vector<8x8x144xf32>
    %77 = vector.shape_cast %76 : vector<8x8x144xf32> to vector<64x144xf32>
    %c3_62 = arith.constant 3 : index
    %c0_63 = arith.constant 0 : index
    %c0_64 = arith.constant 0 : index
    %78 = vector.load %arg4[%c3_62, %c0_63, %c0_64] : memref<5x144x128xf32, #tpu.memory_space<vmem>>, vector<1x144x128xf32>
    %79 = vector.shape_cast %78 : vector<1x144x128xf32> to vector<144x128xf32>
    %cst_65 = arith.constant dense<0.000000e+00> : vector<64x128xf32>
    %80 = tpu.matmul %77, %79, %cst_65 {dimension_numbers = #tpu.dot_dimension_numbers<[1], [0], [0], [1], [0, 0, 1, 1], [], []>} : vector<64x144xf32>, vector<144x128xf32>, vector<64x128xf32> -> vector<64x128xf32>
    %81 = arith.addf %75, %80 : vector<64x128xf32>
    %82 = vector.extract_strided_slice %58 {offsets = [0, 4, 0], sizes = [8, 8, 144], strides = [1, 1, 1]} : vector<8x16x144xf32> to vector<8x8x144xf32>
    %83 = vector.shape_cast %82 : vector<8x8x144xf32> to vector<64x144xf32>
    %c4_66 = arith.constant 4 : index
    %c0_67 = arith.constant 0 : index
    %c0_68 = arith.constant 0 : index
    %84 = vector.load %arg4[%c4_66, %c0_67, %c0_68] : memref<5x144x128xf32, #tpu.memory_space<vmem>>, vector<1x144x128xf32>
    %85 = vector.shape_cast %84 : vector<1x144x128xf32> to vector<144x128xf32>
    %cst_69 = arith.constant dense<0.000000e+00> : vector<64x128xf32>
    %86 = tpu.matmul %83, %85, %cst_69 {dimension_numbers = #tpu.dot_dimension_numbers<[1], [0], [0], [1], [0, 0, 1, 1], [], []>} : vector<64x144xf32>, vector<144x128xf32>, vector<64x128xf32> -> vector<64x128xf32>
    %87 = arith.addf %81, %86 : vector<64x128xf32>
    %c0_70 = arith.constant 0 : index
    %c0_71 = arith.constant 0 : index
    %88 = vector.load %arg5[%c0_70, %c0_71] : memref<1x128xf32, #tpu.memory_space<vmem>>, vector<1x128xf32>
    %89 = vector.broadcast %88 : vector<1x128xf32> to vector<64x128xf32>
    %90 = arith.addf %87, %89 : vector<64x128xf32>
    %cst_72 = arith.constant 0.000000e+00 : f32
    %91 = vector.broadcast %cst_72 : f32 to vector<64x128xf32>
    %92 = arith.maximumf %90, %91 : vector<64x128xf32>
    %93 = vector.shape_cast %92 : vector<64x128xf32> to vector<8x8x128xf32>
    %94 = vector.extract_strided_slice %93 {offsets = [0, 0, 0], sizes = [8, 1, 128], strides = [1, 1, 1]} : vector<8x8x128xf32> to vector<8x1x128xf32>
    %95 = vector.shape_cast %94 : vector<8x1x128xf32> to vector<8x128xf32>
    %c0_73 = arith.constant 0 : index
    %c0_74 = arith.constant 0 : index
    %c0_75 = arith.constant 0 : index
    %96 = vector.load %arg6[%c0_73, %c0_74, %c0_75] : memref<8x128x128xf32, #tpu.memory_space<vmem>>, vector<1x128x128xf32>
    %97 = vector.shape_cast %96 : vector<1x128x128xf32> to vector<128x128xf32>
    %cst_76 = arith.constant dense<0.000000e+00> : vector<8x128xf32>
    %98 = tpu.matmul %95, %97, %cst_76 {dimension_numbers = #tpu.dot_dimension_numbers<[1], [0], [0], [1], [0, 0, 1, 1], [], []>} : vector<8x128xf32>, vector<128x128xf32>, vector<8x128xf32> -> vector<8x128xf32>
    %99 = vector.extract_strided_slice %93 {offsets = [0, 1, 0], sizes = [8, 1, 128], strides = [1, 1, 1]} : vector<8x8x128xf32> to vector<8x1x128xf32>
    %100 = vector.shape_cast %99 : vector<8x1x128xf32> to vector<8x128xf32>
    %c1_77 = arith.constant 1 : index
    %c0_78 = arith.constant 0 : index
    %c0_79 = arith.constant 0 : index
    %101 = vector.load %arg6[%c1_77, %c0_78, %c0_79] : memref<8x128x128xf32, #tpu.memory_space<vmem>>, vector<1x128x128xf32>
    %102 = vector.shape_cast %101 : vector<1x128x128xf32> to vector<128x128xf32>
    %cst_80 = arith.constant dense<0.000000e+00> : vector<8x128xf32>
    %103 = tpu.matmul %100, %102, %cst_80 {dimension_numbers = #tpu.dot_dimension_numbers<[1], [0], [0], [1], [0, 0, 1, 1], [], []>} : vector<8x128xf32>, vector<128x128xf32>, vector<8x128xf32> -> vector<8x128xf32>
    %104 = arith.addf %98, %103 : vector<8x128xf32>
    %105 = vector.extract_strided_slice %93 {offsets = [0, 2, 0], sizes = [8, 1, 128], strides = [1, 1, 1]} : vector<8x8x128xf32> to vector<8x1x128xf32>
    %106 = vector.shape_cast %105 : vector<8x1x128xf32> to vector<8x128xf32>
    %c2_81 = arith.constant 2 : index
    %c0_82 = arith.constant 0 : index
    %c0_83 = arith.constant 0 : index
    %107 = vector.load %arg6[%c2_81, %c0_82, %c0_83] : memref<8x128x128xf32, #tpu.memory_space<vmem>>, vector<1x128x128xf32>
    %108 = vector.shape_cast %107 : vector<1x128x128xf32> to vector<128x128xf32>
    %cst_84 = arith.constant dense<0.000000e+00> : vector<8x128xf32>
    %109 = tpu.matmul %106, %108, %cst_84 {dimension_numbers = #tpu.dot_dimension_numbers<[1], [0], [0], [1], [0, 0, 1, 1], [], []>} : vector<8x128xf32>, vector<128x128xf32>, vector<8x128xf32> -> vector<8x128xf32>
    %110 = arith.addf %104, %109 : vector<8x128xf32>
    %111 = vector.extract_strided_slice %93 {offsets = [0, 3, 0], sizes = [8, 1, 128], strides = [1, 1, 1]} : vector<8x8x128xf32> to vector<8x1x128xf32>
    %112 = vector.shape_cast %111 : vector<8x1x128xf32> to vector<8x128xf32>
    %c3_85 = arith.constant 3 : index
    %c0_86 = arith.constant 0 : index
    %c0_87 = arith.constant 0 : index
    %113 = vector.load %arg6[%c3_85, %c0_86, %c0_87] : memref<8x128x128xf32, #tpu.memory_space<vmem>>, vector<1x128x128xf32>
    %114 = vector.shape_cast %113 : vector<1x128x128xf32> to vector<128x128xf32>
    %cst_88 = arith.constant dense<0.000000e+00> : vector<8x128xf32>
    %115 = tpu.matmul %112, %114, %cst_88 {dimension_numbers = #tpu.dot_dimension_numbers<[1], [0], [0], [1], [0, 0, 1, 1], [], []>} : vector<8x128xf32>, vector<128x128xf32>, vector<8x128xf32> -> vector<8x128xf32>
    %116 = arith.addf %110, %115 : vector<8x128xf32>
    %117 = vector.extract_strided_slice %93 {offsets = [0, 4, 0], sizes = [8, 1, 128], strides = [1, 1, 1]} : vector<8x8x128xf32> to vector<8x1x128xf32>
    %118 = vector.shape_cast %117 : vector<8x1x128xf32> to vector<8x128xf32>
    %c4_89 = arith.constant 4 : index
    %c0_90 = arith.constant 0 : index
    %c0_91 = arith.constant 0 : index
    %119 = vector.load %arg6[%c4_89, %c0_90, %c0_91] : memref<8x128x128xf32, #tpu.memory_space<vmem>>, vector<1x128x128xf32>
    %120 = vector.shape_cast %119 : vector<1x128x128xf32> to vector<128x128xf32>
    %cst_92 = arith.constant dense<0.000000e+00> : vector<8x128xf32>
    %121 = tpu.matmul %118, %120, %cst_92 {dimension_numbers = #tpu.dot_dimension_numbers<[1], [0], [0], [1], [0, 0, 1, 1], [], []>} : vector<8x128xf32>, vector<128x128xf32>, vector<8x128xf32> -> vector<8x128xf32>
    %122 = arith.addf %116, %121 : vector<8x128xf32>
    %123 = vector.extract_strided_slice %93 {offsets = [0, 5, 0], sizes = [8, 1, 128], strides = [1, 1, 1]} : vector<8x8x128xf32> to vector<8x1x128xf32>
    %124 = vector.shape_cast %123 : vector<8x1x128xf32> to vector<8x128xf32>
    %c5 = arith.constant 5 : index
    %c0_93 = arith.constant 0 : index
    %c0_94 = arith.constant 0 : index
    %125 = vector.load %arg6[%c5, %c0_93, %c0_94] : memref<8x128x128xf32, #tpu.memory_space<vmem>>, vector<1x128x128xf32>
    %126 = vector.shape_cast %125 : vector<1x128x128xf32> to vector<128x128xf32>
    %cst_95 = arith.constant dense<0.000000e+00> : vector<8x128xf32>
    %127 = tpu.matmul %124, %126, %cst_95 {dimension_numbers = #tpu.dot_dimension_numbers<[1], [0], [0], [1], [0, 0, 1, 1], [], []>} : vector<8x128xf32>, vector<128x128xf32>, vector<8x128xf32> -> vector<8x128xf32>
    %128 = arith.addf %122, %127 : vector<8x128xf32>
    %129 = vector.extract_strided_slice %93 {offsets = [0, 6, 0], sizes = [8, 1, 128], strides = [1, 1, 1]} : vector<8x8x128xf32> to vector<8x1x128xf32>
    %130 = vector.shape_cast %129 : vector<8x1x128xf32> to vector<8x128xf32>
    %c6 = arith.constant 6 : index
    %c0_96 = arith.constant 0 : index
    %c0_97 = arith.constant 0 : index
    %131 = vector.load %arg6[%c6, %c0_96, %c0_97] : memref<8x128x128xf32, #tpu.memory_space<vmem>>, vector<1x128x128xf32>
    %132 = vector.shape_cast %131 : vector<1x128x128xf32> to vector<128x128xf32>
    %cst_98 = arith.constant dense<0.000000e+00> : vector<8x128xf32>
    %133 = tpu.matmul %130, %132, %cst_98 {dimension_numbers = #tpu.dot_dimension_numbers<[1], [0], [0], [1], [0, 0, 1, 1], [], []>} : vector<8x128xf32>, vector<128x128xf32>, vector<8x128xf32> -> vector<8x128xf32>
    %134 = arith.addf %128, %133 : vector<8x128xf32>
    %135 = vector.extract_strided_slice %93 {offsets = [0, 7, 0], sizes = [8, 1, 128], strides = [1, 1, 1]} : vector<8x8x128xf32> to vector<8x1x128xf32>
    %136 = vector.shape_cast %135 : vector<8x1x128xf32> to vector<8x128xf32>
    %c7 = arith.constant 7 : index
    %c0_99 = arith.constant 0 : index
    %c0_100 = arith.constant 0 : index
    %137 = vector.load %arg6[%c7, %c0_99, %c0_100] : memref<8x128x128xf32, #tpu.memory_space<vmem>>, vector<1x128x128xf32>
    %138 = vector.shape_cast %137 : vector<1x128x128xf32> to vector<128x128xf32>
    %cst_101 = arith.constant dense<0.000000e+00> : vector<8x128xf32>
    %139 = tpu.matmul %136, %138, %cst_101 {dimension_numbers = #tpu.dot_dimension_numbers<[1], [0], [0], [1], [0, 0, 1, 1], [], []>} : vector<8x128xf32>, vector<128x128xf32>, vector<8x128xf32> -> vector<8x128xf32>
    %140 = arith.addf %134, %139 : vector<8x128xf32>
    %c0_102 = arith.constant 0 : index
    %c0_103 = arith.constant 0 : index
    %141 = vector.load %arg7[%c0_102, %c0_103] : memref<1x128xf32, #tpu.memory_space<vmem>>, vector<1x128xf32>
    %142 = vector.broadcast %141 : vector<1x128xf32> to vector<8x128xf32>
    %143 = arith.addf %140, %142 : vector<8x128xf32>
    %cst_104 = arith.constant 0.000000e+00 : f32
    %144 = vector.broadcast %cst_104 : f32 to vector<8x128xf32>
    %145 = arith.maximumf %143, %144 : vector<8x128xf32>
    %c0_105 = arith.constant 0 : index
    %c0_106 = arith.constant 0 : index
    %146 = vector.load %arg8[%c0_105, %c0_106] : memref<128x128xf32, #tpu.memory_space<vmem>>, vector<128x128xf32>
    %cst_107 = arith.constant dense<0.000000e+00> : vector<8x128xf32>
    %147 = tpu.matmul %145, %146, %cst_107 {dimension_numbers = #tpu.dot_dimension_numbers<[1], [0], [0], [1], [0, 0, 1, 1], [], []>} : vector<8x128xf32>, vector<128x128xf32>, vector<8x128xf32> -> vector<8x128xf32>
    %c0_108 = arith.constant 0 : index
    %c0_109 = arith.constant 0 : index
    %148 = vector.load %arg9[%c0_108, %c0_109] : memref<1x128xf32, #tpu.memory_space<vmem>>, vector<1x128xf32>
    %149 = vector.broadcast %148 : vector<1x128xf32> to vector<8x128xf32>
    %150 = arith.addf %147, %149 : vector<8x128xf32>
    %cst_110 = arith.constant 0.000000e+00 : f32
    %151 = vector.broadcast %cst_110 : f32 to vector<8x128xf32>
    %152 = arith.maximumf %150, %151 : vector<8x128xf32>
    %c0_111 = arith.constant 0 : index
    %c0_112 = arith.constant 0 : index
    %153 = vector.load %arg10[%c0_111, %c0_112] : memref<128x128xf32, #tpu.memory_space<vmem>>, vector<128x128xf32>
    %cst_113 = arith.constant dense<0.000000e+00> : vector<8x128xf32>
    %154 = tpu.matmul %152, %153, %cst_113 {dimension_numbers = #tpu.dot_dimension_numbers<[1], [0], [0], [1], [0, 0, 1, 1], [], []>} : vector<8x128xf32>, vector<128x128xf32>, vector<8x128xf32> -> vector<8x128xf32>
    %c0_114 = arith.constant 0 : index
    %c0_115 = arith.constant 0 : index
    %155 = vector.load %arg11[%c0_114, %c0_115] : memref<1x128xf32, #tpu.memory_space<vmem>>, vector<1x128xf32>
    %156 = vector.broadcast %155 : vector<1x128xf32> to vector<8x128xf32>
    %157 = arith.addf %154, %156 : vector<8x128xf32>
    %c0_116 = arith.constant 0 : index
    %c0_117 = arith.constant 0 : index
    %158 = vector.load %arg12[%c0_116, %c0_117] : memref<8x128xf32, #tpu.memory_space<vmem>>, vector<8x128xf32>
    tpu.vector_store %arg12[%c0_116, %c0_117], %157 {strides = array<i32>} : memref<8x128xf32, #tpu.memory_space<vmem>>, vector<8x128xf32>,
    return
  }
  func.func @transform_0(%arg0: i32) -> (i32, i32, i32) {
    %c0_i32 = arith.constant 0 : i32
    %c0_i32_0 = arith.constant 0 : i32
    %c0_i32_1 = arith.constant 0 : i32
    return %arg0, %c0_i32, %c0_i32_0 : i32, i32, i32
  }
  func.func @transform_1(%arg0: i32) -> (i32, i32, i32) {
    %c0_i32 = arith.constant 0 : i32
    %c0_i32_0 = arith.constant 0 : i32
    %c0_i32_1 = arith.constant 0 : i32
    %c0_i32_2 = arith.constant 0 : i32
    return %c0_i32, %c0_i32_0, %c0_i32_1 : i32, i32, i32
  }
  func.func @transform_2(%arg0: i32) -> (i32, i32) {
    %c0_i32 = arith.constant 0 : i32
    %c0_i32_0 = arith.constant 0 : i32
    %c0_i32_1 = arith.constant 0 : i32
    return %c0_i32, %c0_i32_0 : i32, i32
  }
  func.func @transform_3(%arg0: i32) -> (i32, i32, i32) {
    %c0_i32 = arith.constant 0 : i32
    %c0_i32_0 = arith.constant 0 : i32
    %c0_i32_1 = arith.constant 0 : i32
    %c0_i32_2 = arith.constant 0 : i32
    return %c0_i32, %c0_i32_0, %c0_i32_1 : i32, i32, i32
  }
  func.func @transform_4(%arg0: i32) -> (i32, i32) {
    %c0_i32 = arith.constant 0 : i32
    %c0_i32_0 = arith.constant 0 : i32
    %c0_i32_1 = arith.constant 0 : i32
    return %c0_i32, %c0_i32_0 : i32, i32
  }
  func.func @transform_5(%arg0: i32) -> (i32, i32, i32) {
    %c0_i32 = arith.constant 0 : i32
    %c0_i32_0 = arith.constant 0 : i32
    %c0_i32_1 = arith.constant 0 : i32
    %c0_i32_2 = arith.constant 0 : i32
    return %c0_i32, %c0_i32_0, %c0_i32_1 : i32, i32, i32
  }
  func.func @transform_6(%arg0: i32) -> (i32, i32) {
    %c0_i32 = arith.constant 0 : i32
    %c0_i32_0 = arith.constant 0 : i32
    %c0_i32_1 = arith.constant 0 : i32
    return %c0_i32, %c0_i32_0 : i32, i32
  }
  func.func @transform_7(%arg0: i32) -> (i32, i32) {
    %c0_i32 = arith.constant 0 : i32
    %c0_i32_0 = arith.constant 0 : i32
    %c0_i32_1 = arith.constant 0 : i32
    return %c0_i32, %c0_i32_0 : i32, i32
  }
  func.func @transform_8(%arg0: i32) -> (i32, i32) {
    %c0_i32 = arith.constant 0 : i32
    %c0_i32_0 = arith.constant 0 : i32
    %c0_i32_1 = arith.constant 0 : i32
    return %c0_i32, %c0_i32_0 : i32, i32
  }
  func.func @transform_9(%arg0: i32) -> (i32, i32) {
    %c0_i32 = arith.constant 0 : i32
    %c0_i32_0 = arith.constant 0 : i32
    %c0_i32_1 = arith.constant 0 : i32
    return %c0_i32, %c0_i32_0 : i32, i32
  }
  func.func @transform_10(%arg0: i32) -> (i32, i32) {
    %c0_i32 = arith.constant 0 : i32
    %c0_i32_0 = arith.constant 0 : i32
    %c0_i32_1 = arith.constant 0 : i32
    return %c0_i32, %c0_i32_0 : i32, i32
  }
  func.func @transform_11(%arg0: i32) -> (i32, i32) {
    %c0_i32 = arith.constant 0 : i32
    %c0_i32_0 = arith.constant 0 : i32
    return %arg0, %c0_i32 : i32, i32
  }
}

</mosaic_0001>

<bundles_post_ra>
// kernel: lenet5_forward.1
= control target key start
LH: loop header
LB: loop body
LE: loop exit
PB: predicated region body
PF: predicated region fallthrough
CT: control target
= control target key end

     0   :  { %16 = vsyncpa [#allocation3], 0  ;;  %s8792_s0 = inlined_call_operand.vmem [shape: f32[8,32,28], index: 0, kind: input, shape index: {}]   ;;  %s8793_s1 = inlined_call_operand.hbm [shape: f32[5,28,144], index: 1, kind: input, shape index: {}]   ;;  %s8794_s2 = inlined_call_operand.vmem [shape: f32[1,144], index: 2, kind: input, shape index: {}]   ;;  %s8795_s3 = inlined_call_operand.vmem [shape: f32[5,144,128], index: 3, kind: input, shape index: {}]   ;;  %s8796_s4 = inlined_call_operand.vmem [shape: f32[1,128], index: 4, kind: input, shape index: {}]   ;;  %s8797_s5 = inlined_call_operand.hbm [shape: f32[8,128,128], index: 5, kind: input, shape index: {}]   ;;  %s8798_s6 = inlined_call_operand.vmem [shape: f32[1,128], index: 6, kind: input, shape index: {}]   ;;  %s8799_s7 = inlined_call_operand.vmem [shape: f32[128,128], index: 7, kind: input, shape index: {}]   ;;  %s8800_s8 = inlined_call_operand.vmem [shape: f32[1,128], index: 8, kind: input, shape index: {}]   ;;  %s8801_s9 = inlined_call_operand.hbm [shape: f32[128,128], index: 9, kind: input, shape index: {}]   ;;  %s8802_s10 = inlined_call_operand.vmem [shape: f32[1,128], index: 10, kind: input, shape index: {}]   ;;  %s8803_s11 = inlined_call_operand.vmem [shape: f32[8,128], index: 11, kind: output, shape index: {}]  }
   0x1   :  { %17 = vsyncpa [#allocation5], 0  ;;  %s6190_s17 = smov [#allocation4]   ;;  %s6120_s21 = scalar_lea.hbm %s8797_s5, 16384 }
   0x2   :  { %s43_s18 = sshll.u32 %s6190_s17, 4  ;;  %p6121_p0 = scmp.ne.s32.totalorder %s8797_s5, %s6120_s21  ;;  %s44_s18 = int_to_ptr.vmem [resolvable:$true] %s43_s18 }
   0x3   :  { %p6124_p1 = scmp.lt.u32.totalorder %s6120_s21, %s8797_s5 }
   0x5   :  { %p6126_p2 = pnand %p6124_p1, %p6121_p0 }
   0x7   :  { %6129 = shalt.err (!%p6126_p2)
}
   0x8   :  { %s6130_s26 = scalar_lea.vmem %s44_s18, 16384  ;;  %p6135_p4 = scmp.lt.s32.totalorder %s44_s18, %s44_s18 }
   0x9   :  { %p6131_p3 = scmp.ne.s32.totalorder %s44_s18, %s6130_s26  ;;  %p6136_p5 = scmp.lt.s32.totalorder %s6130_s26, %s6130_s26 }
   0xb   :  { %p6137_p6 = por %p6136_p5, %p6135_p4 }
   0xd   :  { %p6138_p7 = pnand %p6137_p6, %p6131_p3 }
   0xf   :  { %6141 = shalt.err (!%p6138_p7)
}
  0x10   :  { %s6191_s27 = smov 128   ;;  %s6192_s28 = smov 8  }
  0x11   :  { %49 = dma.hbm_to_vmem [thread:$0]  %s8797_s5, 16384, %s44_s18, [#allocation5], %s6191_s27, %s6191_s27, %s6192_s28  }
  0x12   :  { %s6193_s12 = smov [#allocation2]   ;;  %s6142_s16 = scalar_lea.hbm %s8793_s1, 5120 }
  0x13   :  { %s25_s13 = sshll.u32 %s6193_s12, 4  ;;  %p6143_p8 = scmp.ne.s32.totalorder %s8793_s1, %s6142_s16  ;;  %s26_s13 = int_to_ptr.vmem [resolvable:$true] %s25_s13 }
  0x14   :  { %p6146_p9 = scmp.lt.u32.totalorder %s6142_s16, %s8793_s1 }
  0x16   :  { %p6148_p10 = pnand %p6146_p9, %p6143_p8 }
  0x18   :  { %6151 = shalt.err (!%p6148_p10)
}
  0x19   :  { %s6152_s22 = scalar_lea.vmem %s26_s13, 5120  ;;  %p6157_p12 = scmp.lt.s32.totalorder %s26_s13, %s26_s13 }
  0x1a   :  { %p6153_p11 = scmp.ne.s32.totalorder %s26_s13, %s6152_s22  ;;  %p6158_p13 = scmp.lt.s32.totalorder %s6152_s22, %s6152_s22 }
  0x1c   :  { %p6159_p0 = por %p6158_p13, %p6157_p12 }
  0x1e   :  { %p6160_p1 = pnand %p6159_p0, %p6153_p11 }
  0x20   :  { %6163 = shalt.err (!%p6160_p1)
}
  0x21   :  { %s6194_s5 = smov 256   ;;  %s6195_s18 = smov 16  }
  0x22   :  { %31 = dma.hbm_to_vmem [thread:$0]  %s8793_s1, 5120, %s26_s13, [#allocation3], %s6194_s5, %s6194_s5, %s6195_s18  }
  0x23   :  { %s6196_s25 = smov [#allocation6]   ;;  %s6164_s12 = scalar_lea.hbm %s8801_s9, 2048 }
  0x24   :  { %s61_s26 = sshll.u32 %s6196_s25, 4  ;;  %p6165_p2 = scmp.ne.s32.totalorder %s8801_s9, %s6164_s12  ;;  %s62_s26 = int_to_ptr.vmem [resolvable:$true] %s61_s26 }
  0x25   :  { %p6168_p3 = scmp.lt.u32.totalorder %s6164_s12, %s8801_s9 }
  0x27   :  { %p6170_p4 = pnand %p6168_p3, %p6165_p2 }
  0x29   :  { %6173 = shalt.err (!%p6170_p4)
}
  0x2a   :  { %s6174_s19 = scalar_lea.vmem %s62_s26, 2048  ;;  %p6179_p6 = scmp.lt.s32.totalorder %s62_s26, %s62_s26 }
  0x2b   :  { %p6175_p5 = scmp.ne.s32.totalorder %s62_s26, %s6174_s19  ;;  %p6180_p7 = scmp.lt.s32.totalorder %s6174_s19, %s6174_s19 }
  0x2d   :  { %p6181_p8 = por %p6180_p7, %p6179_p6 }
  0x2f   :  { %p6182_p9 = pnand %p6181_p8, %p6175_p5 }
  0x31   :  { %6185 = shalt.err (!%p6182_p9)
}
  0x32   :  { %67 = dma.hbm_to_vmem [thread:$0]  %s8801_s9, 2048, %s62_s26, [#allocation5], %s6191_s27, %s6191_s27, %s6192_s28  }
  0x33   :  { %6186 = dma.done.wait [#allocation3], 5120  }
  0x34   :  { %6187 = vsyncadd [#allocation3], 4294962176 }
  0x35   :  { %6188 = dma.done.wait [#allocation5], 18432  }
  0x36   :  { %6189 = vsyncadd [#allocation5], 4294948864  ;;  %v8804_v0 = vmov 0.0   ;;  %vm193_vm0 = vcmask 1043456   ;;  %v121_v1 = vld [vmem:[#allocation2 + $0x48] sm:$0xff]  ;;  %v123_v2 = vld [vmem:[#allocation2 + $0x58] sm:$0xff] }
  0x37   :  { %264 = vmatprep.mubr.f32.mxu0 %v8804_v0  ;;  %491 = vmatprep.mubr.f32.mxu1 %v8804_v0  ;;  %v120_v3 = vld [vmem:[#allocation2 + $0x40] sm:$0xff]  ;;  %v5374_v4 = vpack.c.bf16 %v123_v2, %v121_v1  ;;  %v122_v5 = vld [vmem:[#allocation2 + $0x50] sm:$0xff]  ;;  %v125_v6 = vld [vmem:[#allocation2 + $0x68] sm:$0xff]  ;;  %vm6198_vm1 = vmmov 1   ;;  %vm144_vm3 = vcmask 228352   ;;  %vm2639_vm4 = vcmask 130048  }
  0x38   :  { %v127_v7 = vld [vmem:[#allocation2 + $0x78] sm:$0xf]  ;;  %v5376_v8 = vpack.c.bf16 %v122_v5, %v120_v3  ;;  %vm6306_vm2 = vmpackc.low %vm193_vm0, %vm6198_vm1  ;;  %v124_v11 = vld [vmem:[#allocation2 + $0x60] sm:$0xff]  ;;  %vm2563_vm5 = vcmask 1046528   ;;  %vm3087_vm6 = vcmask 1044480   ;;  %vm2882_vm7 = vcmask 1045504  }
  0x39   :  { %v5378_v9 = vpack.c.bf16 %v127_v7, %v125_v6  ;;  %v126_v12 = vld [vmem:[#allocation2 + $0x70] sm:$0xf]  ;;  %5375 = vmatprep.subr.bf16.mxu0 %v5374_v4  ;;  %5849 = vmatprep.subr.bf16.mxu1 %v5374_v4  ;;  %v80_v15 = vld [vmem:[#allocation2 + $0x8] sm:$0xff]  ;;  %v82_v16 = vld [vmem:[#allocation2 + $0x18] sm:$0xff]  ;;  %vm6200_vm8 = vmmov 0   ;;  %vm3561_vm9 = vcmask 1041409  }
  0x3a   :  { %5377 = vmatpush1.bf16.msra.mxu0 %v5376_v8  ;;  %5851 = vmatpush1.bf16.msra.mxu1 %v5376_v8  ;;  %v5381_v13 = vpack.c.bf16 %v126_v12, %v124_v11  ;;  %v6317_v14 = vld [vmem:[%s8792_s0 + $0xe] sm:$0xff]  ;;  %v5394_v18 = vpack.c.bf16 %v82_v16, %v80_v15  ;;  %v79_v19 = vld [vmem:[#allocation2] sm:$0xff]  ;;  %v6338_v22 = vld [vmem:[%s8792_s0 + $0x16] sm:$0xff]  ;;  %vm3564_vm10 = vcmask 1042434   ;;  %vm3567_vm11 = vcmask 1043459  }
  0x3b   :  { %5380 = vmatprep.subr.msk.bf16.mxu0 %vm6306_vm2, %v5378_v9  ;;  %5850 = vmatprep.subr.msk.bf16.mxu1 %vm6306_vm2, %v5378_v9  ;;  %v6326_v17 = vld [vmem:[%s8792_s0 + $0x29] sm:$0xff]  ;;  %v6343_v23 = vld [vmem:[%s8792_s0 + $0x41] sm:$0xff]  ;;  %v86_v25 = vld [vmem:[#allocation2 + $0x38] sm:$0xf]  ;;  %vm3570_vm12 = vcmask 1044484   ;;  %vm3573_vm13 = vcmask 1045509  }
  0x3c   :  { %v81_v20 = vld [vmem:[#allocation2 + $0x10] sm:$0xff]  ;;  %v84_v24 = vld [vmem:[#allocation2 + $0x28] sm:$0xff]  ;;  %v83_v26 = vld [vmem:[#allocation2 + $0x20] sm:$0xff]  ;;  %vm3576_vm14 = vcmask 1046534   ;;  %vm3579_vm15 = vcmask 1047559  }
  0x3d   :  { %v6328_v21 = vpack.c.bf16 %v81_v20, %v79_v19  ;;  %v85_v27 = vld [vmem:[#allocation2 + $0x30] sm:$0xf]  ;;  %v6349_v28 = vpack.c.bf16 %v86_v25, %v84_v24  ;;  %v948_v32 = vld [vmem:[#allocation2 + $0x88] sm:$0xff]  ;;  %v950_v33 = vld [vmem:[#allocation2 + $0x98] sm:$0xff] }
  0x3e   :  { %5383 = vmatpush1.bf16.msk.msra.mxu0 %vm6306_vm2, %v5381_v13  ;;  %5852 = vmatpush1.bf16.msk.msra.mxu1 %vm6306_vm2, %v5381_v13  ;;  %v6351_v29 = vpack.c.bf16 %v85_v27, %v83_v26  ;;  %v6360_v30 = vld [vmem:[%s8792_s0 + $0x2e] sm:$0xff]  ;;  %v6374_v34 = vpack.c.bf16 %v950_v33, %v948_v32  ;;  %v6388_v35 = vld [vmem:[%s8792_s0 + $0x36] sm:$0xff]  ;;  %v6393_v36 = vld [vmem:[%s8792_s0 + $0x61] sm:$0xff] }
  0x3f   :  { %5385 = vmatprep.subr.bf16.mxu0 %v5374_v4  ;;  %5405 = vmatprep.subr.bf16.mxu1 %v5394_v18  ;;  %v6367_v31 = vld [vmem:[%s8792_s0 + $0x49] sm:$0xff]  ;;  %v6421_v39 = vld [vmem:[%s8792_s0 + $0x56] sm:$0xff]  ;;  %v6426_v40 = vld [vmem:[%s8792_s0 + $0x81] sm:$0xff] }
  0x40   :  { %v6405_v37 = vld [vmem:[%s8792_s0 + $0x4e] sm:$0xff]  ;;  %v6453_v43 = vld [vmem:[%s8792_s0 + $0x76] sm:$0xff]  ;;  %v6458_v44 = vld [vmem:[%s8792_s0 + $0xa1] sm:$0xff] }
  0x41   :  { %4560 = vmatmul.mubr.msk.f32.vlgmr.msra.gmra.mrb[0].mxu0 %vm144_vm3, %v6317_v14  ;;  %4581 = vmatmul.mubr.msk.f32.vlgmr.msra.gmra.mrb[0].mxu1 %vm144_vm3, %v6326_v17  ;;  %v6410_v38 = vld [vmem:[%s8792_s0 + $0x69] sm:$0xff]  ;;  %v6485_v47 = vld [vmem:[%s8792_s0 + $0x96] sm:$0xff]  ;;  %v6490_v48 = vld [vmem:[%s8792_s0 + $0xc1] sm:$0xff] }
  0x42   :  { %5387 = vmatpush1.bf16.msra.mxu0 %v5376_v8  ;;  %270 = vmatprep.mubr.f32.mxu0 %v8804_v0  ;;  %v6437_v41 = vld [vmem:[%s8792_s0 + $0x6e] sm:$0xff]  ;;  %v6517_v51 = vld [vmem:[%s8792_s0 + $0xb6] sm:$0xff]  ;;  %v6522_v52 = vld [vmem:[%s8792_s0 + $0xe1] sm:$0xff] }
  0x43   :  { %497 = vmatprep.mubr.f32.mxu1 %v8804_v0  ;;  %5407 = vmatpush1.bf16.msra.mxu1 %v6328_v21  ;;  %v6442_v42 = vld [vmem:[%s8792_s0 + $0x89] sm:$0xff]  ;;  %v947_v55 = vld [vmem:[#allocation2 + $0x80] sm:$0xff]  ;;  %v954_v58 = vld [vmem:[#allocation2 + $0xb8] sm:$0xf] }
  0x44   :  { %5390 = vmatprep.subr.msk.bf16.mxu0 %vm6306_vm2, %v5378_v9  ;;  %5410 = vmatprep.subr.msk.bf16.mxu1 %vm6306_vm2, %v6349_v28  ;;  %v6469_v45 = vld [vmem:[%s8792_s0 + $0x8e] sm:$0xff]  ;;  %v6549_v59 = vld [vmem:[%s8792_s0 + $0xd6] sm:$0xff]  ;;  %v951_v62 = vld [vmem:[#allocation2 + $0xa0] sm:$0xff] }
  0x45   :  { %4561 = vmatmul.mubr.msk.f32.gmra.mrb[2].mxu0 %vm144_vm3, %v6338_v22  ;;  %4582 = vmatmul.mubr.msk.f32.gmra.mrb[2].mxu1 %vm144_vm3, %v6343_v23  ;;  %v6474_v46 = vld [vmem:[%s8792_s0 + $0xa9] sm:$0xff]  ;;  %v1415_v2 = vld [vmem:[#allocation2 + $0xd8] sm:$0xff]  ;;  %v6586_v7 = vld [vmem:[%s8792_s0 + $0x1] sm:$0xff] }
  0x46   :  { %276 = vmatprep.mubr.f32.mxu0 %v8804_v0  ;;  %503 = vmatprep.mubr.f32.mxu1 %v8804_v0  ;;  %v6501_v49 = vld [vmem:[%s8792_s0 + $0xae] sm:$0xff]  ;;  %v6573_v6 = vld [vmem:[%s8792_s0 + $0xf6] sm:$0xff]  ;;  %v6614_v9 = vld [vmem:[%s8792_s0 + $0x21] sm:$0xff] }
  0x47   :  { %5393 = vmatpush1.bf16.msk.msra.mxu0 %vm6306_vm2, %v5381_v13  ;;  %5413 = vmatpush1.bf16.msk.msra.mxu1 %vm6306_vm2, %v6351_v29  ;;  %v6506_v50 = vld [vmem:[%s8792_s0 + $0xc9] sm:$0xff]  ;;  %v87_v11 = vld [vmem:[%s8792_s0] sm:$0xff]  ;;  %v1419_v26 = vld [vmem:[#allocation2 + $0xf8] sm:$0xf] }
  0x48   :  { %5395 = vmatprep.subr.bf16.mxu0 %v5394_v18  ;;  %5425 = vmatprep.subr.bf16.mxu1 %v6374_v34  ;;  %v6533_v53 = vld [vmem:[%s8792_s0 + $0xce] sm:$0xff]  ;;  %v89_v13 = vld [vmem:[%s8792_s0 + $0x20] sm:$0xff] }
  0x49   :  { %4562 = vmatmul.mubr.msk.f32.gmra.mrb[4].mxu0 %vm144_vm3, %v6360_v30  ;;  %4583 = vmatmul.mubr.msk.f32.gmra.mrb[4].mxu1 %vm144_vm3, %v6367_v31  ;;  %v6538_v54 = vld [vmem:[%s8792_s0 + $0xe9] sm:$0xff]  ;;  %v91_v15 = vld [vmem:[%s8792_s0 + $0x40] sm:$0xff] }
  0x4a   :  { %282 = vmatprep.mubr.f32.mxu0 %v8804_v0  ;;  %509 = vmatprep.mubr.f32.mxu1 %v8804_v0  ;;  %v949_v56 = vld [vmem:[#allocation2 + $0x90] sm:$0xff]  ;;  %v952_v57 = vld [vmem:[#allocation2 + $0xa8] sm:$0xff]  ;;  %v93_v18 = vld [vmem:[%s8792_s0 + $0x60] sm:$0xff] }
  0x4b   :  { %v5416_v60 = vpack.c.bf16 %v949_v56, %v947_v55  ;;  %v5418_v61 = vpack.c.bf16 %v954_v58, %v952_v57  ;;  %v953_v63 = vld [vmem:[#allocation2 + $0xb0] sm:$0xf]  ;;  %v1413_v1 = vld [vmem:[#allocation2 + $0xc8] sm:$0xff]  ;;  %v95_v20 = vld [vmem:[%s8792_s0 + $0x80] sm:$0xff] }
  0x4c   :  { %v6560_v3 = vld [vmem:[%s8792_s0 + $0xee] sm:$0xff]  ;;  %v5421_v4 = vpack.c.bf16 %v953_v63, %v951_v62  ;;  %v5434_v5 = vpack.c.bf16 %v1415_v2, %v1413_v1  ;;  %v97_v27 = vld [vmem:[%s8792_s0 + $0xa0] sm:$0xff]  ;;  %v6783_v57 = vld [vmem:[%s8792_s0 + $0x57] sm:$0xff] }
  0x4d   :  { %4563 = vmatmul.mubr.msk.f32.gmra.mrb[6].mxu0 %vm144_vm3, %v6388_v35  ;;  %4584 = vmatmul.mubr.msk.f32.gmra.mrb[6].mxu1 %vm144_vm3, %v6393_v36  ;;  %v6597_v8 = vld [vmem:[%s8792_s0 + $0x9] sm:$0xff]  ;;  %v1416_v32 = vld [vmem:[#allocation2 + $0xe0] sm:$0xff]  ;;  %v1884_v2 = vld [vmem:[#allocation2 + $0x138] sm:$0xf] }
  0x4e   :  { %288 = vmatprep.mubr.f32.mxu0 %v8804_v0  ;;  %515 = vmatprep.mubr.f32.mxu1 %v8804_v0  ;;  %v88_v12 = vld [vmem:[%s8792_s0 + $0x8] sm:$0xff]  ;;  %v1414_v24 = vld [vmem:[#allocation2 + $0xd0] sm:$0xff]  ;;  %v1877_v63 = vld [vmem:[#allocation2 + $0x100] sm:$0xff] }
  0x4f   :  { %v92_v16 = vld [vmem:[%s8792_s0 + $0x48] sm:$0xff]  ;;  %v1418_v33 = vld [vmem:[#allocation2 + $0xf0] sm:$0xf] }
  0x50   :  { %v94_v19 = vld [vmem:[%s8792_s0 + $0x68] sm:$0xff]  ;;  %v1879_v1 = vld [vmem:[#allocation2 + $0x110] sm:$0xff] }
  0x51   :  { %4564 = vmatmul.mubr.msk.f32.gmra.mrb[8].mxu0 %vm144_vm3, %v6405_v37  ;;  %4585 = vmatmul.mubr.msk.f32.gmra.mrb[8].mxu1 %vm144_vm3, %v6410_v38  ;;  %v1417_v25 = vld [vmem:[#allocation2 + $0xe8] sm:$0xff] }
  0x52   :  { %294 = vmatprep.mubr.f32.mxu0 %v8804_v0  ;;  %521 = vmatprep.mubr.f32.mxu1 %v8804_v0  ;;  %v6770_v55 = vld [vmem:[%s8792_s0 + $0x4f] sm:$0xff]  ;;  %v7027_v10 = vld [vmem:[%s8792_s0 + $0xa2] sm:$0xff] }
  0x53   :  { %v102_v56 = vld [vmem:[%s8792_s0 + $0xe8] sm:$0xff] }
  0x54   :  { %v6793_v58 = vld [vmem:[%s8792_s0 + $0x6f] sm:$0xff] }
  0x55   :  { %4565 = vmatmul.mubr.msk.f32.gmra.mrb[10].mxu0 %vm144_vm3, %v6421_v39  ;;  %4586 = vmatmul.mubr.msk.f32.gmra.mrb[10].mxu1 %vm144_vm3, %v6426_v40  ;;  %v6841_v62 = vld [vmem:[%s8792_s0 + $0xaf] sm:$0xff] }
  0x56   :  { %300 = vmatprep.mubr.f32.mxu0 %v8804_v0  ;;  %527 = vmatprep.mubr.f32.mxu1 %v8804_v0 }
  0x59   :  { %4566 = vmatmul.mubr.msk.f32.gmra.mrb[12].mxu0 %vm144_vm3, %v6437_v41  ;;  %4587 = vmatmul.mubr.msk.f32.gmra.mrb[12].mxu1 %vm144_vm3, %v6442_v42 }
  0x5a   :  { %306 = vmatprep.mubr.f32.mxu0 %v8804_v0  ;;  %533 = vmatprep.mubr.f32.mxu1 %v8804_v0 }
  0x5d   :  { %4567 = vmatmul.mubr.msk.f32.gmra.mrb[14].mxu0 %vm144_vm3, %v6453_v43  ;;  %4588 = vmatmul.mubr.msk.f32.gmra.mrb[14].mxu1 %vm144_vm3, %v6458_v44 }
  0x5e   :  { %312 = vmatprep.mubr.f32.mxu0 %v8804_v0  ;;  %539 = vmatprep.mubr.f32.mxu1 %v8804_v0 }
  0x61   :  { %4568 = vmatmul.mubr.msk.f32.gmra.mrb[16].mxu0 %vm144_vm3, %v6469_v45  ;;  %4589 = vmatmul.mubr.msk.f32.gmra.mrb[16].mxu1 %vm144_vm3, %v6474_v46 }
  0x62   :  { %318 = vmatprep.mubr.f32.mxu0 %v8804_v0  ;;  %545 = vmatprep.mubr.f32.mxu1 %v8804_v0 }
  0x65   :  { %4569 = vmatmul.mubr.msk.f32.gmra.mrb[18].mxu0 %vm144_vm3, %v6485_v47  ;;  %4590 = vmatmul.mubr.msk.f32.gmra.mrb[18].mxu1 %vm144_vm3, %v6490_v48 }
  0x66   :  { %324 = vmatprep.mubr.f32.mxu0 %v8804_v0  ;;  %551 = vmatprep.mubr.f32.mxu1 %v8804_v0 }
  0x69   :  { %4570 = vmatmul.mubr.msk.f32.gmra.mrb[20].mxu0 %vm144_vm3, %v6501_v49  ;;  %4591 = vmatmul.mubr.msk.f32.gmra.mrb[20].mxu1 %vm144_vm3, %v6506_v50 }
  0x6a   :  { %330 = vmatprep.mubr.f32.mxu0 %v8804_v0  ;;  %557 = vmatprep.mubr.f32.mxu1 %v8804_v0 }
  0x6d   :  { %4571 = vmatmul.mubr.msk.f32.gmra.mrb[22].mxu0 %vm144_vm3, %v6517_v51  ;;  %4592 = vmatmul.mubr.msk.f32.gmra.mrb[22].mxu1 %vm144_vm3, %v6522_v52 }
  0x6e   :  { %336 = vmatprep.mubr.f32.mxu0 %v8804_v0  ;;  %563 = vmatprep.mubr.f32.mxu1 %v8804_v0 }
  0x71   :  { %4572 = vmatmul.mubr.msk.f32.gmra.mrb[24].mxu0 %vm144_vm3, %v6533_v53  ;;  %4593 = vmatmul.mubr.msk.f32.gmra.mrb[24].mxu1 %vm144_vm3, %v6538_v54 }
  0x72   :  { %342 = vmatprep.mubr.f32.mxu0 %v8804_v0  ;;  %849 = vmatprep.mubr.f32.mxu1 %v8804_v0 }
  0x75   :  { %4573 = vmatmul.mubr.msk.f32.gmra.mrb[26].mxu0 %vm144_vm3, %v6549_v59  ;;  %4614 = vmatmul.mubr.msk.f32.vlgmr.msra.gmra.mrb[26].mxu1 %vm144_vm3, %v6317_v14  ;;  %v90_v14 = vld [vmem:[%s8792_s0 + $0x28] sm:$0xff] }
  0x76   :  { %348 = vmatprep.mubr.f32.mxu0 %v8804_v0  ;;  %855 = vmatprep.mubr.f32.mxu1 %v8804_v0 }
  0x77   :  { %5427 = vmatpush1.bf16.msra.mxu1 %v5416_v60 }
  0x78   :  { %5430 = vmatprep.subr.msk.bf16.mxu1 %vm6306_vm2, %v5418_v61 }
  0x79   :  { %4574 = vmatmul.mubr.msk.f32.gmra.mrb[28].mxu0 %vm144_vm3, %v6560_v3  ;;  %4615 = vmatmul.mubr.msk.f32.gmra.mrb[28].mxu1 %vm144_vm3, %v6338_v22  ;;  %v1412_v22 = vld [vmem:[#allocation2 + $0xc0] sm:$0xff] }
  0x7a   :  { %354 = vmatprep.mubr.f32.mxu0 %v8804_v0  ;;  %861 = vmatprep.mubr.f32.mxu1 %v8804_v0 }
  0x7b   :  { %5433 = vmatpush1.bf16.msk.msra.mxu1 %vm6306_vm2, %v5421_v4 }
  0x7c   :  { %5445 = vmatprep.subr.bf16.mxu1 %v5434_v5 }
  0x7d   :  { %4575 = vmatmul.mubr.msk.f32.gmra.mrb[30].mxu0 %vm144_vm3, %v6573_v6  ;;  %4616 = vmatmul.mubr.msk.f32.gmra.mrb[30].mxu1 %vm144_vm3, %v6360_v30  ;;  %v5438_v30 = vpack.c.bf16 %v1419_v26, %v1417_v25  ;;  %v1887_v25 = vld [vmem:[%s8792_s0 + $0x30] sm:$0xff]  ;;  %v1888_v26 = vld [vmem:[%s8792_s0 + $0x38] sm:$0xff] }
  0x7e   :  { %473 = vmatprep.mubr.f32.mxu0 %v8804_v0  ;;  %867 = vmatprep.mubr.f32.mxu1 %v8804_v0 }
  0x81   :  { %4578 = vmatmul.mubr.msk.f32.vlgmr.msra.gmra.mrb[32].mxu0 %vm144_vm3, %v6586_v7  ;;  %4617 = vmatmul.mubr.msk.f32.gmra.mrb[0].mxu1 %vm144_vm3, %v6388_v35  ;;  %v1880_v35 = vld [vmem:[#allocation2 + $0x118] sm:$0xff] }
  0x82   :  { %5397 = vmatpush1.bf16.msra.mxu0 %v6328_v21  ;;  %479 = vmatprep.mubr.f32.mxu0 %v8804_v0  ;;  %v96_v21 = vld [vmem:[%s8792_s0 + $0x88] sm:$0xff] }
  0x83   :  { %873 = vmatprep.mubr.f32.mxu1 %v8804_v0  ;;  %5400 = vmatprep.subr.msk.bf16.mxu0 %vm6306_vm2, %v6349_v28  ;;  %v6714_v28 = vld [vmem:[%s8792_s0 + $0xf] sm:$0xff] }
  0x85   :  { %4579 = vmatmul.mubr.msk.f32.gmra.mrb[34].mxu0 %vm144_vm3, %v6597_v8  ;;  %4618 = vmatmul.mubr.msk.f32.gmra.mrb[2].mxu1 %vm144_vm3, %v6405_v37  ;;  %v98_v37 = vld [vmem:[%s8792_s0 + $0xa8] sm:$0xff] }
  0x86   :  { %485 = vmatprep.mubr.f32.mxu0 %v8804_v0  ;;  %5403 = vmatpush1.bf16.msk.msra.mxu0 %vm6306_vm2, %v6351_v29  ;;  %v5436_v29 = vpack.c.bf16 %v1414_v24, %v1412_v22  ;;  %v1886_v24 = vld [vmem:[%s8792_s0 + $0x18] sm:$0xff] }
  0x87   :  { %879 = vmatprep.mubr.f32.mxu1 %v8804_v0  ;;  %5415 = vmatprep.subr.bf16.mxu0 %v6374_v34  ;;  %v1878_v34 = vld [vmem:[#allocation2 + $0x108] sm:$0xff] }
  0x89   :  { %4580 = vmatmul.mubr.msk.f32.gmra.mrb[36].mxu0 %vm144_vm3, %v6614_v9  ;;  %4619 = vmatmul.mubr.msk.f32.gmra.mrb[4].mxu1 %vm144_vm3, %v6421_v39  ;;  %v6727_v39 = vld [vmem:[%s8792_s0 + $0x17] sm:$0xff] }
  0x8a   :  { %688 = vmatprep.mubr.f32.mxu0 %v8804_v0  ;;  %885 = vmatprep.mubr.f32.mxu1 %v8804_v0 }
  0x8d   :  { %4596 = vmatmul.mubr.msk.f32.vlgmr.msra.gmra.mrb[0].mxu0 %vm144_vm3, %v87_v11  ;;  %4620 = vmatmul.mubr.msk.f32.gmra.mrb[6].mxu1 %vm144_vm3, %v6437_v41  ;;  %v5441_v41 = vpack.c.bf16 %v1418_v33, %v1416_v32  ;;  %v7002_v11 = vld [vmem:[%s8792_s0 + $0x82] sm:$0xff]  ;;  %v1893_v32 = vld [vmem:[%s8792_s0 + $0x90] sm:$0xff] }
  0x8e   :  { %5417 = vmatpush1.bf16.msra.mxu0 %v5416_v60  ;;  %694 = vmatprep.mubr.f32.mxu0 %v8804_v0  ;;  %v6817_v60 = vld [vmem:[%s8792_s0 + $0x8f] sm:$0xff] }
  0x8f   :  { %891 = vmatprep.mubr.f32.mxu1 %v8804_v0  ;;  %5420 = vmatprep.subr.msk.bf16.mxu0 %vm6306_vm2, %v5418_v61  ;;  %v6830_v61 = vld [vmem:[%s8792_s0 + $0x97] sm:$0xff] }
  0x91   :  { %4597 = vmatmul.mubr.msk.f32.gmra.mrb[2].mxu0 %vm144_vm3, %v88_v12  ;;  %4621 = vmatmul.mubr.msk.f32.gmra.mrb[8].mxu1 %vm144_vm3, %v6453_v43  ;;  %v5454_v43 = vpack.c.bf16 %v1880_v35, %v1878_v34  ;;  %v7016_v12 = vld [vmem:[%s8792_s0 + $0x8a] sm:$0xff]  ;;  %v1894_v35 = vld [vmem:[%s8792_s0 + $0x98] sm:$0xff] }
  0x92   :  { %700 = vmatprep.mubr.f32.mxu0 %v8804_v0  ;;  %897 = vmatprep.mubr.f32.mxu1 %v8804_v0 }
  0x93   :  { %5423 = vmatpush1.bf16.msk.msra.mxu0 %vm6306_vm2, %v5421_v4  ;;  %v5456_v4 = vpack.c.bf16 %v1879_v1, %v1877_v63  ;;  %v2519_v63 = vld [vmem:[%s8795_s3 + $0x30] sm:$0xff]  ;;  %v2520_v1 = vld [vmem:[%s8795_s3 + $0x38] sm:$0xff] }
  0x94   :  { %5435 = vmatprep.subr.bf16.mxu0 %v5434_v5 }
  0x95   :  { %4598 = vmatmul.mubr.msk.f32.gmra.mrb[4].mxu0 %vm144_vm3, %v89_v13  ;;  %4622 = vmatmul.mubr.msk.f32.gmra.mrb[10].mxu1 %vm144_vm3, %v6469_v45  ;;  %v99_v45 = vld [vmem:[%s8792_s0 + $0xc0] sm:$0xff]  ;;  %v7038_v13 = vld [vmem:[%s8792_s0 + $0xaa] sm:$0xff] }
  0x96   :  { %706 = vmatprep.mubr.f32.mxu0 %v8804_v0  ;;  %903 = vmatprep.mubr.f32.mxu1 %v8804_v0 }
  0x99   :  { %4599 = vmatmul.mubr.msk.f32.gmra.mrb[6].mxu0 %vm144_vm3, %v90_v14  ;;  %4623 = vmatmul.mubr.msk.f32.gmra.mrb[12].mxu1 %vm144_vm3, %v6485_v47  ;;  %v6742_v47 = vld [vmem:[%s8792_s0 + $0x2f] sm:$0xff]  ;;  %v7049_v14 = vld [vmem:[%s8792_s0 + $0xc2] sm:$0xff] }
  0x9a   :  { %712 = vmatprep.mubr.f32.mxu0 %v8804_v0  ;;  %909 = vmatprep.mubr.f32.mxu1 %v8804_v0 }
  0x9d   :  { %4600 = vmatmul.mubr.msk.f32.gmra.mrb[8].mxu0 %vm144_vm3, %v91_v15  ;;  %4624 = vmatmul.mubr.msk.f32.gmra.mrb[14].mxu1 %vm144_vm3, %v6501_v49  ;;  %v100_v49 = vld [vmem:[%s8792_s0 + $0xc8] sm:$0xff] }
  0x9e   :  { %718 = vmatprep.mubr.f32.mxu0 %v8804_v0  ;;  %915 = vmatprep.mubr.f32.mxu1 %v8804_v0  ;;  %v7060_v15 = vld [vmem:[%s8792_s0 + $0xca] sm:$0xff] }
  0xa1   :  { %4601 = vmatmul.mubr.msk.f32.gmra.mrb[10].mxu0 %vm144_vm3, %v92_v16  ;;  %4625 = vmatmul.mubr.msk.f32.gmra.mrb[16].mxu1 %vm144_vm3, %v6517_v51  ;;  %v6757_v51 = vld [vmem:[%s8792_s0 + $0x37] sm:$0xff]  ;;  %v7071_v16 = vld [vmem:[%s8792_s0 + $0xe2] sm:$0xff] }
  0xa2   :  { %724 = vmatprep.mubr.f32.mxu0 %v8804_v0  ;;  %921 = vmatprep.mubr.f32.mxu1 %v8804_v0 }
  0xa5   :  { %4602 = vmatmul.mubr.msk.f32.gmra.mrb[12].mxu0 %vm144_vm3, %v93_v18  ;;  %4626 = vmatmul.mubr.msk.f32.gmra.mrb[18].mxu1 %vm144_vm3, %v6533_v53  ;;  %v101_v53 = vld [vmem:[%s8792_s0 + $0xe0] sm:$0xff]  ;;  %v7082_v18 = vld [vmem:[%s8792_s0 + $0xea] sm:$0xff] }
  0xa6   :  { %730 = vmatprep.mubr.f32.mxu0 %v8804_v0  ;;  %927 = vmatprep.mubr.f32.mxu1 %v8804_v0 }
  0xa9   :  { %4603 = vmatmul.mubr.msk.f32.gmra.mrb[14].mxu0 %vm144_vm3, %v94_v19  ;;  %4627 = vmatmul.mubr.msk.f32.gmra.mrb[20].mxu1 %vm144_vm3, %v6549_v59  ;;  %v6803_v59 = vld [vmem:[%s8792_s0 + $0x77] sm:$0xff]  ;;  %v2513_v19 = vld [vmem:[%s8795_s3] sm:$0xff] }
  0xaa   :  { %736 = vmatprep.mubr.f32.mxu0 %v8804_v0  ;;  %933 = vmatprep.mubr.f32.mxu1 %v8804_v0 }
  0xad   :  { %4604 = vmatmul.mubr.msk.f32.gmra.mrb[16].mxu0 %vm144_vm3, %v95_v20  ;;  %4628 = vmatmul.mubr.msk.f32.gmra.mrb[22].mxu1 %vm144_vm3, %v6560_v3  ;;  %v6907_v3 = vld [vmem:[%s8792_s0 + $0x2] sm:$0xff] }
  0xae   :  { %742 = vmatprep.mubr.f32.mxu0 %v8804_v0  ;;  %939 = vmatprep.mubr.f32.mxu1 %v8804_v0  ;;  %v2514_v20 = vld [vmem:[%s8795_s3 + $0x8] sm:$0xff] }
  0xaf   :  { %v5502_v22 = vpack.c.bf16 %v2514_v20, %v2513_v19  ;;  %v2528_v19 = vld [vmem:[%s8795_s3 + $0x78] sm:$0xff] }
  0xb1   :  { %4605 = vmatmul.mubr.msk.f32.gmra.mrb[18].mxu0 %vm144_vm3, %v96_v21  ;;  %4629 = vmatmul.mubr.msk.f32.gmra.mrb[24].mxu1 %vm144_vm3, %v6573_v6  ;;  %v1881_v6 = vld [vmem:[#allocation2 + $0x120] sm:$0xff]  ;;  %v1885_v21 = vld [vmem:[%s8792_s0 + $0x10] sm:$0xff] }
  0xb2   :  { %748 = vmatprep.mubr.f32.mxu0 %v8804_v0  ;;  %1250 = vmatprep.mubr.f32.mxu1 %v8804_v0 }
  0xb5   :  { %4606 = vmatmul.mubr.msk.f32.gmra.mrb[20].mxu0 %vm144_vm3, %v97_v27  ;;  %4650 = vmatmul.mubr.msk.f32.vlgmr.msra.gmra.mrb[26].mxu1 %vm144_vm3, %v6714_v28  ;;  %v1889_v27 = vld [vmem:[%s8792_s0 + $0x50] sm:$0xff] }
  0xb6   :  { %754 = vmatprep.mubr.f32.mxu0 %v8804_v0  ;;  %1256 = vmatprep.mubr.f32.mxu1 %v8804_v0 }
  0xb7   :  { %5447 = vmatpush1.bf16.msra.mxu1 %v5436_v29 }
  0xb8   :  { %5450 = vmatprep.subr.msk.bf16.mxu1 %vm6306_vm2, %v5438_v30 }
  0xb9   :  { %4607 = vmatmul.mubr.msk.f32.gmra.mrb[22].mxu0 %vm144_vm3, %v98_v37  ;;  %4651 = vmatmul.mubr.msk.f32.gmra.mrb[28].mxu1 %vm144_vm3, %v6727_v39 }
  0xba   :  { %760 = vmatprep.mubr.f32.mxu0 %v8804_v0  ;;  %1262 = vmatprep.mubr.f32.mxu1 %v8804_v0 }
  0xbb   :  { %5453 = vmatpush1.bf16.msk.msra.mxu1 %vm6306_vm2, %v5441_v41 }
  0xbc   :  { %5465 = vmatprep.subr.bf16.mxu1 %v5454_v43 }
  0xbd   :  { %4608 = vmatmul.mubr.msk.f32.gmra.mrb[24].mxu0 %vm144_vm3, %v99_v45  ;;  %4652 = vmatmul.mubr.msk.f32.gmra.mrb[30].mxu1 %vm144_vm3, %v6742_v47 }
  0xbe   :  { %766 = vmatprep.mubr.f32.mxu0 %v8804_v0  ;;  %1268 = vmatprep.mubr.f32.mxu1 %v8804_v0 }
  0xc1   :  { %4609 = vmatmul.mubr.msk.f32.gmra.mrb[26].mxu0 %vm144_vm3, %v100_v49  ;;  %4653 = vmatmul.mubr.msk.f32.gmra.mrb[0].mxu1 %vm144_vm3, %v6757_v51  ;;  %v1897_v49 = vld [vmem:[%s8792_s0 + $0xd0] sm:$0xff] }
  0xc2   :  { %772 = vmatprep.mubr.f32.mxu0 %v8804_v0  ;;  %1274 = vmatprep.mubr.f32.mxu1 %v8804_v0 }
  0xc5   :  { %4610 = vmatmul.mubr.msk.f32.gmra.mrb[28].mxu0 %vm144_vm3, %v101_v53  ;;  %4654 = vmatmul.mubr.msk.f32.gmra.mrb[2].mxu1 %vm144_vm3, %v6770_v55  ;;  %v1899_v53 = vld [vmem:[%s8792_s0 + $0xf0] sm:$0xff] }
  0xc6   :  { %778 = vmatprep.mubr.f32.mxu0 %v8804_v0  ;;  %1280 = vmatprep.mubr.f32.mxu1 %v8804_v0 }
  0xc9   :  { %4611 = vmatmul.mubr.msk.f32.gmra.mrb[30].mxu0 %vm144_vm3, %v102_v56  ;;  %4655 = vmatmul.mubr.msk.f32.gmra.mrb[4].mxu1 %vm144_vm3, %v6783_v57  ;;  %v2515_v56 = vld [vmem:[%s8795_s3 + $0x10] sm:$0xff] }
  0xca   :  { %1041 = vmatprep.mubr.f32.mxu0 %v8804_v0  ;;  %1286 = vmatprep.mubr.f32.mxu1 %v8804_v0 }
  0xcd   :  { %4632 = vmatmul.mubr.msk.f32.vlgmr.msra.gmra.mrb[0].mxu0 %vm144_vm3, %v6586_v7  ;;  %4656 = vmatmul.mubr.msk.f32.gmra.mrb[6].mxu1 %vm144_vm3, %v6793_v58  ;;  %v1883_v7 = vld [vmem:[#allocation2 + $0x130] sm:$0xf] }
  0xce   :  { %5437 = vmatpush1.bf16.msra.mxu0 %v5436_v29  ;;  %1047 = vmatprep.mubr.f32.mxu0 %v8804_v0  ;;  %v1891_v29 = vld [vmem:[%s8792_s0 + $0x70] sm:$0xff] }
  0xcf   :  { %1292 = vmatprep.mubr.f32.mxu1 %v8804_v0  ;;  %5440 = vmatprep.subr.msk.bf16.mxu0 %vm6306_vm2, %v5438_v30  ;;  %v1892_v30 = vld [vmem:[%s8792_s0 + $0x78] sm:$0xff] }
  0xd1   :  { %4633 = vmatmul.mubr.msk.f32.gmra.mrb[2].mxu0 %vm144_vm3, %v6597_v8  ;;  %4657 = vmatmul.mubr.msk.f32.gmra.mrb[8].mxu1 %vm144_vm3, %v6803_v59  ;;  %v5461_v8 = vpack.c.bf16 %v1883_v7, %v1881_v6  ;;  %v2522_v6 = vld [vmem:[%s8795_s3 + $0x48] sm:$0xff] }
  0xd2   :  { %1053 = vmatprep.mubr.f32.mxu0 %v8804_v0  ;;  %1298 = vmatprep.mubr.f32.mxu1 %v8804_v0 }
  0xd3   :  { %5443 = vmatpush1.bf16.msk.msra.mxu0 %vm6306_vm2, %v5441_v41  ;;  %v1895_v41 = vld [vmem:[%s8792_s0 + $0xb0] sm:$0xff] }
  0xd4   :  { %5455 = vmatprep.subr.bf16.mxu0 %v5454_v43 }
  0xd5   :  { %4634 = vmatmul.mubr.msk.f32.gmra.mrb[4].mxu0 %vm144_vm3, %v6614_v9  ;;  %4658 = vmatmul.mubr.msk.f32.gmra.mrb[10].mxu1 %vm144_vm3, %v6817_v60  ;;  %v8806_v9 = vmov 0.0|0.0  }
  0xd6   :  { %1059 = vmatprep.mubr.f32.mxu0 %v8804_v0  ;;  %1304 = vmatprep.mubr.f32.mxu1 %v8804_v0 }
  0xd9   :  { %4635 = vmatmul.mubr.msk.f32.gmra.mrb[6].mxu0 %vm144_vm3, %v6326_v17  ;;  %4659 = vmatmul.mubr.msk.f32.gmra.mrb[12].mxu1 %vm144_vm3, %v6830_v61  ;;  %v6852_v17 = vld [vmem:[%s8792_s0 + $0xb7] sm:$0xff] }
  0xda   :  { %1065 = vmatprep.mubr.f32.mxu0 %v8804_v0  ;;  %1310 = vmatprep.mubr.f32.mxu1 %v8804_v0 }
  0xdd   :  { %4636 = vmatmul.mubr.msk.f32.gmra.mrb[8].mxu0 %vm144_vm3, %v6343_v23  ;;  %4660 = vmatmul.mubr.msk.f32.gmra.mrb[14].mxu1 %vm144_vm3, %v6841_v62  ;;  %v6863_v23 = vld [vmem:[%s8792_s0 + $0xcf] sm:$0xff] }
  0xde   :  { %1071 = vmatprep.mubr.f32.mxu0 %v8804_v0  ;;  %1316 = vmatprep.mubr.f32.mxu1 %v8804_v0 }
  0xe1   :  { %4637 = vmatmul.mubr.msk.f32.gmra.mrb[10].mxu0 %vm144_vm3, %v6367_v31  ;;  %4661 = vmatmul.mubr.msk.f32.gmra.mrb[16].mxu1 %vm144_vm3, %v6852_v17  ;;  %v6874_v31 = vld [vmem:[%s8792_s0 + $0xd7] sm:$0xff] }
  0xe2   :  { %1077 = vmatprep.mubr.f32.mxu0 %v8804_v0  ;;  %1322 = vmatprep.mubr.f32.mxu1 %v8804_v0 }
  0xe5   :  { %4638 = vmatmul.mubr.msk.f32.gmra.mrb[12].mxu0 %vm144_vm3, %v6393_v36  ;;  %4662 = vmatmul.mubr.msk.f32.gmra.mrb[18].mxu1 %vm144_vm3, %v6863_v23  ;;  %v6885_v36 = vld [vmem:[%s8792_s0 + $0xef] sm:$0xff] }
  0xe6   :  { %1083 = vmatprep.mubr.f32.mxu0 %v8804_v0  ;;  %1328 = vmatprep.mubr.f32.mxu1 %v8804_v0 }
  0xe9   :  { %4639 = vmatmul.mubr.msk.f32.gmra.mrb[14].mxu0 %vm144_vm3, %v6410_v38  ;;  %4663 = vmatmul.mubr.msk.f32.gmra.mrb[20].mxu1 %vm144_vm3, %v6874_v31  ;;  %v6896_v38 = vld [vmem:[%s8792_s0 + $0xf7] sm:$0xff] }
  0xea   :  { %1089 = vmatprep.mubr.f32.mxu0 %v8804_v0  ;;  %1334 = vmatprep.mubr.f32.mxu1 %v8804_v0 }
  0xed   :  { %4640 = vmatmul.mubr.msk.f32.gmra.mrb[16].mxu0 %vm144_vm3, %v6426_v40  ;;  %4664 = vmatmul.mubr.msk.f32.gmra.mrb[22].mxu1 %vm144_vm3, %v6885_v36  ;;  %v1882_v40 = vld [vmem:[#allocation2 + $0x128] sm:$0xff] }
  0xee   :  { %1095 = vmatprep.mubr.f32.mxu0 %v8804_v0  ;;  %1340 = vmatprep.mubr.f32.mxu1 %v8804_v0  ;;  %v5458_v5 = vpack.c.bf16 %v1884_v2, %v1882_v40  ;;  %v5511_v40 = vpack.c.bf16 %v2520_v1, %v2519_v63  ;;  %v4742_v2 = vld [vmem:[%s8795_s3 + $0xb0] sm:$0xff]  ;;  %v7423_v63 = vld [vmem:[%s8795_s3 + $0x128] sm:$0xff] }
  0xef   :  { %v7428_v1 = vld [vmem:[%s8795_s3 + $0x1d0] sm:$0xff] }
  0xf1   :  { %4641 = vmatmul.mubr.msk.f32.gmra.mrb[18].mxu0 %vm144_vm3, %v6442_v42  ;;  %4665 = vmatmul.mubr.msk.f32.gmra.mrb[24].mxu1 %vm144_vm3, %v6896_v38  ;;  %v6918_v42 = vld [vmem:[%s8792_s0 + $0xa] sm:$0xff] }
  0xf2   :  { %1101 = vmatprep.mubr.f32.mxu0 %v8804_v0  ;;  %1715 = vmatprep.mubr.f32.mxu1 %v8804_v0 }
  0xf5   :  { %4642 = vmatmul.mubr.msk.f32.gmra.mrb[20].mxu0 %vm144_vm3, %v6458_v44  ;;  %4686 = vmatmul.mubr.msk.f32.vlgmr.msra.gmra.mrb[26].mxu1 %vm144_vm3, %v6907_v3  ;;  %v6931_v44 = vld [vmem:[%s8792_s0 + $0x22] sm:$0xff] }
  0xf6   :  { %1107 = vmatprep.mubr.f32.mxu0 %v8804_v0  ;;  %1721 = vmatprep.mubr.f32.mxu1 %v8804_v0 }
  0xf7   :  { %5467 = vmatpush1.bf16.msra.mxu1 %v5456_v4 }
  0xf8   :  { %5470 = vmatprep.subr.msk.bf16.mxu1 %vm6306_vm2, %v5458_v5 }
  0xf9   :  { %4643 = vmatmul.mubr.msk.f32.gmra.mrb[22].mxu0 %vm144_vm3, %v6474_v46  ;;  %4687 = vmatmul.mubr.msk.f32.gmra.mrb[28].mxu1 %vm144_vm3, %v6918_v42  ;;  %v6944_v46 = vld [vmem:[%s8792_s0 + $0x2a] sm:$0xff] }
  0xfa   :  { %1113 = vmatprep.mubr.f32.mxu0 %v8804_v0  ;;  %1727 = vmatprep.mubr.f32.mxu1 %v8804_v0 }
  0xfb   :  { %5473 = vmatpush1.bf16.msk.msra.mxu1 %vm6306_vm2, %v5461_v8 }
  0xfc   :  { %5501 = vmatprep.subr.bf16.mxu1 %v8806_v9 }
  0xfd   :  { %4644 = vmatmul.mubr.msk.f32.gmra.mrb[24].mxu0 %vm144_vm3, %v6490_v48  ;;  %4688 = vmatmul.mubr.msk.f32.gmra.mrb[30].mxu1 %vm144_vm3, %v6931_v44  ;;  %v6955_v48 = vld [vmem:[%s8792_s0 + $0x42] sm:$0xff] }
  0xfe   :  { %1119 = vmatprep.mubr.f32.mxu0 %v8804_v0  ;;  %1733 = vmatprep.mubr.f32.mxu1 %v8804_v0 }
 0x101   :  { %4645 = vmatmul.mubr.msk.f32.gmra.mrb[26].mxu0 %vm144_vm3, %v6506_v50  ;;  %4689 = vmatmul.mubr.msk.f32.gmra.mrb[0].mxu1 %vm144_vm3, %v6944_v46  ;;  %v6966_v50 = vld [vmem:[%s8792_s0 + $0x4a] sm:$0xff] }
 0x102   :  { %1125 = vmatprep.mubr.f32.mxu0 %v8804_v0  ;;  %1739 = vmatprep.mubr.f32.mxu1 %v8804_v0 }
 0x105   :  { %4646 = vmatmul.mubr.msk.f32.gmra.mrb[28].mxu0 %vm144_vm3, %v6522_v52  ;;  %4690 = vmatmul.mubr.msk.f32.gmra.mrb[2].mxu1 %vm144_vm3, %v6955_v48  ;;  %v6977_v52 = vld [vmem:[%s8792_s0 + $0x62] sm:$0xff] }
 0x106   :  { %1131 = vmatprep.mubr.f32.mxu0 %v8804_v0  ;;  %1745 = vmatprep.mubr.f32.mxu1 %v8804_v0 }
 0x109   :  { %4647 = vmatmul.mubr.msk.f32.gmra.mrb[30].mxu0 %vm144_vm3, %v6538_v54  ;;  %4691 = vmatmul.mubr.msk.f32.gmra.mrb[4].mxu1 %vm144_vm3, %v6966_v50  ;;  %v6988_v54 = vld [vmem:[%s8792_s0 + $0x6a] sm:$0xff] }
 0x10a   :  { %1506 = vmatprep.mubr.f32.mxu0 %v8804_v0  ;;  %1751 = vmatprep.mubr.f32.mxu1 %v8804_v0 }
 0x10d   :  { %4668 = vmatmul.mubr.msk.f32.vlgmr.msra.gmra.mrb[0].mxu0 %vm144_vm3, %v6714_v28  ;;  %4692 = vmatmul.mubr.msk.f32.gmra.mrb[6].mxu1 %vm144_vm3, %v6977_v52  ;;  %v1890_v28 = vld [vmem:[%s8792_s0 + $0x58] sm:$0xff] }
 0x10e   :  { %5457 = vmatpush1.bf16.msra.mxu0 %v5456_v4  ;;  %1512 = vmatprep.mubr.f32.mxu0 %v8804_v0 }
 0x10f   :  { %1757 = vmatprep.mubr.f32.mxu1 %v8804_v0  ;;  %5460 = vmatprep.subr.msk.bf16.mxu0 %vm6306_vm2, %v5458_v5  ;;  %v2521_v5 = vld [vmem:[%s8795_s3 + $0x40] sm:$0xff] }
 0x110   :  { %v5514_v7 = vpack.c.bf16 %v2522_v6, %v2521_v5  ;;  %v7450_v5 = vld [vmem:[%s8795_s3 + $0x1e0] sm:$0xff]  ;;  %v7455_v6 = vld [vmem:[%s8795_s3 + $0x1e8] sm:$0xff] }
 0x111   :  { %4669 = vmatmul.mubr.msk.f32.gmra.mrb[2].mxu0 %vm144_vm3, %v6727_v39  ;;  %4693 = vmatmul.mubr.msk.f32.gmra.mrb[8].mxu1 %vm144_vm3, %v6988_v54 }
 0x112   :  { %1518 = vmatprep.mubr.f32.mxu0 %v8804_v0  ;;  %1763 = vmatprep.mubr.f32.mxu1 %v8804_v0 }
 0x113   :  { %5463 = vmatpush1.bf16.msk.msra.mxu0 %vm6306_vm2, %v5461_v8  ;;  %v4745_v8 = vld [vmem:[%s8795_s3 + $0xc8] sm:$0xff] }
 0x114   :  { %5474 = vmatprep.subr.bf16.mxu0 %v8806_v9 }
 0x115   :  { %4670 = vmatmul.mubr.msk.f32.gmra.mrb[4].mxu0 %vm144_vm3, %v6742_v47  ;;  %4694 = vmatmul.mubr.msk.f32.gmra.mrb[10].mxu1 %vm144_vm3, %v7002_v11  ;;  %v1896_v47 = vld [vmem:[%s8792_s0 + $0xb8] sm:$0xff] }
 0x116   :  { %1524 = vmatprep.mubr.f32.mxu0 %v8804_v0  ;;  %1769 = vmatprep.mubr.f32.mxu1 %v8804_v0 }
 0x119   :  { %4671 = vmatmul.mubr.msk.f32.gmra.mrb[6].mxu0 %vm144_vm3, %v6757_v51  ;;  %4695 = vmatmul.mubr.msk.f32.gmra.mrb[12].mxu1 %vm144_vm3, %v7016_v12  ;;  %v1898_v51 = vld [vmem:[%s8792_s0 + $0xd8] sm:$0xff] }
 0x11a   :  { %1530 = vmatprep.mubr.f32.mxu0 %v8804_v0  ;;  %1775 = vmatprep.mubr.f32.mxu1 %v8804_v0 }
 0x11d   :  { %4672 = vmatmul.mubr.msk.f32.gmra.mrb[8].mxu0 %vm144_vm3, %v6770_v55  ;;  %4696 = vmatmul.mubr.msk.f32.gmra.mrb[14].mxu1 %vm144_vm3, %v7027_v10  ;;  %v1900_v55 = vld [vmem:[%s8792_s0 + $0xf8] sm:$0xff] }
 0x11e   :  { %1536 = vmatprep.mubr.f32.mxu0 %v8804_v0  ;;  %1781 = vmatprep.mubr.f32.mxu1 %v8804_v0 }
 0x121   :  { %4673 = vmatmul.mubr.msk.f32.gmra.mrb[10].mxu0 %vm144_vm3, %v6783_v57  ;;  %4697 = vmatmul.mubr.msk.f32.gmra.mrb[16].mxu1 %vm144_vm3, %v7038_v13  ;;  %v2516_v57 = vld [vmem:[%s8795_s3 + $0x18] sm:$0xff] }
 0x122   :  { %1542 = vmatprep.mubr.f32.mxu0 %v8804_v0  ;;  %1787 = vmatprep.mubr.f32.mxu1 %v8804_v0 }
 0x125   :  { %4674 = vmatmul.mubr.msk.f32.gmra.mrb[12].mxu0 %vm144_vm3, %v6793_v58  ;;  %4698 = vmatmul.mubr.msk.f32.gmra.mrb[18].mxu1 %vm144_vm3, %v7049_v14  ;;  %v5505_v58 = vpack.c.bf16 %v2516_v57, %v2515_v56 }
 0x126   :  { %1548 = vmatprep.mubr.f32.mxu0 %v8804_v0  ;;  %1793 = vmatprep.mubr.f32.mxu1 %v8804_v0 }
 0x129   :  { %4675 = vmatmul.mubr.msk.f32.gmra.mrb[14].mxu0 %vm144_vm3, %v6803_v59  ;;  %4699 = vmatmul.mubr.msk.f32.gmra.mrb[20].mxu1 %vm144_vm3, %v7060_v15  ;;  %v4738_v59 = vld [vmem:[%s8795_s3 + $0x90] sm:$0xff] }
 0x12a   :  { %1554 = vmatprep.mubr.f32.mxu0 %v8804_v0  ;;  %1799 = vmatprep.mubr.f32.mxu1 %v8804_v0 }
 0x12d   :  { %4676 = vmatmul.mubr.msk.f32.gmra.mrb[16].mxu0 %vm144_vm3, %v6817_v60  ;;  %4700 = vmatmul.mubr.msk.f32.gmra.mrb[22].mxu1 %vm144_vm3, %v7071_v16  ;;  %v4739_v60 = vld [vmem:[%s8795_s3 + $0x98] sm:$0xff] }
 0x12e   :  { %1560 = vmatprep.mubr.f32.mxu0 %v8804_v0  ;;  %1805 = vmatprep.mubr.f32.mxu1 %v8804_v0 }
 0x131   :  { %4677 = vmatmul.mubr.msk.f32.gmra.mrb[18].mxu0 %vm144_vm3, %v6830_v61  ;;  %4701 = vmatmul.mubr.msk.f32.gmra.mrb[24].mxu1 %vm144_vm3, %v7082_v18  ;;  %v5475_v61 = vpack.c.bf16 %v4739_v60, %v4738_v59 }
 0x132   :  { %1566 = vmatprep.mubr.f32.mxu0 %v8804_v0  ;;  %2180 = vmatprep.mubr.f32.mxu1 %v8804_v0 }
 0x135   :  { %4678 = vmatmul.mubr.msk.f32.gmra.mrb[20].mxu0 %vm144_vm3, %v6841_v62  ;;  %4722 = vmatmul.mubr.msk.f32.vlgmr.msra.gmra.mrb[26].mxu1 %vm144_vm3, %v1885_v21  ;;  %v2517_v62 = vld [vmem:[%s8795_s3 + $0x20] sm:$0xff]  ;;  %v4750_v21 = vld [vmem:[%s8795_s3 + $0xf0] sm:$0xff] }
 0x136   :  { %1572 = vmatprep.mubr.f32.mxu0 %v8804_v0  ;;  %2186 = vmatprep.mubr.f32.mxu1 %v8804_v0 }
 0x137   :  { %5503 = vmatpush1.bf16.msra.mxu1 %v5502_v22  ;;  %v4751_v22 = vld [vmem:[%s8795_s3 + $0xf8] sm:$0xff] }
 0x138   :  { %5504 = vmatprep.subr.bf16.mxu1 %v8806_v9 }
 0x139   :  { %4679 = vmatmul.mubr.msk.f32.gmra.mrb[22].mxu0 %vm144_vm3, %v6852_v17  ;;  %4723 = vmatmul.mubr.msk.f32.gmra.mrb[28].mxu1 %vm144_vm3, %v1886_v24  ;;  %v2518_v17 = vld [vmem:[%s8795_s3 + $0x28] sm:$0xff]  ;;  %v5493_v24 = vpack.c.bf16 %v4751_v22, %v4750_v21 }
 0x13a   :  { %1578 = vmatprep.mubr.f32.mxu0 %v8804_v0  ;;  %2192 = vmatprep.mubr.f32.mxu1 %v8804_v0 }
 0x13b   :  { %5506 = vmatpush1.bf16.msra.mxu1 %v5505_v58 }
 0x13c   :  { %5507 = vmatprep.subr.bf16.mxu1 %v8806_v9 }
 0x13d   :  { %4680 = vmatmul.mubr.msk.f32.gmra.mrb[24].mxu0 %vm144_vm3, %v6863_v23  ;;  %4724 = vmatmul.mubr.msk.f32.gmra.mrb[30].mxu1 %vm144_vm3, %v1887_v25  ;;  %v5508_v23 = vpack.c.bf16 %v2518_v17, %v2517_v62  ;;  %v2529_v25 = vld [vmem:[%s8795_s3 + $0x80] sm:$0xff] }
 0x13e   :  { %1584 = vmatprep.mubr.f32.mxu0 %v8804_v0  ;;  %2198 = vmatprep.mubr.f32.mxu1 %v8804_v0 }
 0x13f   :  { %5509 = vmatpush1.bf16.msra.mxu1 %v5508_v23 }
 0x140   :  { %5510 = vmatprep.subr.bf16.mxu1 %v8806_v9 }
 0x141   :  { %4681 = vmatmul.mubr.msk.f32.gmra.mrb[26].mxu0 %vm144_vm3, %v6874_v31  ;;  %4725 = vmatmul.mubr.msk.f32.gmra.mrb[0].mxu1 %vm144_vm3, %v1888_v26  ;;  %v4740_v31 = vld [vmem:[%s8795_s3 + $0xa0] sm:$0xff]  ;;  %v2530_v26 = vld [vmem:[%s8795_s3 + $0x88] sm:$0xff] }
 0x142   :  { %1590 = vmatprep.mubr.f32.mxu0 %v8804_v0  ;;  %2204 = vmatprep.mubr.f32.mxu1 %v8804_v0 }
 0x143   :  { %5512 = vmatpush1.bf16.msra.mxu1 %v5511_v40  ;;  %v7433_v40 = vld [vmem:[%s8795_s3 + $0x1d8] sm:$0xff] }
 0x144   :  { %5513 = vmatprep.subr.bf16.mxu1 %v8806_v9 }
 0x145   :  { %4682 = vmatmul.mubr.msk.f32.gmra.mrb[28].mxu0 %vm144_vm3, %v6885_v36  ;;  %4726 = vmatmul.mubr.msk.f32.gmra.mrb[2].mxu1 %vm144_vm3, %v1889_v27  ;;  %v4741_v36 = vld [vmem:[%s8795_s3 + $0xa8] sm:$0xff]  ;;  %v5526_v27 = vpack.c.bf16 %v2530_v26, %v2529_v25 }
 0x146   :  { %1596 = vmatprep.mubr.f32.mxu0 %v8804_v0  ;;  %2210 = vmatprep.mubr.f32.mxu1 %v8804_v0 }
 0x147   :  { %5515 = vmatpush1.bf16.msra.mxu1 %v5514_v7  ;;  %v7460_v7 = vld [vmem:[%s8795_s3 + $0x140] sm:$0xff] }
 0x148   :  { %5516 = vmatprep.subr.bf16.mxu1 %v8806_v9 }
 0x149   :  { %4683 = vmatmul.mubr.msk.f32.gmra.mrb[30].mxu0 %vm144_vm3, %v6896_v38  ;;  %4727 = vmatmul.mubr.msk.f32.gmra.mrb[4].mxu1 %vm144_vm3, %v1890_v28  ;;  %v5478_v38 = vpack.c.bf16 %v4741_v36, %v4740_v31  ;;  %v4752_v28 = vld [vmem:[%s8795_s3 + $0x100] sm:$0xff]  ;;  %v7413_v36 = vld [vmem:[%s8795_s3 + $0x1c8] sm:$0xff] }
 0x14a   :  { %1971 = vmatprep.mubr.f32.mxu0 %v8804_v0  ;;  %2216 = vmatprep.mubr.f32.mxu1 %v8804_v0 }
 0x14d   :  { %4704 = vmatmul.mubr.msk.f32.vlgmr.msra.gmra.mrb[0].mxu0 %vm144_vm3, %v6907_v3  ;;  %4728 = vmatmul.mubr.msk.f32.gmra.mrb[6].mxu1 %vm144_vm3, %v1891_v29  ;;  %v4743_v3 = vld [vmem:[%s8795_s3 + $0xb8] sm:$0xff]  ;;  %v4753_v29 = vld [vmem:[%s8795_s3 + $0x108] sm:$0xff] }
 0x14e   :  { %1977 = vmatprep.mubr.f32.mxu0 %v8804_v0  ;;  %2222 = vmatprep.mubr.f32.mxu1 %v8804_v0  ;;  %v5481_v4 = vpack.c.bf16 %v4743_v3, %v4742_v2  ;;  %v7440_v3 = vld [vmem:[%s8795_s3 + $0x130] sm:$0xff] }
 0x14f   :  { %5476 = vmatpush1.bf16.msra.mxu0 %v5475_v61 }
 0x150   :  { %5477 = vmatprep.subr.bf16.mxu0 %v8806_v9 }
 0x151   :  { %4705 = vmatmul.mubr.msk.f32.gmra.mrb[2].mxu0 %vm144_vm3, %v6918_v42  ;;  %4729 = vmatmul.mubr.msk.f32.gmra.mrb[8].mxu1 %vm144_vm3, %v1892_v30  ;;  %v4744_v42 = vld [vmem:[%s8795_s3 + $0xc0] sm:$0xff]  ;;  %v5496_v30 = vpack.c.bf16 %v4753_v29, %v4752_v28  ;;  %v7557_v28 = vld [vmem:[%s8795_s3 + $0x188] sm:$0xff]  ;;  %v7562_v29 = vld [vmem:[%s8795_s3 + $0x230] sm:$0xff] }
 0x152   :  { %1983 = vmatprep.mubr.f32.mxu0 %v8804_v0  ;;  %2228 = vmatprep.mubr.f32.mxu1 %v8804_v0  ;;  %8833 = vst [vmem:[#allocation14_spill] sm:$0xff] %v7557_v28  ;;  %8834 = vst [vmem:[#allocation15_spill] sm:$0xff] %v7562_v29 }
 0x153   :  { %5479 = vmatpush1.bf16.msra.mxu0 %v5478_v38  ;;  %v7418_v38 = vld [vmem:[%s8795_s3 + $0x120] sm:$0xff] }
 0x154   :  { %v7164_v33 = vpop.f32.mrb[32].mxu0  ;;  %5480 = vmatprep.subr.bf16.mxu0 %v8806_v9 }
 0x155   :  { %v7166_v34 = vpop.f32.mrb[33].mxu0  ;;  %4706 = vmatmul.mubr.msk.f32.gmra.mrb[4].mxu0 %vm144_vm3, %v6931_v44  ;;  %4730 = vmatmul.mubr.msk.f32.gmra.mrb[10].mxu1 %vm144_vm3, %v1893_v32  ;;  %v5484_v44 = vpack.c.bf16 %v4745_v8, %v4744_v42  ;;  %v4754_v32 = vld [vmem:[%s8795_s3 + $0x110] sm:$0xff]  ;;  %v7465_v42 = vld [vmem:[%s8795_s3 + $0x148] sm:$0xff] }
 0x156   :  { %1989 = vmatprep.mubr.f32.mxu0 %v8804_v0  ;;  %2234 = vmatprep.mubr.f32.mxu1 %v8804_v0  ;;  %v7470_v8 = vld [vmem:[%s8795_s3 + $0x1f0] sm:$0xff] }
 0x157   :  { %5482 = vmatpush1.bf16.msra.mxu0 %v5481_v4  ;;  %v7445_v4 = vld [vmem:[%s8795_s3 + $0x138] sm:$0xff] }
 0x158   :  { %v7176_v37 = vpop.f32.mrb[34].mxu0  ;;  %5483 = vmatprep.subr.bf16.mxu0 %v8806_v9 }
 0x159   :  { %v7178_v39 = vpop.f32.mrb[35].mxu0  ;;  %4707 = vmatmul.mubr.msk.f32.gmra.mrb[6].mxu0 %vm144_vm3, %v6944_v46  ;;  %4731 = vmatmul.mubr.msk.f32.gmra.mrb[12].mxu1 %vm144_vm3, %v1894_v35  ;;  %v2523_v46 = vld [vmem:[%s8795_s3 + $0x50] sm:$0xff]  ;;  %v4755_v35 = vld [vmem:[%s8795_s3 + $0x118] sm:$0xff] }
 0x15a   :  { %1995 = vmatprep.mubr.f32.mxu0 %v8804_v0  ;;  %2240 = vmatprep.mubr.f32.mxu1 %v8804_v0 }
 0x15b   :  { %5485 = vmatpush1.bf16.msra.mxu0 %v5484_v44  ;;  %v7475_v44 = vld [vmem:[%s8795_s3 + $0x1f8] sm:$0xff] }
 0x15c   :  { %v7188_v43 = vpop.f32.mrb[36].mxu0  ;;  %5486 = vmatprep.subr.bf16.mxu0 %v8806_v9 }
 0x15d   :  { %v7190_v45 = vpop.f32.mrb[37].mxu0  ;;  %4708 = vmatmul.mubr.msk.f32.gmra.mrb[8].mxu0 %vm144_vm3, %v6955_v48  ;;  %4732 = vmatmul.mubr.msk.f32.gmra.mrb[14].mxu1 %vm144_vm3, %v1895_v41  ;;  %v2524_v48 = vld [vmem:[%s8795_s3 + $0x58] sm:$0xff]  ;;  %v5499_v41 = vpack.c.bf16 %v4755_v35, %v4754_v32 }
 0x15e   :  { %2001 = vmatprep.mubr.f32.mxu0 %v8804_v0  ;;  %2246 = vmatprep.mubr.f32.mxu1 %v8804_v0 }
 0x161   :  { %4709 = vmatmul.mubr.msk.f32.gmra.mrb[10].mxu0 %vm144_vm3, %v6966_v50  ;;  %4733 = vmatmul.mubr.msk.f32.gmra.mrb[16].mxu1 %vm144_vm3, %v1896_v47  ;;  %v5517_v50 = vpack.c.bf16 %v2524_v48, %v2523_v46  ;;  %v7480_v46 = vld [vmem:[%s8795_s3 + $0x150] sm:$0xff]  ;;  %v7485_v48 = vld [vmem:[%s8795_s3 + $0x158] sm:$0xff] }
 0x162   :  { %2007 = vmatprep.mubr.f32.mxu0 %v8804_v0  ;;  %2252 = vmatprep.mubr.f32.mxu1 %v8804_v0 }
 0x163   :  { %5518 = vmatpush1.bf16.msra.mxu1 %v5517_v50  ;;  %v7490_v50 = vld [vmem:[%s8795_s3 + $0x200] sm:$0xff] }
 0x164   :  { %5519 = vmatprep.subr.bf16.mxu1 %v8806_v9 }
 0x165   :  { %4710 = vmatmul.mubr.msk.f32.gmra.mrb[12].mxu0 %vm144_vm3, %v6977_v52  ;;  %4734 = vmatmul.mubr.msk.f32.gmra.mrb[18].mxu1 %vm144_vm3, %v1897_v49  ;;  %v4746_v52 = vld [vmem:[%s8795_s3 + $0xd0] sm:$0xff] }
 0x166   :  { %2013 = vmatprep.mubr.f32.mxu0 %v8804_v0  ;;  %2258 = vmatprep.mubr.f32.mxu1 %v8804_v0 }
 0x169   :  { %4711 = vmatmul.mubr.msk.f32.gmra.mrb[14].mxu0 %vm144_vm3, %v6988_v54  ;;  %4735 = vmatmul.mubr.msk.f32.gmra.mrb[20].mxu1 %vm144_vm3, %v1898_v51  ;;  %v4747_v54 = vld [vmem:[%s8795_s3 + $0xd8] sm:$0xff] }
 0x16a   :  { %2019 = vmatprep.mubr.f32.mxu0 %v8804_v0  ;;  %2264 = vmatprep.mubr.f32.mxu1 %v8804_v0 }
 0x16d   :  { %4712 = vmatmul.mubr.msk.f32.gmra.mrb[16].mxu0 %vm144_vm3, %v7002_v11  ;;  %4736 = vmatmul.mubr.msk.f32.gmra.mrb[22].mxu1 %vm144_vm3, %v1899_v53  ;;  %v5487_v11 = vpack.c.bf16 %v4747_v54, %v4746_v52  ;;  %v7495_v52 = vld [vmem:[%s8795_s3 + $0x208] sm:$0xff]  ;;  %v7500_v54 = vld [vmem:[%s8795_s3 + $0x160] sm:$0xff] }
 0x16e   :  { %2025 = vmatprep.mubr.f32.mxu0 %v8804_v0  ;;  %2270 = vmatprep.mubr.f32.mxu1 %v8804_v0 }
 0x16f   :  { %5488 = vmatpush1.bf16.msra.mxu0 %v5487_v11  ;;  %v7505_v11 = vld [vmem:[%s8795_s3 + $0x168] sm:$0xff] }
 0x170   :  { %5489 = vmatprep.subr.bf16.mxu0 %v8806_v9 }
 0x171   :  { %4713 = vmatmul.mubr.msk.f32.gmra.mrb[18].mxu0 %vm144_vm3, %v7016_v12  ;;  %4737 = vmatmul.mubr.msk.f32.gmra.mrb[24].mxu1 %vm144_vm3, %v1900_v55  ;;  %v2525_v12 = vld [vmem:[%s8795_s3 + $0x60] sm:$0xff]  ;;  %v2343_v55 = vlaneseq }
 0x172   :  { %2031 = vmatprep.mubr.f32.mxu0 %v8804_v0 }
 0x173   :  { %v2344_v60 = vshrl.u32 %v2343_v55, 7  ;;  %v7585_v55 = vld [vmem:[%s8795_s3 + $0x198] sm:$0xff] }
 0x174   :  { %8837 = vst [vmem:[#allocation18_spill] sm:$0xff] %v7585_v55 }
 0x175   :  { %4714 = vmatmul.mubr.msk.f32.gmra.mrb[20].mxu0 %vm144_vm3, %v7027_v10  ;;  %v2526_v10 = vld [vmem:[%s8795_s3 + $0x68] sm:$0xff]  ;;  %v2345_v23 = vsub.s32 0, %v2344_v60 }
 0x176   :  { %2037 = vmatprep.mubr.f32.mxu0 %v8804_v0 }
 0x179   :  { %4715 = vmatmul.mubr.msk.f32.gmra.mrb[22].mxu0 %vm144_vm3, %v7038_v13  ;;  %v5520_v13 = vpack.c.bf16 %v2526_v10, %v2525_v12  ;;  %v7512_v10 = vld [vmem:[%s8795_s3 + $0x210] sm:$0xff] }
 0x17a   :  { %2043 = vmatprep.mubr.f32.mxu0 %v8804_v0 }
 0x17b   :  { %5521 = vmatpush1.bf16.msra.mxu1 %v5520_v13  ;;  %v7517_v13 = vld [vmem:[%s8795_s3 + $0x218] sm:$0xff] }
 0x17c   :  { %5522 = vmatprep.subr.bf16.mxu1 %v8806_v9 }
 0x17d   :  { %4716 = vmatmul.mubr.msk.f32.gmra.mrb[24].mxu0 %vm144_vm3, %v7049_v14  ;;  %v4748_v14 = vld [vmem:[%s8795_s3 + $0xe0] sm:$0xff] }
 0x17e   :  { %2049 = vmatprep.mubr.f32.mxu0 %v8804_v0 }
 0x181   :  { %4717 = vmatmul.mubr.msk.f32.gmra.mrb[26].mxu0 %vm144_vm3, %v7060_v15  ;;  %v4749_v15 = vld [vmem:[%s8795_s3 + $0xe8] sm:$0xff] }
 0x182   :  { %2055 = vmatprep.mubr.f32.mxu0 %v8804_v0 }
 0x185   :  { %4718 = vmatmul.mubr.msk.f32.gmra.mrb[28].mxu0 %vm144_vm3, %v7071_v16  ;;  %v5490_v16 = vpack.c.bf16 %v4749_v15, %v4748_v14  ;;  %v7522_v14 = vld [vmem:[%s8795_s3 + $0x170] sm:$0xff] }
 0x186   :  { %2061 = vmatprep.mubr.f32.mxu0 %v8804_v0  ;;  %8828 = vst [vmem:[#allocation9_spill] sm:$0xff] %v7522_v14 }
 0x187   :  { %5491 = vmatpush1.bf16.msra.mxu0 %v5490_v16 }
 0x188   :  { %5492 = vmatprep.subr.bf16.mxu0 %v8806_v9 }
 0x189   :  { %4719 = vmatmul.mubr.msk.f32.gmra.mrb[30].mxu0 %vm144_vm3, %v7082_v18  ;;  %v2527_v18 = vld [vmem:[%s8795_s3 + $0x70] sm:$0xff] }
 0x18a   :  { %v5523_v20 = vpack.c.bf16 %v2528_v19, %v2527_v18  ;;  %v7529_v18 = vld [vmem:[%s8795_s3 + $0x178] sm:$0xff]  ;;  %v7534_v19 = vld [vmem:[%s8795_s3 + $0x220] sm:$0xff] }
 0x18b   :  { %5494 = vmatpush1.bf16.msra.mxu0 %v5493_v24  ;;  %8829 = vst [vmem:[#allocation10_spill] sm:$0xff] %v7529_v18  ;;  %8830 = vst [vmem:[#allocation11_spill] sm:$0xff] %v7534_v19 }
 0x18c   :  { %5524 = vmatpush1.bf16.msra.mxu1 %v5523_v20  ;;  %5495 = vmatprep.subr.bf16.mxu0 %v8806_v9  ;;  %v7539_v20 = vld [vmem:[%s8795_s3 + $0x228] sm:$0xff] }
 0x18d   :  { %5525 = vmatprep.subr.bf16.mxu1 %v8806_v9  ;;  %8831 = vst [vmem:[#allocation12_spill] sm:$0xff] %v7539_v20 }
 0x18f   :  { %5497 = vmatpush1.bf16.msra.mxu0 %v5496_v30 }
 0x190   :  { %5527 = vmatpush1.bf16.msra.mxu1 %v5526_v27  ;;  %5498 = vmatprep.subr.bf16.mxu0 %v8806_v9  ;;  %v7552_v27 = vld [vmem:[%s8795_s3 + $0x180] sm:$0xff] }
 0x191   :  { %5555 = vmatprep.subr.bf16.mxu1 %v8806_v9  ;;  %8832 = vst [vmem:[#allocation13_spill] sm:$0xff] %v7552_v27 }
 0x193   :  { %5500 = vmatpush1.bf16.msra.mxu0 %v5499_v41  ;;  %v7626_v41 = vld [vmem:[%s8795_s3 + $0x250] sm:$0xff] }
 0x194   :  { %5528 = vmatprep.subr.bf16.mxu0 %v8806_v9  ;;  %8842 = vst [vmem:[#allocation23_spill] sm:$0xff] %v7626_v41 }
 0x208   :  { %v2182_v47 = vpop.f32.mrb[26].mxu1 }
 0x209   :  { %v7373_v49 = vadd.f32 %v2182_v47, %v7164_v33  ;;  %v2184_v51 = vpop.f32.mrb[27].mxu1  ;;  %v7575_v47 = vld [vmem:[%s8795_s3 + $0x238] sm:$0xff] }
 0x20a   :  { %v7376_v53 = vadd.f32 %v2184_v51, %v7166_v34  ;;  %v2341_v34 = vld [vmem:[%s8794_s2] sm:$0x3]  ;;  %8835 = vst [vmem:[#allocation16_spill] sm:$0xff] %v7575_v47  ;;  %v7580_v51 = vld [vmem:[%s8795_s3 + $0x190] sm:$0xff]  ;;  %v8846_v47 = vmov 0.0|0.0  }
 0x20b   :  { %v7507_v12 = vrot.slane %v2341_v34, %v2345_v23  ;;  %8836 = vst [vmem:[#allocation17_spill] sm:$0xff] %v7580_v51 }
 0x20c   :  { %v2188_v56 = vpop.f32.mrb[28].mxu1 }
 0x20d   :  { %v7379_v57 = vadd.f32 %v2188_v56, %v7176_v37  ;;  %v2190_v58 = vpop.f32.mrb[29].mxu1  ;;  %v2349_v37 = vsub.s32 1, %v2344_v60  ;;  %v2417_v56 = vadd.f32 %v7373_v49, %v7507_v12  ;;  %v7608_v49 = vld [vmem:[%s8795_s3 + $0x240] sm:$0xff] }
 0x20e   :  { %v7382_v59 = vadd.f32 %v2190_v58, %v7178_v39  ;;  %v7398_v39 = vld [vmem:[%s8795_s3 + $0x1b0] sm:$0xff]  ;;  %8840 = vst [vmem:[#allocation21_spill] sm:$0xff] %v7608_v49  ;;  %v7621_v58 = vld [vmem:[%s8795_s3 + $0x248] sm:$0xff] }
 0x20f   :  { %v7524_v15 = vrot.slane %v2341_v34, %v2349_v37  ;;  %v7603_v34 = vld [vmem:[%s8795_s3 + $0x1a8] sm:$0xff]  ;;  %8841 = vst [vmem:[#allocation22_spill] sm:$0xff] %v7621_v58  ;;  %v2449_v25 = vmax.f32 %v2417_v56, 0.0 }
 0x210   :  { %v2194_v61 = vpop.f32.mrb[30].mxu1  ;;  %8839 = vst [vmem:[#allocation20_spill] sm:$0xff] %v7603_v34 }
 0x211   :  { %v7385_v62 = vadd.f32 %v2194_v61, %v7188_v43  ;;  %v2196_v33 = vpop.f32.mrb[31].mxu1  ;;  %v7403_v43 = vld [vmem:[%s8795_s3 + $0x1b8] sm:$0xff]  ;;  %v2418_v23 = vadd.f32 %v7376_v53, %v7524_v15  ;;  %v7635_v61 = vadd.f32 %v7379_v57, %v7507_v12  ;;  %v7639_v60 = vadd.f32 %v7382_v59, %v7524_v15 }
 0x212   :  { %v7388_v17 = vadd.f32 %v2196_v33, %v7190_v45  ;;  %v7408_v45 = vld [vmem:[%s8795_s3 + $0x1c0] sm:$0xff]  ;;  %v7631_v53 = vld [vmem:[%s8795_s3 + $0x258] sm:$0xff] }
 0x213   :  { %v7598_v33 = vld [vmem:[%s8795_s3 + $0x1a0] sm:$0xff]  ;;  %8843 = vst [vmem:[#allocation24_spill] sm:$0xff] %v7631_v53  ;;  %v7647_v30 = vadd.f32 %v7385_v62, %v7507_v12  ;;  %v2450_v24 = vmax.f32 %v2418_v23, 0.0  ;;  %v2451_v9 = vmax.f32 %v7635_v61, 0.0  ;;  %v2452_v32 = vmax.f32 %v7639_v60, 0.0 }
 0x214   :  { %v7393_v31 = vpop.f32.mrb[0].mxu1  ;;  %8838 = vst [vmem:[#allocation19_spill] sm:$0xff] %v7598_v33  ;;  %v7651_v57 = vadd.f32 %v7388_v17, %v7524_v15 }
 0x215   :  { %v7435_v2 = vpop.f32.mrb[1].mxu1  ;;  %v7659_v35 = vadd.f32 %v7507_v12, %v7393_v31  ;;  %v2453_v41 = vmax.f32 %v7647_v30, 0.0 }
 0x216   :  { %v7667_v17 = vadd.f32 %v7524_v15, %v7435_v2 }
 0x218   :  { %v2206_v16 = vpop.f32.mrb[2].mxu1 }
 0x219   :  { %v2208_v21 = vpop.f32.mrb[3].mxu1  ;;  %v7670_v59 = vadd.f32 %v7507_v12, %v2206_v16 }
 0x21a   :  { %v7673_v56 = vadd.f32 %v7524_v15, %v2208_v21 }
 0x21c   :  { %v2212_v37 = vpop.f32.mrb[4].mxu1 }
 0x21d   :  { %v2214_v0 = vpop.f32.mrb[5].mxu1  ;;  %v7678_v22 = vadd.f32 %v7507_v12, %v2212_v37 }
 0x21e   :  { %v7684_v21 = vadd.f32 %v7524_v15, %v2214_v0 }
 0x220   :  { %v1973_v26 = vpop.f32.mrb[0].mxu0  ;;  %v2218_v31 = vpop.f32.mrb[6].mxu1 }
 0x221   :  { %v2353_v23 = vadd.f32 %v7507_v12, %v1973_v26  ;;  %v1975_v62 = vpop.f32.mrb[1].mxu0  ;;  %v2220_v2 = vpop.f32.mrb[7].mxu1  ;;  %v7689_v60 = vadd.f32 %v7507_v12, %v2218_v31 }
 0x222   :  { %v2354_v53 = vadd.f32 %v7524_v15, %v1975_v62  ;;  %v7692_v37 = vadd.f32 %v7524_v15, %v2220_v2 }
 0x223   :  { %v2385_v49 = vmax.f32 %v2353_v23, 0.0 }
 0x224   :  { %v2386_v0 = vmax.f32 %v2354_v53, 0.0  ;;  %v1979_v58 = vpop.f32.mrb[2].mxu0  ;;  %v2224_v33 = vpop.f32.mrb[8].mxu1 }
 0x225   :  { %v7698_v23 = vadd.f32 %v2449_v25, %v2385_v49  ;;  %v2355_v31 = vadd.f32 %v7507_v12, %v1979_v58  ;;  %v7702_v2 = vadd.f32 %v7507_v12, %v2224_v33  ;;  %v1981_v61 = vpop.f32.mrb[3].mxu0  ;;  %v2226_v34 = vpop.f32.mrb[9].mxu1 }
 0x226   :  { %v7705_v30 = vadd.f32 %v2450_v24, %v2386_v0  ;;  %v2356_v53 = vadd.f32 %v7524_v15, %v1981_v61  ;;  %v7709_v16 = vadd.f32 %v7524_v15, %v2226_v34 }
 0x227   :  { %8844 = vst [vmem:[#allocation25_spill] sm:$0xff] %v7698_v23  ;;  %v2387_v49 = vmax.f32 %v2355_v31, 0.0  ;;  %v2564_v24 = vrot.slane %v7698_v23, 1  ;;  %v3088_v34 = vrot.slane %v7698_v23, 3 }
 0x228   :  { %v2388_v33 = vmax.f32 %v2356_v53, 0.0  ;;  %v1985_v55 = vpop.f32.mrb[4].mxu0  ;;  %v2230_v29 = vpop.f32.mrb[10].mxu1  ;;  %4764 = vmatprep.mubr.msk.f32.mxu1 %vm2639_vm4, %v7705_v30  ;;  %v2567_v51 = vrot.slane %v7705_v30, 1 }
 0x229   :  { %v7719_v61 = vadd.f32 %v2451_v9, %v2387_v49  ;;  %v2357_v0 = vadd.f32 %v7507_v12, %v1985_v55  ;;  %v7723_v31 = vadd.f32 %v7507_v12, %v2230_v29  ;;  %v1987_v58 = vpop.f32.mrb[5].mxu0  ;;  %v2232_v53 = vpop.f32.mrb[11].mxu1  ;;  %2842 = vmatmul.mubr.f32.vlgmr.msra.gmra.mrb[32].mxu1 %v7698_v23  ;;  %v8845_v9 = vpack.c.bf16 %v7403_v43, %v7398_v39 }
 0x22a   :  { %v7727_v25 = vadd.f32 %v2452_v32, %v2388_v33  ;;  %v2358_v62 = vadd.f32 %v7524_v15, %v1987_v58  ;;  %v7731_v26 = vadd.f32 %v7524_v15, %v2232_v53  ;;  %v3091_v29 = vrot.slane %v7705_v30, 3 }
 0x22b   :  { %5557 = vmatpush1.bf16.msra.mxu1 %v8845_v9  ;;  %v2389_v55 = vmax.f32 %v2357_v0, 0.0  ;;  %v2565_v23 = vrot.slane %v7719_v61, 1  ;;  %v3089_v39 = vrot.slane %v7719_v61, 3 }
 0x22c   :  { %5558 = vmatprep.subr.bf16.mxu1 %v8846_v47  ;;  %v2390_v33 = vmax.f32 %v2358_v62, 0.0  ;;  %v1991_v58 = vpop.f32.mrb[6].mxu0  ;;  %v2236_v27 = vpop.f32.mrb[12].mxu1  ;;  %v2568_v53 = vrot.slane %v7727_v25, 1  ;;  %v3092_v28 = vrot.slane %v7727_v25, 3  ;;  %v8847_v62 = vmax.f32 %v7651_v57, 0.0 }
 0x22d   :  { %v7744_v43 = vadd.f32 %v2453_v41, %v2389_v55  ;;  %v2359_v9 = vadd.f32 %v7507_v12, %v1991_v58  ;;  %v7749_v49 = vadd.f32 %v7507_v12, %v2236_v27  ;;  %v1993_v19 = vpop.f32.mrb[7].mxu0  ;;  %v2238_v32 = vpop.f32.mrb[13].mxu1  ;;  %v8848_v55 = vpack.c.bf16 %v7413_v36, %v7408_v45 }
 0x22e   :  { %v7753_v20 = vadd.f32 %v8847_v62, %v2390_v33  ;;  %v2360_v14 = vadd.f32 %v7524_v15, %v1993_v19  ;;  %v7757_v18 = vadd.f32 %v7524_v15, %v2238_v32  ;;  %v2569_v41 = vsel %vm2563_vm5, %v2567_v51, %v2568_v53 }
 0x22f   :  { %5560 = vmatpush1.bf16.msra.mxu1 %v8848_v55  ;;  %v2391_v27 = vmax.f32 %v2359_v9, 0.0  ;;  %4756 = vmatprep.mubr.msk.f32.mxu0 %vm2639_vm4, %v2569_v41  ;;  %v2566_v57 = vsel %vm2563_vm5, %v2564_v24, %v2565_v23  ;;  %v7768_v19 = vsel %vm3087_vm6, %v3091_v29, %v3092_v28  ;;  %v2570_v45 = vrot.slane %v7744_v43, 1 }
 0x230   :  { %5561 = vmatprep.subr.bf16.mxu1 %v8846_v47  ;;  %v2392_v32 = vmax.f32 %v2360_v14, 0.0  ;;  %v1997_v51 = vpop.f32.mrb[8].mxu0  ;;  %v2242_v53 = vpop.f32.mrb[14].mxu1  ;;  %2721 = vmatmul.mubr.f32.vlgmr.msra.gmra.mrb[38].mxu0 %v2566_v57  ;;  %v7775_v36 = vsel %vm3087_vm6, %v3088_v34, %v3089_v39  ;;  %v8849_v23 = vmax.f32 %v7659_v35, 0.0  ;;  %v2573_v62 = vrot.slane %v7753_v20, 1 }
 0x231   :  { %4765 = vmatprep.mubr.msk.f32.mxu1 %vm2639_vm4, %v7753_v20  ;;  %v2361_v28 = vadd.f32 %v7507_v12, %v1997_v51  ;;  %v7783_v14 = vadd.f32 %v7507_v12, %v2242_v53  ;;  %v1999_v29 = vpop.f32.mrb[9].mxu0  ;;  %v2244_v9 = vpop.f32.mrb[15].mxu1  ;;  %v8850_v41 = vpack.c.bf16 %v7423_v63, %v7418_v38  ;;  %v8851_v34 = vmax.f32 %v7667_v17, 0.0 }
 0x232   :  { %v7779_v24 = vadd.f32 %v8849_v23, %v2391_v27  ;;  %2847 = vmatmul.mubr.f32.gmra.mrb[34].mxu1 %v7744_v43  ;;  %v2362_v39 = vadd.f32 %v7524_v15, %v1999_v29  ;;  %v7796_v55 = vadd.f32 %v7524_v15, %v2244_v9  ;;  %v8852_v27 = vpack.c.bf16 %v7433_v40, %v7428_v1 }
 0x233   :  { %5530 = vmatpush1.bf16.msra.mxu0 %v8850_v41  ;;  %v7792_v35 = vadd.f32 %v8851_v34, %v2392_v32  ;;  %v3097_v57 = vrot.slane %v7753_v20, 3  ;;  %v2393_v51 = vmax.f32 %v2361_v28, 0.0  ;;  %v2887_v17 = vrot.slane %v7727_v25, 2 }
 0x234   :  { %5563 = vmatpush1.bf16.msra.mxu1 %v8852_v27  ;;  %5531 = vmatprep.subr.bf16.mxu0 %v8846_v47  ;;  %v2571_v63 = vrot.slane %v7779_v24, 1  ;;  %v2394_v32 = vmax.f32 %v2362_v39, 0.0  ;;  %v2003_v53 = vpop.f32.mrb[10].mxu0  ;;  %v2248_v23 = vpop.f32.mrb[16].mxu1  ;;  %v3094_v40 = vrot.slane %v7744_v43, 3  ;;  %v8853_v9 = vmax.f32 %v7670_v59, 0.0 }
 0x235   :  { %5564 = vmatprep.subr.bf16.mxu1 %v8846_v47  ;;  %v2574_v29 = vrot.slane %v7792_v35, 1  ;;  %v3098_v1 = vrot.slane %v7792_v35, 3  ;;  %v2363_v41 = vadd.f32 %v7507_v12, %v2003_v53  ;;  %v7816_v34 = vadd.f32 %v7507_v12, %v2248_v23  ;;  %v2005_v27 = vpop.f32.mrb[11].mxu0  ;;  %v2250_v38 = vpop.f32.mrb[17].mxu1 }
 0x236   :  { %v7812_v28 = vadd.f32 %v8853_v9, %v2393_v51  ;;  %v2572_v39 = vsel %vm2563_vm5, %v2570_v45, %v2571_v63  ;;  %v8854_v33 = vpack.c.bf16 %v7445_v4, %v7440_v3  ;;  %v8855_v58 = vmax.f32 %v7673_v56, 0.0 }
 0x237   :  { %v2364_v59 = vadd.f32 %v7524_v15, %v2005_v27  ;;  %v7828_v51 = vadd.f32 %v7524_v15, %v2250_v38  ;;  %v2575_v53 = vsel %vm2563_vm5, %v2573_v62, %v2574_v29  ;;  %v8856_v23 = vpack.c.bf16 %v7455_v6, %v7450_v5 }
 0x238   :  { %5533 = vmatpush1.bf16.msra.mxu0 %v8854_v33  ;;  %v7824_v0 = vadd.f32 %v8855_v58, %v2394_v32  ;;  %v2470_v45 = vmax.f32 %v7796_v55, 0.0  ;;  %v2395_v63 = vmax.f32 %v2363_v41, 0.0  ;;  %4757 = vmatprep.mubr.msk.f32.mxu0 %vm2639_vm4, %v2575_v53  ;;  %v7839_v4 = vsel %vm3087_vm6, %v3097_v57, %v3098_v1  ;;  %v2009_v33 = vpop.f32.mrb[12].mxu0  ;;  %v2254_v62 = vpop.f32.mrb[18].mxu1 }
 0x239   :  { %5566 = vmatpush1.bf16.msra.mxu1 %v8856_v23  ;;  %5534 = vmatprep.subr.bf16.mxu0 %v8846_v47  ;;  %v2396_v56 = vmax.f32 %v2364_v59, 0.0  ;;  %v2576_v5 = vrot.slane %v7812_v28, 1  ;;  %v8857_v6 = vrot.slane %v7705_v30, 2  ;;  %v8858_v32 = vmax.f32 %v7678_v22, 0.0  ;;  %v2011_v9 = vpop.f32.mrb[13].mxu0  ;;  %v2256_v41 = vpop.f32.mrb[19].mxu1 }
 0x23a   :  { %2726 = vmatmul.mubr.f32.gmra.mrb[40].mxu0 %v2572_v39  ;;  %4766 = vmatprep.mubr.msk.f32.mxu1 %vm2639_vm4, %v7824_v0  ;;  %v2365_v29 = vadd.f32 %v7507_v12, %v2009_v33  ;;  %v7856_v1 = vadd.f32 %v7507_v12, %v2254_v62  ;;  %v8859_v27 = vpack.c.bf16 %v7465_v42, %v7460_v7  ;;  %v8860_v39 = vmax.f32 %v7684_v21, 0.0 }
 0x23b   :  { %v7848_v38 = vsel %vm2882_vm7, %v8857_v6, %v2887_v17  ;;  %v7852_v57 = vadd.f32 %v8858_v32, %v2395_v63  ;;  %2852 = vmatmul.mubr.f32.gmra.mrb[36].mxu1 %v7812_v28  ;;  %v3095_v17 = vrot.slane %v7779_v24, 3  ;;  %v2366_v59 = vadd.f32 %v7524_v15, %v2011_v9  ;;  %5567 = vmatprep.subr.bf16.mxu1 %v8846_v47 }
 0x23c   :  { %5536 = vmatpush1.bf16.msra.mxu0 %v8859_v27  ;;  %v7865_v22 = vadd.f32 %v8860_v39, %v2396_v56  ;;  %v7869_v53 = vadd.f32 %v7524_v15, %v2256_v41  ;;  %v2579_v23 = vrot.slane %v7824_v0, 1  ;;  %v2397_v63 = vmax.f32 %v2365_v29, 0.0  ;;  %v2015_v6 = vpop.f32.mrb[14].mxu0  ;;  %v2260_v32 = vpop.f32.mrb[20].mxu1 }
 0x23d   :  { %5537 = vmatprep.subr.bf16.mxu0 %v8846_v47  ;;  %v2577_v7 = vrot.slane %v7852_v57, 1  ;;  %v8861_v42 = vpack.c.bf16 %v7475_v44, %v7470_v8  ;;  %v7879_v21 = vsel %vm3087_vm6, %v3094_v40, %v3095_v17  ;;  %v3103_v56 = vrot.slane %v7824_v0, 3  ;;  %v2017_v27 = vpop.f32.mrb[15].mxu0  ;;  %v2262_v17 = vpop.f32.mrb[21].mxu1 }
 0x23e   :  { %v2398_v62 = vmax.f32 %v2366_v59, 0.0  ;;  %v2580_v9 = vrot.slane %v7865_v22, 1  ;;  %v3104_v29 = vrot.slane %v7865_v22, 3  ;;  %v8862_v41 = vmax.f32 %v7689_v60, 0.0 }
 0x23f   :  { %5569 = vmatpush1.bf16.msra.mxu1 %v8861_v42  ;;  %v2367_v44 = vadd.f32 %v7507_v12, %v2015_v6  ;;  %v7892_v40 = vadd.f32 %v7507_v12, %v2260_v32  ;;  %v2578_v39 = vsel %vm2563_vm5, %v2576_v5, %v2577_v7  ;;  %v8863_v59 = vpack.c.bf16 %v7485_v48, %v7480_v46 }
 0x240   :  { %5570 = vmatprep.subr.bf16.mxu1 %v8846_v47  ;;  %v7888_v8 = vadd.f32 %v8862_v41, %v2397_v63  ;;  %v8864_v42 = vmax.f32 %v7692_v37, 0.0  ;;  %v2368_v60 = vadd.f32 %v7524_v15, %v2017_v27  ;;  %v7904_v63 = vadd.f32 %v7524_v15, %v2262_v17 }
 0x241   :  { %5539 = vmatpush1.bf16.msra.mxu0 %v8863_v59  ;;  %v2581_v6 = vsel %vm2563_vm5, %v2579_v23, %v2580_v9  ;;  %v2399_v5 = vmax.f32 %v2367_v44, 0.0  ;;  %v8865_v46 = vpack.c.bf16 %v7495_v52, %v7490_v50  ;;  %v7915_v48 = vsel %vm3087_vm6, %v3103_v56, %v3104_v29  ;;  %v2021_v23 = vpop.f32.mrb[16].mxu0  ;;  %v2266_v9 = vpop.f32.mrb[22].mxu1 }
 0x242   :  { %v7900_v33 = vadd.f32 %v8864_v42, %v2398_v62  ;;  %5540 = vmatprep.subr.bf16.mxu0 %v8846_v47  ;;  %4758 = vmatprep.mubr.msk.f32.mxu0 %vm2639_vm4, %v2581_v6  ;;  %v2400_v37 = vmax.f32 %v2368_v60, 0.0  ;;  %v2582_v44 = vrot.slane %v7888_v8, 1  ;;  %v8866_v27 = vmax.f32 %v7702_v2, 0.0  ;;  %v2023_v29 = vpop.f32.mrb[17].mxu0  ;;  %v2268_v17 = vpop.f32.mrb[23].mxu1 }
 0x243   :  { %5572 = vmatpush1.bf16.msra.mxu1 %v8865_v46  ;;  %2731 = vmatmul.mubr.f32.gmra.mrb[42].mxu0 %v2578_v39  ;;  %v2369_v52 = vadd.f32 %v7507_v12, %v2021_v23  ;;  %v7928_v56 = vadd.f32 %v7507_v12, %v2266_v9  ;;  %v8867_v39 = vpack.c.bf16 %v7505_v11, %v7500_v54  ;;  %v2892_v59 = vrot.slane %v7753_v20, 2  ;;  %v8871_v9 = vld [vmem:[#allocation10_spill] sm:$0xff]  ;;  %v8872_v54 = vld [vmem:[#allocation9_spill] sm:$0xff] }
 0x244   :  { %4767 = vmatprep.mubr.msk.f32.mxu1 %vm2639_vm4, %v7900_v33  ;;  %v2585_v41 = vrot.slane %v7900_v33, 1  ;;  %v7924_v50 = vadd.f32 %v8866_v27, %v2399_v5  ;;  %v8868_v42 = vmax.f32 %v7709_v16, 0.0  ;;  %v2370_v60 = vadd.f32 %v7524_v15, %v2023_v29  ;;  %5573 = vmatprep.subr.bf16.mxu1 %v8846_v47  ;;  %v2027_v27 = vpop.f32.mrb[18].mxu0  ;;  %v2272_v29 = vpop.f32.mrb[24].mxu1 }
 0x245   :  { %2857 = vmatmul.mubr.f32.gmra.mrb[38].mxu1 %v7888_v8  ;;  %5542 = vmatpush1.bf16.msra.mxu0 %v8867_v39  ;;  %v7941_v6 = vadd.f32 %v7524_v15, %v2268_v17  ;;  %v2893_v5 = vrot.slane %v7792_v35, 2  ;;  %v2401_v46 = vmax.f32 %v2369_v52, 0.0  ;;  %v8869_v16 = vpack.c.bf16 %v7517_v13, %v7512_v10 }
 0x246   :  { %v7937_v2 = vadd.f32 %v8868_v42, %v2400_v37  ;;  %5543 = vmatprep.subr.bf16.mxu0 %v8846_v47  ;;  %v2583_v11 = vrot.slane %v7924_v50, 1  ;;  %v2402_v23 = vmax.f32 %v2370_v60, 0.0  ;;  %v8870_v39 = vmax.f32 %v7723_v31, 0.0  ;;  %v2029_v60 = vpop.f32.mrb[19].mxu0 }
 0x247   :  { %5575 = vmatpush1.bf16.msra.mxu1 %v8869_v16  ;;  %v7956_v52 = vsel %vm2882_vm7, %v2892_v59, %v2893_v5  ;;  %v2371_v10 = vadd.f32 %v7507_v12, %v2027_v27  ;;  %v7964_v13 = vadd.f32 %v7507_v12, %v2272_v29  ;;  %v2274_v16 = vpop.f32.mrb[25].mxu1  ;;  %v8873_v62 = vpack.c.bf16 %v8871_v9, %v8872_v54  ;;  %v8875_v54 = vld [vmem:[#allocation12_spill] sm:$0xff] }
 0x248   :  { %v2586_v17 = vrot.slane %v7937_v2, 1  ;;  %5576 = vmatprep.subr.bf16.mxu1 %v8846_v47  ;;  %v7960_v42 = vadd.f32 %v8870_v39, %v2401_v46  ;;  %v2584_v37 = vsel %vm2563_vm5, %v2582_v44, %v2583_v11  ;;  %v8874_v59 = vmax.f32 %v7731_v26, 0.0  ;;  %v8876_v26 = vld [vmem:[#allocation11_spill] sm:$0xff] }
 0x249   :  { %5545 = vmatpush1.bf16.msra.mxu0 %v8873_v62  ;;  %v2372_v31 = vadd.f32 %v7524_v15, %v2029_v60  ;;  %v7976_v46 = vadd.f32 %v7524_v15, %v2274_v16  ;;  %v2403_v29 = vmax.f32 %v2371_v10, 0.0  ;;  %v8877_v11 = vpack.c.bf16 %v8875_v54, %v8876_v26  ;;  %v2033_v60 = vpop.f32.mrb[20].mxu0  ;;  %v8880_v54 = vld [vmem:[#allocation13_spill] sm:$0xff] }
 0x24a   :  { %v7972_v5 = vadd.f32 %v8874_v59, %v2402_v23  ;;  %v2587_v27 = vsel %vm2563_vm5, %v2585_v41, %v2586_v17  ;;  %5546 = vmatprep.subr.bf16.mxu0 %v8846_v47  ;;  %v2588_v62 = vrot.slane %v7960_v42, 1  ;;  %v3100_v23 = vrot.slane %v7812_v28, 3 }
 0x24b   :  { %4759 = vmatprep.mubr.msk.f32.mxu0 %vm2639_vm4, %v2587_v27  ;;  %5578 = vmatpush1.bf16.msra.mxu1 %v8877_v11  ;;  %v2404_v9 = vmax.f32 %v2372_v31, 0.0  ;;  %v3101_v17 = vrot.slane %v7852_v57, 3  ;;  %v8878_v10 = vmax.f32 %v7749_v49, 0.0  ;;  %v2373_v59 = vadd.f32 %v7507_v12, %v2033_v60  ;;  %v2035_v27 = vpop.f32.mrb[21].mxu0  ;;  %v8879_v31 = vld [vmem:[#allocation14_spill] sm:$0xff] }
 0x24c   :  { %2736 = vmatmul.mubr.f32.gmra.mrb[44].mxu0 %v2584_v37  ;;  %4768 = vmatprep.mubr.msk.f32.mxu1 %vm2639_vm4, %v7972_v5  ;;  %v2591_v41 = vrot.slane %v7972_v5, 1  ;;  %v8881_v26 = vpack.c.bf16 %v8879_v31, %v8880_v54  ;;  %v3109_v37 = vrot.slane %v7900_v33, 3  ;;  %v3110_v11 = vrot.slane %v7937_v2, 3  ;;  %v8883_v54 = vld [vmem:[#allocation16_spill] sm:$0xff] }
 0x24d   :  { %v7994_v16 = vadd.f32 %v8878_v10, %v2403_v29  ;;  %2862 = vmatmul.mubr.f32.gmra.mrb[40].mxu1 %v7960_v42  ;;  %v8882_v39 = vmax.f32 %v7757_v18, 0.0  ;;  %v2374_v49 = vadd.f32 %v7524_v15, %v2035_v27  ;;  %5579 = vmatprep.subr.bf16.mxu1 %v8846_v47  ;;  %v8011_v29 = vsel %vm3087_vm6, %v3100_v23, %v3101_v17  ;;  %v2039_v27 = vpop.f32.mrb[22].mxu0 }
 0x24e   :  { %5548 = vmatpush1.bf16.msra.mxu0 %v8881_v26  ;;  %v2889_v60 = vrot.slane %v7744_v43, 2  ;;  %v2405_v10 = vmax.f32 %v2373_v59, 0.0  ;;  %v8884_v26 = vld [vmem:[#allocation15_spill] sm:$0xff]  ;;  %v8019_v18 = vsel %vm3087_vm6, %v3109_v37, %v3110_v11  ;;  %v2898_v23 = vrot.slane %v7824_v0, 2  ;;  %v2041_v37 = vpop.f32.mrb[23].mxu0 }
 0x24f   :  { %v8005_v44 = vadd.f32 %v8882_v39, %v2404_v9  ;;  %5549 = vmatprep.subr.bf16.mxu0 %v8846_v47  ;;  %v2589_v31 = vrot.slane %v7994_v16, 1  ;;  %v8885_v7 = vpack.c.bf16 %v8883_v54, %v8884_v26  ;;  %8886 = vst [vmem:[#allocation10_spill] sm:$0xff] %v8019_v18  ;;  %v2890_v9 = vrot.slane %v7779_v24, 2  ;;  %v8888_v54 = vld [vmem:[#allocation18_spill] sm:$0xff] }
 0x250   :  { %v2406_v39 = vmax.f32 %v2374_v49, 0.0  ;;  %v2899_v17 = vrot.slane %v7865_v22, 2  ;;  %v8887_v59 = vmax.f32 %v7783_v14, 0.0  ;;  %v8889_v49 = vld [vmem:[#allocation17_spill] sm:$0xff]  ;;  %v2376_v14 = vadd.f32 %v7524_v15, %v2041_v37  ;;  %v8893_v37 = vld [vmem:[#allocation20_spill] sm:$0xff] }
 0x251   :  { %5581 = vmatpush1.bf16.msra.mxu1 %v8885_v7  ;;  %v2592_v32 = vrot.slane %v8005_v44, 1  ;;  %v2375_v7 = vadd.f32 %v7507_v12, %v2039_v27  ;;  %v2590_v11 = vsel %vm2563_vm5, %v2588_v62, %v2589_v31  ;;  %v8890_v26 = vpack.c.bf16 %v8888_v54, %v8889_v49 }
 0x252   :  { %5609 = vmatprep.subr.bf16.mxu1 %v8846_v47  ;;  %v8028_v58 = vadd.f32 %v8887_v59, %v2405_v10  ;;  %v8036_v3 = vsel %vm2882_vm7, %v2889_v60, %v2890_v9  ;;  %v8040_v18 = vadd.f32 %v2470_v45, %v2406_v39  ;;  %v8046_v27 = vsel %vm2882_vm7, %v2898_v23, %v2899_v17  ;;  %v2045_v9 = vpop.f32.mrb[24].mxu0 }
 0x253   :  { %5551 = vmatpush1.bf16.msra.mxu0 %v8890_v26  ;;  %v2593_v10 = vsel %vm2563_vm5, %v2591_v41, %v2592_v32  ;;  %8891 = vst [vmem:[#allocation9_spill] sm:$0xff] %v8046_v27  ;;  %v2407_v62 = vmax.f32 %v2375_v7, 0.0  ;;  %v3106_v60 = vrot.slane %v7888_v8, 3  ;;  %v3107_v55 = vrot.slane %v7924_v50, 3  ;;  %v2047_v7 = vpop.f32.mrb[25].mxu0 }
 0x254   :  { %5552 = vmatprep.subr.bf16.mxu0 %v8846_v47  ;;  %4760 = vmatprep.mubr.msk.f32.mxu0 %vm2639_vm4, %v2593_v10  ;;  %v2594_v31 = vrot.slane %v8028_v58, 1  ;;  %v2408_v45 = vmax.f32 %v2376_v14, 0.0  ;;  %v2597_v32 = vrot.slane %v8040_v18, 1  ;;  %v3115_v41 = vrot.slane %v7972_v5, 3 }
 0x255   :  { %2741 = vmatmul.mubr.f32.gmra.mrb[46].mxu0 %v2590_v11  ;;  %4769 = vmatprep.mubr.msk.f32.mxu1 %vm2639_vm4, %v8040_v18  ;;  %v3116_v39 = vrot.slane %v8005_v44, 3  ;;  %v8892_v23 = vmax.f32 %v7816_v34, 0.0  ;;  %v2377_v59 = vadd.f32 %v7507_v12, %v2045_v9  ;;  %v8894_v11 = vld [vmem:[#allocation19_spill] sm:$0xff]  ;;  %v8067_v49 = vsel %vm3087_vm6, %v3106_v60, %v3107_v55 }
 0x256   :  { %2867 = vmatmul.mubr.f32.gmra.mrb[42].mxu1 %v8028_v58  ;;  %v8895_v54 = vpack.c.bf16 %v8893_v37, %v8894_v11  ;;  %8896 = vst [vmem:[#allocation12_spill] sm:$0xff] %v8067_v49  ;;  %v2895_v26 = vrot.slane %v7812_v28, 2  ;;  %v8897_v14 = vmax.f32 %v7828_v51, 0.0  ;;  %v2378_v34 = vadd.f32 %v7524_v15, %v2047_v7  ;;  %v2051_v51 = vpop.f32.mrb[26].mxu0 }
 0x257   :  { %v8059_v17 = vadd.f32 %v8892_v23, %v2407_v62  ;;  %v8077_v62 = vsel %vm3087_vm6, %v3115_v41, %v3116_v39  ;;  %v2896_v9 = vrot.slane %v7852_v57, 2  ;;  %v2409_v23 = vmax.f32 %v2377_v59, 0.0 }
 0x258   :  { %5554 = vmatpush1.bf16.msra.mxu0 %v8895_v54  ;;  %v8072_v10 = vadd.f32 %v8897_v14, %v2408_v45  ;;  %8898 = vst [vmem:[#allocation11_spill] sm:$0xff] %v8077_v62  ;;  %v2904_v60 = vrot.slane %v7900_v33, 2  ;;  %v2905_v55 = vrot.slane %v7937_v2, 2  ;;  %v2410_v11 = vmax.f32 %v2378_v34, 0.0  ;;  %v2053_v14 = vpop.f32.mrb[27].mxu0 }
 0x259   :  { %5582 = vmatprep.subr.bf16.mxu0 %v8846_v47  ;;  %v2595_v37 = vrot.slane %v8059_v17, 1  ;;  %v8085_v7 = vsel %vm2882_vm7, %v2895_v26, %v2896_v9  ;;  %v3112_v54 = vrot.slane %v7960_v42, 3  ;;  %v8899_v41 = vmax.f32 %v7856_v1, 0.0 }
 0x25a   :  { %v2598_v45 = vrot.slane %v8072_v10, 1  ;;  %v2379_v59 = vadd.f32 %v7507_v12, %v2051_v51  ;;  %v8095_v49 = vsel %vm2882_vm7, %v2904_v60, %v2905_v55  ;;  %v8901_v34 = vmax.f32 %v7869_v53, 0.0  ;;  %v2057_v55 = vpop.f32.mrb[28].mxu0 }
 0x25b   :  { %v8090_v39 = vadd.f32 %v8899_v41, %v2409_v23  ;;  %v2596_v62 = vsel %vm2563_vm5, %v2594_v31, %v2595_v37  ;;  %8900 = vst [vmem:[#allocation14_spill] sm:$0xff] %v8095_v49  ;;  %v2380_v26 = vadd.f32 %v7524_v15, %v2053_v14  ;;  %v3113_v1 = vrot.slane %v7994_v16, 3  ;;  %v2059_v14 = vpop.f32.mrb[29].mxu0 }
 0x25c   :  { %v8099_v27 = vadd.f32 %v8901_v34, %v2410_v11  ;;  %v2599_v9 = vsel %vm2563_vm5, %v2597_v32, %v2598_v45  ;;  %v2411_v23 = vmax.f32 %v2379_v59, 0.0  ;;  %v3121_v31 = vrot.slane %v8040_v18, 3 }
 0x25d   :  { %4761 = vmatprep.mubr.msk.f32.mxu0 %vm2639_vm4, %v2599_v9  ;;  %v2600_v51 = vrot.slane %v8090_v39, 1  ;;  %v3122_v37 = vrot.slane %v8072_v10, 3  ;;  %v2412_v60 = vmax.f32 %v2380_v26, 0.0  ;;  %v8112_v32 = vsel %vm3087_vm6, %v3112_v54, %v3113_v1 }
 0x25e   :  { %2746 = vmatmul.mubr.f32.gmra.mrb[48].mxu0 %v2596_v62  ;;  %4770 = vmatprep.mubr.msk.f32.mxu1 %vm2639_vm4, %v8099_v27  ;;  %v2603_v53 = vrot.slane %v8099_v27, 1  ;;  %8902 = vst [vmem:[#allocation13_spill] sm:$0xff] %v8112_v32  ;;  %v2901_v11 = vrot.slane %v7888_v8, 2  ;;  %v8903_v45 = vmax.f32 %v7892_v40, 0.0  ;;  %v2381_v59 = vadd.f32 %v7507_v12, %v2057_v55 }
 0x25f   :  { %2872 = vmatmul.mubr.f32.gmra.mrb[44].mxu1 %v8090_v39  ;;  %v8122_v62 = vsel %vm3087_vm6, %v3121_v31, %v3122_v37  ;;  %v2902_v34 = vrot.slane %v7924_v50, 2  ;;  %v8905_v26 = vmax.f32 %v7904_v63, 0.0  ;;  %v2382_v9 = vadd.f32 %v7524_v15, %v2059_v14 }
 0x260   :  { %v8117_v41 = vadd.f32 %v8903_v45, %v2411_v23  ;;  %8904 = vst [vmem:[#allocation16_spill] sm:$0xff] %v8122_v62  ;;  %v2910_v40 = vrot.slane %v7972_v5, 2  ;;  %v2911_v1 = vrot.slane %v8005_v44, 2  ;;  %v2413_v23 = vmax.f32 %v2381_v59, 0.0  ;;  %v2063_v62 = vpop.f32.mrb[30].mxu0 }
 0x261   :  { %v8127_v54 = vadd.f32 %v8905_v26, %v2412_v60  ;;  %v8134_v45 = vsel %vm2882_vm7, %v2901_v11, %v2902_v34  ;;  %v3118_v31 = vrot.slane %v8028_v58, 3  ;;  %v2414_v37 = vmax.f32 %v2382_v9, 0.0  ;;  %v2065_v49 = vpop.f32.mrb[31].mxu0 }
 0x262   :  { %v2601_v55 = vrot.slane %v8117_v41, 1  ;;  %8906 = vst [vmem:[#allocation15_spill] sm:$0xff] %v8134_v45  ;;  %v8139_v60 = vsel %vm2882_vm7, %v2910_v40, %v2911_v1  ;;  %v3119_v14 = vrot.slane %v8059_v17, 3  ;;  %v8908_v26 = vmax.f32 %v7928_v56, 0.0 }
 0x263   :  { %v2604_v63 = vrot.slane %v8127_v54, 1  ;;  %8907 = vst [vmem:[#allocation18_spill] sm:$0xff] %v8139_v60  ;;  %v2383_v59 = vadd.f32 %v7507_v12, %v2063_v62  ;;  %v3127_v34 = vrot.slane %v8099_v27, 3  ;;  %v8909_v9 = vmax.f32 %v7941_v6, 0.0 }
 0x264   :  { %v8144_v32 = vadd.f32 %v8908_v26, %v2413_v23  ;;  %v2602_v11 = vsel %vm2563_vm5, %v2600_v51, %v2601_v55  ;;  %v2384_v40 = vadd.f32 %v7524_v15, %v2065_v49  ;;  %v8156_v60 = vsel %vm3087_vm6, %v3118_v31, %v3119_v14 }
 0x265   :  { %v8151_v45 = vadd.f32 %v8909_v9, %v2414_v37  ;;  %v2605_v1 = vsel %vm2563_vm5, %v2603_v53, %v2604_v63  ;;  %v2415_v56 = vmax.f32 %v2383_v59, 0.0  ;;  %v3128_v51 = vrot.slane %v8127_v54, 3 }
 0x266   :  { %4762 = vmatprep.mubr.msk.f32.mxu0 %vm2639_vm4, %v2605_v1  ;;  %v2606_v12 = vrot.slane %v8144_v32, 1  ;;  %v2907_v62 = vrot.slane %v7960_v42, 2  ;;  %v2416_v23 = vmax.f32 %v2384_v40, 0.0  ;;  %v2908_v6 = vrot.slane %v7994_v16, 2 }
 0x267   :  { %2751 = vmatmul.mubr.f32.gmra.mrb[50].mxu0 %v2602_v11  ;;  %4771 = vmatprep.mubr.msk.f32.mxu1 %vm2639_vm4, %v8151_v45  ;;  %v2609_v15 = vrot.slane %v8151_v45, 1  ;;  %v2916_v49 = vrot.slane %v8040_v18, 2  ;;  %v8910_v53 = vmax.f32 %v7964_v13, 0.0  ;;  %v8173_v31 = vsel %vm3087_vm6, %v3127_v34, %v3128_v51 }
 0x268   :  { %2877 = vmatmul.mubr.f32.gmra.mrb[46].mxu1 %v8144_v32  ;;  %v2917_v37 = vrot.slane %v8072_v10, 2  ;;  %v3124_v63 = vrot.slane %v8090_v39, 3  ;;  %v8911_v14 = vmax.f32 %v7976_v46, 0.0  ;;  %v8184_v13 = vsel %vm2882_vm7, %v2907_v62, %v2908_v6 }
 0x269   :  { %v8169_v55 = vadd.f32 %v8910_v53, %v2415_v56  ;;  %4816 = vmatprep.mubr.msk.f32.mxu1 %vm2639_vm4, %v7768_v19  ;;  %v3125_v59 = vrot.slane %v8117_v41, 3  ;;  %v3133_v11 = vrot.slane %v8151_v45, 3  ;;  %v2913_v40 = vrot.slane %v8028_v58, 2 }
 0x26a   :  { %v8179_v26 = vadd.f32 %v8911_v14, %v2416_v23  ;;  %v8190_v9 = vsel %vm2882_vm7, %v2916_v49, %v2917_v37  ;;  %v2914_v46 = vrot.slane %v8059_v17, 2  ;;  %v2922_v51 = vrot.slane %v8099_v27, 2 }
 0x26b   :  { %v2607_v34 = vrot.slane %v8169_v55, 1  ;;  %v8196_v19 = vsel %vm3087_vm6, %v3124_v63, %v3125_v59  ;;  %v2923_v6 = vrot.slane %v8127_v54, 2  ;;  %v3130_v49 = vrot.slane %v8144_v32, 3 }
 0x26c   :  { %v2610_v1 = vrot.slane %v8179_v26, 1  ;;  %v3134_v56 = vrot.slane %v8179_v26, 3  ;;  %3244 = vmatmul.mubr.f32.vlgmr.msra.gmra.mrb[48].mxu1 %v7775_v36  ;;  %v8203_v23 = vsel %vm2882_vm7, %v2913_v40, %v2914_v46  ;;  %v3131_v63 = vrot.slane %v8169_v55, 3 }
 0x26d   :  { %v2608_v62 = vsel %vm2563_vm5, %v2606_v12, %v2607_v34  ;;  %4817 = vmatprep.mubr.msk.f32.mxu1 %vm2639_vm4, %v7839_v4  ;;  %v2919_v36 = vrot.slane %v8090_v39, 2  ;;  %v8219_v12 = vld [vmem:[%s8795_s3 + $0x260] sm:$0xff]  ;;  %v8224_v4 = vld [vmem:[%s8795_s3 + $0x268] sm:$0xff]  ;;  %v2920_v14 = vrot.slane %v8117_v41, 2  ;;  %v2928_v59 = vrot.slane %v8151_v45, 2 }
 0x26e   :  { %v2611_v53 = vsel %vm2563_vm5, %v2609_v15, %v2610_v1  ;;  %v8211_v37 = vsel %vm3087_vm6, %v3133_v11, %v3134_v56  ;;  %v8227_v15 = vsel %vm2882_vm7, %v2922_v51, %v2923_v6  ;;  %v2929_v11 = vrot.slane %v8179_v26, 2  ;;  %v8912_v34 = vld [vmem:[#allocation25_spill] sm:$0xff] }
 0x26f   :  { %4763 = vmatprep.mubr.msk.f32.mxu0 %vm2639_vm4, %v2611_v53  ;;  %v2883_v40 = vrot.slane %v8912_v34, 2  ;;  %v8234_v46 = vsel %vm3087_vm6, %v3130_v49, %v3131_v63  ;;  %v2925_v1 = vrot.slane %v8144_v32, 2  ;;  %v2926_v56 = vrot.slane %v8169_v55, 2 }
 0x270   :  { %2756 = vmatmul.mubr.f32.gmra.mrb[52].mxu0 %v2608_v62  ;;  %3249 = vmatmul.mubr.f32.gmra.mrb[50].mxu1 %v7879_v21  ;;  %v8242_v51 = vsel %vm2882_vm7, %v2919_v36, %v2920_v14  ;;  %v8245_v6 = vsel %vm2882_vm7, %v2928_v59, %v2929_v11  ;;  %v3295_v62 = vrot.slane %v7705_v30, 4  ;;  %v3296_v49 = vrot.slane %v7727_v25, 4  ;;  %v8914_v59 = vld [vmem:[#allocation22_spill] sm:$0xff]  ;;  %v8915_v11 = vld [vmem:[#allocation21_spill] sm:$0xff] }
 0x271   :  { %4790 = vmatprep.mubr.msk.f32.mxu0 %vm2639_vm4, %v7848_v38  ;;  %4818 = vmatprep.mubr.msk.f32.mxu1 %vm2639_vm4, %v7915_v48  ;;  %v5589_v53 = vpack.c.bf16 %v8224_v4, %v8219_v12  ;;  %v8254_v38 = vsel %vm2882_vm7, %v2925_v1, %v2926_v56  ;;  %v3301_v21 = vrot.slane %v7753_v20, 4  ;;  %v3302_v63 = vrot.slane %v7792_v35, 4 }
 0x272   :  { %v8913_v36 = vrot.slane %v7719_v61, 2  ;;  %v8262_v30 = vsel %vm193_vm0, %v3295_v62, %v3296_v49  ;;  %v3298_v25 = vrot.slane %v7744_v43, 4  ;;  %v3299_v48 = vrot.slane %v7779_v24, 4  ;;  %v8917_v62 = vld [vmem:[#allocation10_spill] sm:$0xff] }
 0x273   :  { %v8267_v12 = vsel %vm193_vm0, %v3301_v21, %v3302_v63  ;;  %v3307_v4 = vrot.slane %v7824_v0, 4  ;;  %v3308_v20 = vrot.slane %v7865_v22, 4  ;;  %v3304_v35 = vrot.slane %v7812_v28, 4  ;;  %v8918_v21 = vld [vmem:[#allocation24_spill] sm:$0xff]  ;;  %v8919_v63 = vld [vmem:[#allocation23_spill] sm:$0xff] }
 0x274   :  { %v2885_v14 = vsel %vm2882_vm7, %v2883_v40, %v8913_v36  ;;  %v8916_v40 = vpack.c.bf16 %v8914_v59, %v8915_v11  ;;  %v8278_v43 = vsel %vm193_vm0, %v3298_v25, %v3299_v48  ;;  %v3305_v24 = vrot.slane %v7852_v57, 4  ;;  %3254 = vmatmul.mubr.f32.gmra.mrb[52].mxu1 %v8011_v29  ;;  %v8922_v25 = vld [vmem:[#allocation12_spill] sm:$0xff] }
 0x275   :  { %3039 = vmatmul.mubr.f32.vlgmr.msra.gmra.mrb[54].mxu0 %v2885_v14  ;;  %v3313_v1 = vrot.slane %v7900_v33, 4  ;;  %v3314_v0 = vrot.slane %v7937_v2, 4  ;;  %v8286_v28 = vsel %vm193_vm0, %v3307_v4, %v3308_v20  ;;  %v3310_v22 = vrot.slane %v7888_v8, 4  ;;  %4819 = vmatprep.mubr.msk.f32.mxu1 %vm2639_vm4, %v8917_v62  ;;  %v8921_v14 = vld [vmem:[#allocation9_spill] sm:$0xff]  ;;  %v8923_v4 = vld [vmem:[#allocation11_spill] sm:$0xff]  ;;  %v4835_v62 = vld [vmem:[%s8795_s3 + $0x298] sm:$0xff] }
 0x276   :  { %5584 = vmatpush1.bf16.msra.mxu0 %v8916_v40  ;;  %4791 = vmatprep.mubr.msk.f32.mxu0 %vm2639_vm4, %v7956_v52  ;;  %v3311_v52 = vrot.slane %v7924_v50, 4  ;;  %v3319_v56 = vrot.slane %v7972_v5, 4  ;;  %v8294_v57 = vsel %vm193_vm0, %v3304_v35, %v3305_v24  ;;  %v3320_v2 = vrot.slane %v8005_v44, 4  ;;  %v8924_v24 = vld [vmem:[#allocation14_spill] sm:$0xff] }
 0x277   :  { %5585 = vmatprep.subr.bf16.mxu0 %v8846_v47  ;;  %v8297_v33 = vsel %vm193_vm0, %v3313_v1, %v3314_v0  ;;  %v3316_v29 = vrot.slane %v7960_v42, 4  ;;  %v3317_v50 = vrot.slane %v7994_v16, 4  ;;  %v3325_v5 = vrot.slane %v8040_v18, 4  ;;  %v4830_v18 = vld [vmem:[%s8795_s3 + $0x270] sm:$0xff] }
 0x278   :  { %v8303_v8 = vsel %vm193_vm0, %v3310_v22, %v3311_v52  ;;  %v3326_v49 = vrot.slane %v8072_v10, 4  ;;  %v8920_v36 = vpack.c.bf16 %v8918_v21, %v8919_v63  ;;  %v8314_v42 = vsel %vm193_vm0, %v3319_v56, %v3320_v2  ;;  %3259 = vmatmul.mubr.f32.gmra.mrb[54].mxu1 %v8922_v25  ;;  %v4831_v10 = vld [vmem:[%s8795_s3 + $0x278] sm:$0xff]  ;;  %v8927_v0 = vld [vmem:[#allocation15_spill] sm:$0xff]  ;;  %v8928_v22 = vld [vmem:[#allocation18_spill] sm:$0xff] }
 0x279   :  { %3044 = vmatmul.mubr.f32.gmra.mrb[56].mxu0 %v8036_v3  ;;  %v3322_v3 = vrot.slane %v8028_v58, 4  ;;  %v3323_v44 = vrot.slane %v8059_v17, 4  ;;  %v3331_v16 = vrot.slane %v8099_v27, 4  ;;  %v8328_v48 = vsel %vm193_vm0, %v3316_v29, %v3317_v50  ;;  %4820 = vmatprep.mubr.msk.f32.mxu1 %vm2639_vm4, %v8923_v4  ;;  %v4834_v56 = vld [vmem:[%s8795_s3 + $0x290] sm:$0xff]  ;;  %v4836_v2 = vld [vmem:[%s8795_s3 + $0x2a0] sm:$0xff]  ;;  %v4837_v29 = vld [vmem:[%s8795_s3 + $0x2a8] sm:$0xff] }
 0x27a   :  { %5587 = vmatpush1.bf16.msra.mxu0 %v8920_v36  ;;  %4792 = vmatprep.mubr.msk.f32.mxu0 %vm2639_vm4, %v8921_v14  ;;  %v8331_v58 = vsel %vm193_vm0, %v3325_v5, %v3326_v49  ;;  %v3332_v27 = vrot.slane %v8127_v54, 4  ;;  %v3328_v17 = vrot.slane %v8090_v39, 4  ;;  %v3329_v35 = vrot.slane %v8117_v41, 4  ;;  %v3741_v50 = vld [vmem:[#allocation4 + $0x118] sm:$0xff]  ;;  %v3540_v49 = vld [vmem:[#allocation4 + $0xa0] sm:$0xff]  ;;  %v3541_v21 = vld [vmem:[#allocation4 + $0xa8] sm:$0xff] }
 0x27b   :  { %5588 = vmatprep.subr.bf16.mxu0 %v8846_v47  ;;  %v8338_v20 = vsel %vm193_vm0, %v3322_v3, %v3323_v44  ;;  %v3337_v59 = vrot.slane %v8151_v45, 4  ;;  %v3338_v11 = vrot.slane %v8179_v26, 4  ;;  %v3334_v54 = vrot.slane %v8144_v32, 4  ;;  %v8925_v26 = vld [vmem:[#allocation13_spill] sm:$0xff]  ;;  %v4833_v32 = vld [vmem:[%s8795_s3 + $0x288] sm:$0xff]  ;;  %v3542_v3 = vld [vmem:[#allocation4 + $0xb0] sm:$0xff] }
 0x27c   :  { %v8345_v40 = vsel %vm193_vm0, %v3331_v16, %v3332_v27  ;;  %v3335_v39 = vrot.slane %v8169_v55, 4  ;;  %v5592_v1 = vpack.c.bf16 %v4831_v10, %v4830_v18  ;;  %v8352_v41 = vsel %vm193_vm0, %v3328_v17, %v3329_v35  ;;  %3264 = vmatmul.mubr.f32.gmra.mrb[56].mxu1 %v8925_v26  ;;  %v3742_v63 = vld [vmem:[#allocation4 + $0x120] sm:$0xff]  ;;  %v3743_v14 = vld [vmem:[#allocation4 + $0x128] sm:$0xff]  ;;  %v3543_v44 = vld [vmem:[#allocation4 + $0xb8] sm:$0xff] }
 0x27d   :  { %3049 = vmatmul.mubr.f32.gmra.mrb[58].mxu0 %v8085_v7  ;;  %v8355_v45 = vsel %vm193_vm0, %v3337_v59, %v3338_v11  ;;  %v4832_v7 = vld [vmem:[%s8795_s3 + $0x280] sm:$0xff]  ;;  %v5616_v36 = vpack.c.bf16 %v3541_v21, %v3540_v49  ;;  %v3744_v16 = vld [vmem:[#allocation4 + $0x130] sm:$0xff]  ;;  %v5619_v25 = vpack.c.bf16 %v3543_v44, %v3542_v3  ;;  %v3745_v18 = vld [vmem:[#allocation4 + $0x138] sm:$0xff] }
 0x27e   :  { %5590 = vmatpush1.bf16.msra.mxu0 %v5589_v53  ;;  %4793 = vmatprep.mubr.msk.f32.mxu0 %vm2639_vm4, %v8924_v24  ;;  %v3336_v55 = vsel %vm193_vm0, %v3334_v54, %v3335_v39  ;;  %v8926_v53 = vld [vmem:[#allocation16_spill] sm:$0xff]  ;;  %v5595_v52 = vpack.c.bf16 %v4833_v32, %v4832_v7  ;;  %v5667_v10 = vpack.c.bf16 %v3745_v18, %v3744_v16  ;;  %v3545_v27 = vld [vmem:[#allocation4 + $0xc8] sm:$0xff]  ;;  %v3746_v17 = vld [vmem:[#allocation4 + $0x140] sm:$0xff] }
 0x27f   :  { %5591 = vmatprep.subr.bf16.mxu0 %v8846_v47  ;;  %4821 = vmatprep.mubr.msk.f32.mxu1 %vm2639_vm4, %v8926_v53  ;;  %v3747_v35 = vld [vmem:[#allocation4 + $0x148] sm:$0xff]  ;;  %v3546_v11 = vld [vmem:[#allocation4 + $0xd0] sm:$0xff]  ;;  %v3749_v24 = vld [vmem:[#allocation4 + $0x158] sm:$0xff] }
 0x280   :  { %3269 = vmatmul.mubr.f32.gmra.mrb[58].mxu1 %v8156_v60  ;;  %v5598_v60 = vpack.c.bf16 %v4835_v62, %v4834_v56  ;;  %v5670_v59 = vpack.c.bf16 %v3747_v35, %v3746_v17  ;;  %v3748_v54 = vld [vmem:[#allocation4 + $0x150] sm:$0xff]  ;;  %v3548_v32 = vld [vmem:[#allocation4 + $0xe0] sm:$0xff]  ;;  %v3551_v62 = vld [vmem:[#allocation4 + $0xf8] sm:$0xff] }
 0x281   :  { %3054 = vmatmul.mubr.f32.gmra.mrb[60].mxu0 %v8927_v0  ;;  %4822 = vmatprep.mubr.msk.f32.mxu1 %vm2639_vm4, %v8173_v31  ;;  %v5601_v31 = vpack.c.bf16 %v4837_v29, %v4836_v2  ;;  %v3750_v53 = vld [vmem:[#allocation4 + $0x160] sm:$0xff]  ;;  %v3550_v56 = vld [vmem:[#allocation4 + $0xf0] sm:$0xff] }
 0x282   :  { %5593 = vmatpush1.bf16.msra.mxu0 %v5592_v1  ;;  %4794 = vmatprep.mubr.msk.f32.mxu0 %vm2639_vm4, %v8928_v22  ;;  %v5673_v1 = vpack.c.bf16 %v3749_v24, %v3748_v54  ;;  %v3752_v29 = vld [vmem:[#allocation4 + $0x170] sm:$0xff] }
 0x283   :  { %5594 = vmatprep.subr.bf16.mxu0 %v8846_v47 }
 0x284   :  { %3274 = vmatmul.mubr.f32.gmra.mrb[60].mxu1 %v8196_v19 }
 0x285   :  { %3059 = vmatmul.mubr.f32.gmra.mrb[62].mxu0 %v8184_v13  ;;  %4823 = vmatprep.mubr.msk.f32.mxu1 %vm2639_vm4, %v8211_v37  ;;  %v4838_v13 = vld [vmem:[%s8795_s3 + $0x2b0] sm:$0xff]  ;;  %v4841_v37 = vld [vmem:[%s8795_s3 + $0x2c8] sm:$0xff] }
 0x286   :  { %5596 = vmatpush1.bf16.msra.mxu0 %v5595_v52  ;;  %4795 = vmatprep.mubr.msk.f32.mxu0 %vm2639_vm4, %v8190_v9  ;;  %v4839_v9 = vld [vmem:[%s8795_s3 + $0x2b8] sm:$0xff]  ;;  %v3751_v52 = vld [vmem:[#allocation4 + $0x168] sm:$0xff] }
 0x287   :  { %5597 = vmatprep.subr.bf16.mxu0 %v8846_v47  ;;  %v5604_v19 = vpack.c.bf16 %v4839_v9, %v4838_v13  ;;  %v5676_v2 = vpack.c.bf16 %v3751_v52, %v3750_v53  ;;  %v5631_v13 = vpack.c.bf16 %v3551_v62, %v3550_v56 }
 0x288   :  { %3279 = vmatmul.mubr.f32.gmra.mrb[62].mxu1 %v8234_v46  ;;  %v3293_v46 = vrot.slane %v7719_v61, 4  ;;  %v3536_v61 = vld [vmem:[#allocation4 + $0x80] sm:$0xff] }
 0x289   :  { %3064 = vmatmul.mubr.f32.gmra.mrb[64].mxu0 %v8203_v23  ;;  %v4840_v23 = vld [vmem:[%s8795_s3 + $0x2c0] sm:$0xff] }
 0x28a   :  { %5599 = vmatpush1.bf16.msra.mxu0 %v5598_v60  ;;  %4796 = vmatprep.mubr.msk.f32.mxu0 %vm2639_vm4, %v8227_v15  ;;  %v5607_v15 = vpack.c.bf16 %v4841_v37, %v4840_v23  ;;  %v8929_v60 = vmov 0.0  }
 0x28b   :  { %5600 = vmatprep.subr.bf16.mxu0 %v8846_v47  ;;  %5056 = vmatprep.mubr.msk.f32.mxu1 %vm6200_vm8, %v8929_v60 }
 0x28d   :  { %3069 = vmatmul.mubr.f32.gmra.mrb[66].mxu0 %v8242_v51  ;;  %v3292_v51 = vrot.slane %v8912_v34, 4  ;;  %v3537_v34 = vld [vmem:[#allocation4 + $0x88] sm:$0xff] }
 0x28e   :  { %5602 = vmatpush1.bf16.msra.mxu0 %v5601_v31  ;;  %4797 = vmatprep.mubr.msk.f32.mxu0 %vm2639_vm4, %v8245_v6  ;;  %v3753_v31 = vld [vmem:[#allocation4 + $0x178] sm:$0xff] }
 0x28f   :  { %5603 = vmatprep.subr.bf16.mxu0 %v8846_v47  ;;  %v3294_v6 = vsel %vm193_vm0, %v3292_v51, %v3293_v46  ;;  %v5679_v9 = vpack.c.bf16 %v3753_v31, %v3752_v29 }
 0x291   :  { %3074 = vmatmul.mubr.f32.gmra.mrb[68].mxu0 %v8254_v38  ;;  %v3738_v38 = vld [vmem:[#allocation4 + $0x100] sm:$0xff] }
 0x292   :  { %5605 = vmatpush1.bf16.msra.mxu0 %v5604_v19  ;;  %4842 = vmatprep.mubr.msk.f32.mxu0 %vm2639_vm4, %v8262_v30  ;;  %v5610_v30 = vpack.c.bf16 %v3537_v34, %v3536_v61 }
 0x293   :  { %5606 = vmatprep.subr.bf16.mxu0 %v8846_v47 }
 0x294   :  { %5611 = vmatpush3.bf16.msra.mxu1 %v5610_v30 }
 0x295   :  { %5612 = vmatprep.subr.bf16.mxu1 %v8846_v47 }
 0x296   :  { %5608 = vmatpush1.bf16.msra.mxu0 %v5607_v15 }
 0x297   :  { %5657 = vmatprep.subr.bf16.mxu0 %v8846_v47 }
 0x299   :  { %3448 = vmatmul.mubr.f32.vlgmr.msra.gmra.mrb[70].mxu0 %v3294_v6 }
 0x29a   :  { %4843 = vmatprep.mubr.msk.f32.mxu0 %vm2639_vm4, %v8267_v12  ;;  %v3739_v12 = vld [vmem:[#allocation4 + $0x108] sm:$0xff] }
 0x29d   :  { %3453 = vmatmul.mubr.f32.gmra.mrb[72].mxu0 %v8278_v43  ;;  %v5658_v43 = vpack.c.bf16 %v3739_v12, %v3738_v38 }
 0x29e   :  { %4844 = vmatprep.mubr.msk.f32.mxu0 %vm2639_vm4, %v8286_v28  ;;  %v3538_v28 = vld [vmem:[#allocation4 + $0x90] sm:$0xff] }
 0x29f   :  { %5659 = vmatpush3.bf16.msra.mxu0 %v5658_v43 }
 0x2a0   :  { %5660 = vmatprep.subr.bf16.mxu0 %v8846_v47 }
 0x2a1   :  { %3458 = vmatmul.mubr.f32.gmra.mrb[74].mxu0 %v8294_v57  ;;  %v3539_v57 = vld [vmem:[#allocation4 + $0x98] sm:$0xff] }
 0x2a2   :  { %4845 = vmatprep.mubr.msk.f32.mxu0 %vm2639_vm4, %v8297_v33  ;;  %v3740_v33 = vld [vmem:[#allocation4 + $0x110] sm:$0xff] }
 0x2a3   :  { %v5661_v5 = vpack.c.bf16 %v3741_v50, %v3740_v33 }
 0x2a5   :  { %3463 = vmatmul.mubr.f32.gmra.mrb[76].mxu0 %v8303_v8  ;;  %v5613_v8 = vpack.c.bf16 %v3539_v57, %v3538_v28 }
 0x2a6   :  { %4846 = vmatprep.mubr.msk.f32.mxu0 %vm2639_vm4, %v8314_v42  ;;  %5662 = vmatpush3.bf16.msra.mxu0 %v5661_v5  ;;  %v5664_v42 = vpack.c.bf16 %v3743_v14, %v3742_v63 }
 0x2a7   :  { %5614 = vmatpush3.bf16.msra.mxu1 %v5613_v8  ;;  %5663 = vmatprep.subr.bf16.mxu0 %v8846_v47 }
 0x2a8   :  { %5615 = vmatprep.subr.bf16.mxu1 %v8846_v47 }
 0x2a9   :  { %3468 = vmatmul.mubr.f32.gmra.mrb[78].mxu0 %v8328_v48 }
 0x2aa   :  { %4847 = vmatprep.mubr.msk.f32.mxu0 %vm2639_vm4, %v8331_v58  ;;  %5665 = vmatpush3.bf16.msra.mxu0 %v5664_v42  ;;  %v3544_v58 = vld [vmem:[#allocation4 + $0xc0] sm:$0xff] }
 0x2ab   :  { %5617 = vmatpush3.bf16.msra.mxu1 %v5616_v36  ;;  %5666 = vmatprep.subr.bf16.mxu0 %v8846_v47 }
 0x2ac   :  { %5618 = vmatprep.subr.bf16.mxu1 %v8846_v47 }
 0x2ad   :  { %3473 = vmatmul.mubr.f32.gmra.mrb[80].mxu0 %v8338_v20  ;;  %v5622_v20 = vpack.c.bf16 %v3545_v27, %v3544_v58 }
 0x2ae   :  { %4848 = vmatprep.mubr.msk.f32.mxu0 %vm2639_vm4, %v8345_v40  ;;  %5668 = vmatpush3.bf16.msra.mxu0 %v5667_v10  ;;  %v3547_v40 = vld [vmem:[#allocation4 + $0xd8] sm:$0xff] }
 0x2af   :  { %5620 = vmatpush3.bf16.msra.mxu1 %v5619_v25  ;;  %5669 = vmatprep.subr.bf16.mxu0 %v8846_v47  ;;  %v5625_v39 = vpack.c.bf16 %v3547_v40, %v3546_v11 }
 0x2b0   :  { %5621 = vmatprep.subr.bf16.mxu1 %v8846_v47 }
 0x2b1   :  { %3478 = vmatmul.mubr.f32.gmra.mrb[82].mxu0 %v8352_v41 }
 0x2b2   :  { %4849 = vmatprep.mubr.msk.f32.mxu0 %vm2639_vm4, %v8355_v45  ;;  %5671 = vmatpush3.bf16.msra.mxu0 %v5670_v59 }
 0x2b3   :  { %5623 = vmatpush3.bf16.msra.mxu1 %v5622_v20  ;;  %5672 = vmatprep.subr.bf16.mxu0 %v8846_v47 }
 0x2b4   :  { %5624 = vmatprep.subr.bf16.mxu1 %v8846_v47 }
 0x2b5   :  { %3483 = vmatmul.mubr.f32.gmra.mrb[84].mxu0 %v3336_v55  ;;  %v3549_v55 = vld [vmem:[#allocation4 + $0xe8] sm:$0xff] }
 0x2b6   :  { %5674 = vmatpush3.bf16.msra.mxu0 %v5673_v1  ;;  %v5628_v22 = vpack.c.bf16 %v3549_v55, %v3548_v32  ;;  %5126 = vmatprep.mubr.msk.f32.mxu0 %vm6200_vm8, %v8929_v60 }
 0x2b7   :  { %5626 = vmatpush3.bf16.msra.mxu1 %v5625_v39  ;;  %5675 = vmatprep.subr.bf16.mxu0 %v8846_v47 }
 0x2b8   :  { %5627 = vmatprep.subr.bf16.mxu1 %v8846_v47 }
 0x2ba   :  { %5677 = vmatpush3.bf16.msra.mxu0 %v5676_v2 }
 0x2bb   :  { %5629 = vmatpush3.bf16.msra.mxu1 %v5628_v22  ;;  %5678 = vmatprep.subr.bf16.mxu0 %v8846_v47 }
 0x2bc   :  { %5630 = vmatprep.subr.bf16.mxu1 %v8846_v47 }
 0x2be   :  { %5680 = vmatpush3.bf16.msra.mxu0 %v5679_v9 }
 0x2bf   :  { %5632 = vmatpush3.bf16.msra.mxu1 %v5631_v13  ;;  %5705 = vmatprep.subr.bf16.mxu0 %v8846_v47 }
 0x2c0   :  { %5633 = vmatprep.subr.bf16.mxu1 %v8846_v47 }
 0x2fc   :  { %v2843_v48 = vpop.f32.mrb[32].mxu1 }
 0x2fd   :  { %v2845_v4 = vpop.f32.mrb[33].mxu1 }
 0x303   :  { %v2722_v41 = vpop.f32.mrb[38].mxu0 }
 0x304   :  { %v8453_v45 = vadd.f32 %v2843_v48, %v2722_v41  ;;  %v2724_v26 = vpop.f32.mrb[39].mxu0 }
 0x305   :  { %v2848_v7 = vpop.f32.mrb[34].mxu1 }
 0x306   :  { %v2850_v0 = vpop.f32.mrb[35].mxu1 }
 0x30d   :  { %v2727_v19 = vpop.f32.mrb[40].mxu0 }
 0x30e   :  { %v2849_v23 = vadd.f32 %v2848_v7, %v2727_v19  ;;  %v2729_v37 = vpop.f32.mrb[41].mxu0  ;;  %v2853_v15 = vpop.f32.mrb[36].mxu1 }
 0x30f   :  { %v2855_v46 = vpop.f32.mrb[37].mxu1 }
 0x316   :  { %v2732_v51 = vpop.f32.mrb[42].mxu0 }
 0x317   :  { %v2854_v6 = vadd.f32 %v2853_v15, %v2732_v51  ;;  %v2734_v61 = vpop.f32.mrb[43].mxu0 }
 0x318   :  { %v2858_v34 = vpop.f32.mrb[38].mxu1 }
 0x319   :  { %v2860_v38 = vpop.f32.mrb[39].mxu1 }
 0x31f   :  { %v2737_v30 = vpop.f32.mrb[44].mxu0 }
 0x320   :  { %v2859_v12 = vadd.f32 %v2858_v34, %v2737_v30  ;;  %v2739_v43 = vpop.f32.mrb[45].mxu0  ;;  %v2863_v28 = vpop.f32.mrb[40].mxu1 }
 0x321   :  { %v2865_v57 = vpop.f32.mrb[41].mxu1 }
 0x328   :  { %v2742_v33 = vpop.f32.mrb[46].mxu0 }
 0x329   :  { %v2864_v8 = vadd.f32 %v2863_v28, %v2742_v33  ;;  %v2744_v50 = vpop.f32.mrb[47].mxu0  ;;  %v2868_v5 = vpop.f32.mrb[42].mxu1 }
 0x32a   :  { %v2870_v49 = vpop.f32.mrb[43].mxu1 }
 0x331   :  { %v2747_v21 = vpop.f32.mrb[48].mxu0 }
 0x332   :  { %v2869_v63 = vadd.f32 %v2868_v5, %v2747_v21  ;;  %v2749_v36 = vpop.f32.mrb[49].mxu0  ;;  %v2873_v14 = vpop.f32.mrb[44].mxu1  ;;  %v8477_v21 = vld [vmem:[%s8796_s4] ss:$0 sm:$0xff] }
 0x333   :  { %v2875_v42 = vpop.f32.mrb[45].mxu1 }
 0x33a   :  { %v2752_v3 = vpop.f32.mrb[50].mxu0 }
 0x33b   :  { %v2874_v44 = vadd.f32 %v2873_v14, %v2752_v3  ;;  %v2754_v16 = vpop.f32.mrb[51].mxu0  ;;  %v2878_v25 = vpop.f32.mrb[46].mxu1 }
 0x33c   :  { %v2880_v18 = vpop.f32.mrb[47].mxu1 }
 0x33d   :  { %v8484_v18 = vld [vmem:[#allocation4 + $0x8] sm:$0xff] }
 0x33f   :  { %v3245_v10 = vpop.f32.mrb[48].mxu1 }
 0x340   :  { %v3247_v48 = vpop.f32.mrb[49].mxu1 }
 0x343   :  { %v2757_v58 = vpop.f32.mrb[52].mxu0  ;;  %v3250_v4 = vpop.f32.mrb[50].mxu1 }
 0x344   :  { %v2879_v27 = vadd.f32 %v2878_v25, %v2757_v58  ;;  %v2759_v17 = vpop.f32.mrb[53].mxu0  ;;  %v3252_v20 = vpop.f32.mrb[51].mxu1  ;;  %v8482_v25 = vld [vmem:[#allocation4] sm:$0xff] }
 0x345   :  { %v5634_v58 = vpack.c.bf16 %v8484_v18, %v8482_v25 }
 0x347   :  { %v3255_v40 = vpop.f32.mrb[52].mxu1 }
 0x348   :  { %v3040_v35 = vpop.f32.mrb[54].mxu0  ;;  %v3257_v54 = vpop.f32.mrb[53].mxu1 }
 0x349   :  { %v3079_v59 = vadd.f32 %v3040_v35, %v8453_v45  ;;  %v3042_v11 = vpop.f32.mrb[55].mxu0 }
 0x34b   :  { %v3284_v39 = vadd.f32 %v3245_v10, %v3079_v59  ;;  %v3260_v26 = vpop.f32.mrb[54].mxu1 }
 0x34c   :  { %v3045_v24 = vpop.f32.mrb[56].mxu0  ;;  %v3262_v7 = vpop.f32.mrb[55].mxu1 }
 0x34d   :  { %v3080_v1 = vadd.f32 %v3045_v24, %v2849_v23  ;;  %v3047_v41 = vpop.f32.mrb[57].mxu0 }
 0x34f   :  { %v3285_v32 = vadd.f32 %v3250_v4, %v3080_v1  ;;  %v3265_v22 = vpop.f32.mrb[56].mxu1 }
 0x350   :  { %v3050_v55 = vpop.f32.mrb[58].mxu0  ;;  %v3267_v52 = vpop.f32.mrb[57].mxu1 }
 0x351   :  { %v3081_v53 = vadd.f32 %v3050_v55, %v2854_v6  ;;  %v3052_v0 = vpop.f32.mrb[59].mxu0 }
 0x353   :  { %v3286_v56 = vadd.f32 %v3255_v40, %v3081_v53  ;;  %v3270_v45 = vpop.f32.mrb[58].mxu1 }
 0x354   :  { %v3055_v62 = vpop.f32.mrb[60].mxu0  ;;  %v3272_v31 = vpop.f32.mrb[59].mxu1 }
 0x355   :  { %v3082_v2 = vadd.f32 %v3055_v62, %v2859_v12  ;;  %v3057_v29 = vpop.f32.mrb[61].mxu0 }
 0x357   :  { %v3287_v13 = vadd.f32 %v3260_v26, %v3082_v2  ;;  %v3275_v23 = vpop.f32.mrb[60].mxu1 }
 0x358   :  { %v3060_v9 = vpop.f32.mrb[62].mxu0  ;;  %v3277_v15 = vpop.f32.mrb[61].mxu1 }
 0x359   :  { %v3083_v19 = vadd.f32 %v3060_v9, %v2864_v8  ;;  %v3062_v37 = vpop.f32.mrb[63].mxu0 }
 0x35b   :  { %v8466_v46 = vadd.f32 %v3265_v22, %v3083_v19  ;;  %v3280_v34 = vpop.f32.mrb[62].mxu1 }
 0x35c   :  { %v3065_v51 = vpop.f32.mrb[64].mxu0  ;;  %v3282_v38 = vpop.f32.mrb[63].mxu1 }
 0x35d   :  { %v3084_v61 = vadd.f32 %v3065_v51, %v2869_v63  ;;  %v3067_v6 = vpop.f32.mrb[65].mxu0 }
 0x35f   :  { %v8468_v30 = vadd.f32 %v3270_v45, %v3084_v61 }
 0x360   :  { %v3070_v43 = vpop.f32.mrb[66].mxu0 }
 0x361   :  { %v3085_v12 = vadd.f32 %v3070_v43, %v2874_v44  ;;  %v3072_v28 = vpop.f32.mrb[67].mxu0 }
 0x363   :  { %v8470_v57 = vadd.f32 %v3275_v23, %v3085_v12 }
 0x364   :  { %v3075_v33 = vpop.f32.mrb[68].mxu0 }
 0x365   :  { %v3086_v50 = vadd.f32 %v3075_v33, %v2879_v27  ;;  %v3077_v8 = vpop.f32.mrb[69].mxu0 }
 0x367   :  { %v8472_v5 = vadd.f32 %v3280_v34, %v3086_v50 }
 0x36c   :  { %v3449_v49 = vpop.f32.mrb[70].mxu0 }
 0x36d   :  { %v3488_v63 = vadd.f32 %v3449_v49, %v3284_v39  ;;  %v3451_v36 = vpop.f32.mrb[71].mxu0 }
 0x36f   :  { %v3503_v14 = vadd.f32 %v8477_v21, %v3488_v63 }
 0x370   :  { %v3454_v42 = vpop.f32.mrb[72].mxu0 }
 0x371   :  { %v8480_v3 = vmax.f32 %v3503_v14, 0.0  ;;  %v3489_v44 = vadd.f32 %v3454_v42, %v3285_v32  ;;  %v3456_v16 = vpop.f32.mrb[73].mxu0 }
 0x373   :  { %v3504_v10 = vadd.f32 %v8477_v21, %v3489_v44  ;;  %v3560_v20 = vrot.slane %v8480_v3, 1  ;;  %v3754_v35 = vrot.slane %v8480_v3, 2  ;;  %v3960_v59 = vrot.slane %v8480_v3, 4 }
 0x374   :  { %v3459_v48 = vpop.f32.mrb[74].mxu0  ;;  %v3857_v11 = vrot.slane %v8480_v3, 3  ;;  %v4166_v40 = vrot.slane %v8480_v3, 6  ;;  %v4063_v54 = vrot.slane %v8480_v3, 5 }
 0x375   :  { %v8489_v27 = vmax.f32 %v3504_v10, 0.0  ;;  %v3490_v17 = vadd.f32 %v3459_v48, %v3286_v56  ;;  %v3461_v4 = vpop.f32.mrb[75].mxu0 }
 0x377   :  { %v3505_v39 = vadd.f32 %v8477_v21, %v3490_v17  ;;  %v3562_v24 = vsel %vm3561_vm9, %v8489_v27, %v3560_v20  ;;  %v3755_v1 = vrot.slane %v8489_v27, 1  ;;  %v3652_v41 = vrot.slane %v8489_v27, 7 }
 0x378   :  { %v3464_v26 = vpop.f32.mrb[76].mxu0  ;;  %v3961_v7 = vrot.slane %v8489_v27, 3  ;;  %v3858_v32 = vrot.slane %v8489_v27, 2  ;;  %v4167_v55 = vrot.slane %v8489_v27, 5  ;;  %v4064_v53 = vrot.slane %v8489_v27, 4 }
 0x379   :  { %v8506_v0 = vmax.f32 %v3505_v39, 0.0  ;;  %v3491_v22 = vadd.f32 %v3464_v26, %v3287_v13  ;;  %v3466_v52 = vpop.f32.mrb[77].mxu0  ;;  %v3756_v56 = vsel %vm3561_vm9, %v3755_v1, %v3754_v35  ;;  %v3653_v62 = vsel %vm3561_vm9, %v3652_v41, %v8480_v3 }
 0x37a   :  { %v3962_v2 = vsel %vm3561_vm9, %v3961_v7, %v3960_v59  ;;  %v3859_v29 = vsel %vm3561_vm9, %v3858_v32, %v3857_v11  ;;  %v4168_v45 = vsel %vm3561_vm9, %v4167_v55, %v4166_v40  ;;  %v4065_v31 = vsel %vm3561_vm9, %v4064_v53, %v4063_v54 }
 0x37b   :  { %v3506_v9 = vadd.f32 %v8477_v21, %v3491_v22  ;;  %v3563_v19 = vrot.slane %v8506_v0, 7  ;;  %v3757_v13 = vsel %vm3564_vm10, %v8506_v0, %v3756_v56  ;;  %v3654_v37 = vrot.slane %v8506_v0, 6 }
 0x37c   :  { %v3469_v23 = vpop.f32.mrb[78].mxu0  ;;  %v3963_v15 = vrot.slane %v8506_v0, 2  ;;  %v3860_v51 = vrot.slane %v8506_v0, 1  ;;  %v4169_v61 = vrot.slane %v8506_v0, 4  ;;  %v4066_v6 = vrot.slane %v8506_v0, 3 }
 0x37d   :  { %v8524_v34 = vmax.f32 %v3506_v9, 0.0  ;;  %v3492_v38 = vadd.f32 %v3469_v23, %v8466_v46  ;;  %v3471_v43 = vpop.f32.mrb[79].mxu0  ;;  %v3565_v12 = vsel %vm3564_vm10, %v3563_v19, %v3562_v24  ;;  %v3655_v28 = vsel %vm3564_vm10, %v3654_v37, %v3653_v62 }
 0x37e   :  { %v3964_v33 = vsel %vm3564_vm10, %v3963_v15, %v3962_v2  ;;  %v3861_v50 = vsel %vm3564_vm10, %v3860_v51, %v3859_v29  ;;  %v4170_v8 = vsel %vm3564_vm10, %v4169_v61, %v4168_v45  ;;  %v4067_v49 = vsel %vm3564_vm10, %v4066_v6, %v4065_v31 }
 0x37f   :  { %v3507_v63 = vadd.f32 %v8477_v21, %v3492_v38  ;;  %v3566_v36 = vrot.slane %v8524_v34, 6  ;;  %v3758_v46 = vrot.slane %v8524_v34, 7  ;;  %v3656_v14 = vrot.slane %v8524_v34, 5 }
 0x380   :  { %v3474_v42 = vpop.f32.mrb[80].mxu0  ;;  %v3965_v44 = vrot.slane %v8524_v34, 1  ;;  %v3862_v16 = vsel %vm3567_vm11, %v8524_v34, %v3861_v50  ;;  %v4171_v10 = vrot.slane %v8524_v34, 3  ;;  %v4068_v48 = vrot.slane %v8524_v34, 2 }
 0x381   :  { %v8542_v17 = vmax.f32 %v3507_v63, 0.0  ;;  %v3493_v4 = vadd.f32 %v3474_v42, %v8468_v30  ;;  %v3476_v20 = vpop.f32.mrb[81].mxu0  ;;  %v3568_v35 = vsel %vm3567_vm11, %v3566_v36, %v3565_v12  ;;  %v3759_v59 = vsel %vm3567_vm11, %v3758_v46, %v3757_v13  ;;  %v3945_v42 = vld [vmem:[#allocation4 + $0x208] sm:$0xff] }
 0x382   :  { %v3657_v11 = vsel %vm3567_vm11, %v3656_v14, %v3655_v28  ;;  %v3966_v40 = vsel %vm3567_vm11, %v3965_v44, %v3964_v33  ;;  %v4172_v54 = vsel %vm3567_vm11, %v4171_v10, %v4170_v8  ;;  %v4069_v39 = vsel %vm3567_vm11, %v4068_v48, %v4067_v49 }
 0x383   :  { %v3508_v24 = vadd.f32 %v8477_v21, %v3493_v4  ;;  %v3569_v1 = vrot.slane %v8542_v17, 5  ;;  %v3760_v30 = vrot.slane %v8542_v17, 6  ;;  %v3658_v41 = vrot.slane %v8542_v17, 4 }
 0x384   :  { %v3479_v26 = vpop.f32.mrb[82].mxu0  ;;  %v3967_v7 = vsel %vm3570_vm12, %v8542_v17, %v3966_v40  ;;  %v3863_v32 = vrot.slane %v8542_v17, 7  ;;  %v4173_v55 = vrot.slane %v8542_v17, 2  ;;  %v4070_v53 = vrot.slane %v8542_v17, 1 }
 0x385   :  { %v8560_v22 = vmax.f32 %v3508_v24, 0.0  ;;  %v3494_v52 = vadd.f32 %v3479_v26, %v8470_v57  ;;  %v3481_v56 = vpop.f32.mrb[83].mxu0  ;;  %v3571_v62 = vsel %vm3570_vm12, %v3569_v1, %v3568_v35  ;;  %v3761_v2 = vsel %vm3570_vm12, %v3760_v30, %v3759_v59  ;;  %v3521_v30 = vld [vmem:[#allocation4 + $0x10] sm:$0xff] }
 0x386   :  { %v3659_v29 = vsel %vm3570_vm12, %v3658_v41, %v3657_v11  ;;  %v3864_v45 = vsel %vm3570_vm12, %v3863_v32, %v3862_v16  ;;  %v4174_v31 = vsel %vm3570_vm12, %v4173_v55, %v4172_v54  ;;  %v4071_v9 = vsel %vm3570_vm12, %v4070_v53, %v4069_v39  ;;  %v3522_v41 = vld [vmem:[#allocation4 + $0x18] sm:$0xff]  ;;  %v3946_v32 = vld [vmem:[#allocation4 + $0x210] sm:$0xff] }
 0x387   :  { %v3509_v19 = vadd.f32 %v8477_v21, %v3494_v52  ;;  %v3572_v13 = vrot.slane %v8560_v22, 4  ;;  %v3762_v37 = vrot.slane %v8560_v22, 5  ;;  %v3660_v57 = vrot.slane %v8560_v22, 3  ;;  %v3947_v55 = vld [vmem:[#allocation4 + $0x218] sm:$0xff] }
 0x388   :  { %v3484_v23 = vpop.f32.mrb[84].mxu0  ;;  %v3968_v15 = vrot.slane %v8560_v22, 7  ;;  %v3865_v51 = vrot.slane %v8560_v22, 6  ;;  %v4175_v61 = vrot.slane %v8560_v22, 1  ;;  %v4072_v6 = vsel %vm3573_vm13, %v8560_v22, %v4071_v9 }
 0x389   :  { %v8578_v38 = vmax.f32 %v3509_v19, 0.0  ;;  %v3495_v43 = vadd.f32 %v3484_v23, %v8472_v5  ;;  %v3486_v12 = vpop.f32.mrb[85].mxu0  ;;  %v3574_v28 = vsel %vm3573_vm13, %v3572_v13, %v3571_v62  ;;  %v3763_v33 = vsel %vm3573_vm13, %v3762_v37, %v3761_v2  ;;  %v3944_v5 = vld [vmem:[#allocation4 + $0x200] sm:$0xff] }
 0x38a   :  { %v3661_v50 = vsel %vm3573_vm13, %v3660_v57, %v3659_v29  ;;  %v3969_v8 = vsel %vm3573_vm13, %v3968_v15, %v3967_v7  ;;  %v3866_v49 = vsel %vm3573_vm13, %v3865_v51, %v3864_v45  ;;  %v4176_v63 = vsel %vm3573_vm13, %v4175_v61, %v4174_v31  ;;  %v3523_v23 = vld [vmem:[#allocation4 + $0x20] sm:$0xff]  ;;  %v3524_v51 = vld [vmem:[#allocation4 + $0x28] sm:$0xff] }
 0x38b   :  { %v3510_v36 = vadd.f32 %v8477_v21, %v3495_v43  ;;  %v3575_v46 = vrot.slane %v8578_v38, 3  ;;  %v3764_v14 = vrot.slane %v8578_v38, 4  ;;  %v3662_v44 = vrot.slane %v8578_v38, 2  ;;  %v3948_v61 = vld [vmem:[#allocation4 + $0x220] sm:$0xff] }
 0x38c   :  { %v3970_v16 = vrot.slane %v8578_v38, 6  ;;  %v3867_v10 = vrot.slane %v8578_v38, 5  ;;  %v4177_v48 = vsel %vm3576_vm14, %v8578_v38, %v4176_v63  ;;  %v4073_v4 = vrot.slane %v8578_v38, 7 }
 0x38d   :  { %v8596_v20 = vmax.f32 %v3510_v36, 0.0  ;;  %v3577_v21 = vsel %vm3576_vm14, %v3575_v46, %v3574_v28  ;;  %v3765_v35 = vsel %vm3576_vm14, %v3764_v14, %v3763_v33  ;;  %v3663_v59 = vsel %vm3576_vm14, %v3662_v44, %v3661_v50  ;;  %v3525_v33 = vld [vmem:[#allocation4 + $0x30] sm:$0xff]  ;;  %v3526_v50 = vld [vmem:[#allocation4 + $0x38] sm:$0xff]  ;;  %v3527_v14 = vld [vmem:[#allocation4 + $0x40] sm:$0xff] }
 0x38e   :  { %v5706_v11 = vpack.c.bf16 %v3945_v42, %v3944_v5  ;;  %v3971_v40 = vsel %vm3576_vm14, %v3970_v16, %v3969_v8  ;;  %v3868_v54 = vsel %vm3576_vm14, %v3867_v10, %v3866_v49  ;;  %v4074_v39 = vsel %vm3576_vm14, %v4073_v4, %v4072_v6  ;;  %v3949_v6 = vld [vmem:[#allocation4 + $0x228] sm:$0xff]  ;;  %v3950_v8 = vld [vmem:[#allocation4 + $0x230] sm:$0xff]  ;;  %v3951_v49 = vld [vmem:[#allocation4 + $0x238] sm:$0xff] }
 0x38f   :  { %v3578_v24 = vrot.slane %v8596_v20, 2  ;;  %v3766_v1 = vrot.slane %v8596_v20, 3  ;;  %v3664_v26 = vrot.slane %v8596_v20, 1  ;;  %v3972_v7 = vrot.slane %v8596_v20, 5  ;;  %v3528_v5 = vld [vmem:[#allocation4 + $0x48] sm:$0xff]  ;;  %v3952_v42 = vld [vmem:[#allocation4 + $0x240] sm:$0xff] }
 0x390   :  { %v3869_v53 = vrot.slane %v8596_v20, 4  ;;  %v4178_v52 = vrot.slane %v8596_v20, 7  ;;  %v4075_v56 = vrot.slane %v8596_v20, 6  ;;  %v4269_v62 = vrot.slane %v8480_v3, 7  ;;  %v3953_v44 = vld [vmem:[#allocation4 + $0x248] sm:$0xff]  ;;  %v3530_v4 = vld [vmem:[#allocation4 + $0x58] sm:$0xff] }
 0x391   :  { %v3580_v2 = vsel %vm3579_vm15, %v3578_v24, %v3577_v21  ;;  %v3767_v29 = vsel %vm3579_vm15, %v3766_v1, %v3765_v35  ;;  %v8615_v45 = vsel %vm3579_vm15, %v3664_v26, %v3663_v59  ;;  %v8618_v31 = vsel %vm3579_vm15, %v3972_v7, %v3971_v40  ;;  %v3955_v21 = vld [vmem:[#allocation4 + $0x258] sm:$0xff]  ;;  %v3532_v40 = vld [vmem:[#allocation4 + $0x68] sm:$0xff]  ;;  %v3958_v26 = vld [vmem:[#allocation4 + $0x270] sm:$0xff] }
 0x392   :  { %5057 = vmatmul.mubr.f32.vlgmr.msra.gmra.mrb[64].mxu1 %v3580_v2  ;;  %5127 = vmatmul.mubr.f32.vlgmr.msra.gmra.mrb[86].mxu0 %v3767_v29  ;;  %v8621_v9 = vsel %vm3579_vm15, %v3869_v53, %v3868_v54  ;;  %v8624_v19 = vsel %vm3579_vm15, %v4178_v52, %v4177_v48  ;;  %v8627_v3 = vsel %vm3579_vm15, %v4075_v56, %v4074_v39  ;;  %v4270_v13 = vrot.slane %v8489_v27, 6  ;;  %v3529_v48 = vld [vmem:[#allocation4 + $0x50] sm:$0xff]  ;;  %v3956_v54 = vld [vmem:[#allocation4 + $0x260] sm:$0xff]  ;;  %v3957_v39 = vld [vmem:[#allocation4 + $0x268] sm:$0xff] }
 0x393   :  { %5635 = vmatpush3.bf16.msra.mxu1 %v5634_v58  ;;  %5707 = vmatpush3.bf16.msra.mxu0 %v5706_v11  ;;  %v5637_v37 = vpack.c.bf16 %v3522_v41, %v3521_v30  ;;  %v5709_v57 = vpack.c.bf16 %v3947_v55, %v3946_v32  ;;  %v4272_v15 = vrot.slane %v8506_v0, 5  ;;  %v4274_v27 = vrot.slane %v8524_v34, 4  ;;  %v3531_v11 = vld [vmem:[#allocation4 + $0x60] sm:$0xff]  ;;  %v3533_v30 = vld [vmem:[#allocation4 + $0x70] sm:$0xff]  ;;  %v3534_v41 = vld [vmem:[#allocation4 + $0x78] sm:$0xff] }
 0x394   :  { %5636 = vmatprep.subr.bf16.mxu1 %v8846_v47  ;;  %5708 = vmatprep.subr.bf16.mxu0 %v8846_v47  ;;  %v4271_v43 = vsel %vm3561_vm9, %v4270_v13, %v4269_v62  ;;  %v4276_v25 = vrot.slane %v8542_v17, 3  ;;  %v4278_v58 = vrot.slane %v8560_v22, 2  ;;  %v4280_v0 = vrot.slane %v8578_v38, 1  ;;  %v3959_v7 = vld [vmem:[#allocation4 + $0x278] sm:$0xff]  ;;  %v3841_v53 = vld [vmem:[#allocation4 + $0x180] sm:$0xff]  ;;  %v3842_v52 = vld [vmem:[#allocation4 + $0x188] sm:$0xff] }
 0x395   :  { %5091 = vmatprep.mubr.msk.f32.mxu1 %vm6200_vm8, %v8929_v60  ;;  %5196 = vmatprep.mubr.msk.f32.mxu0 %vm6200_vm8, %v8929_v60  ;;  %v4273_v18 = vsel %vm3564_vm10, %v4272_v15, %v4271_v43  ;;  %v5640_v28 = vpack.c.bf16 %v3524_v51, %v3523_v23  ;;  %v5712_v34 = vpack.c.bf16 %v3949_v6, %v3948_v61  ;;  %v4150_v56 = vld [vmem:[#allocation4 + $0x300] sm:$0xff]  ;;  %v4151_v62 = vld [vmem:[#allocation4 + $0x308] sm:$0xff]  ;;  %v3843_v13 = vld [vmem:[#allocation4 + $0x190] sm:$0xff] }
 0x396   :  { %v4275_v12 = vsel %vm3567_vm11, %v4274_v27, %v4273_v18  ;;  %v5643_v36 = vpack.c.bf16 %v3526_v50, %v3525_v33  ;;  %v5715_v46 = vpack.c.bf16 %v3951_v49, %v3950_v8  ;;  %v5646_v16 = vpack.c.bf16 %v3528_v5, %v3527_v14  ;;  %v4153_v23 = vld [vmem:[#allocation4 + $0x318] sm:$0xff]  ;;  %v3845_v61 = vld [vmem:[#allocation4 + $0x1a0] sm:$0xff]  ;;  %v3846_v6 = vld [vmem:[#allocation4 + $0x1a8] sm:$0xff] }
 0x397   :  { %5638 = vmatpush3.bf16.msra.mxu1 %v5637_v37  ;;  %5710 = vmatpush3.bf16.msra.mxu0 %v5709_v57  ;;  %v4277_v17 = vsel %vm3570_vm12, %v4276_v25, %v4275_v12  ;;  %v5718_v10 = vpack.c.bf16 %v3953_v44, %v3952_v42  ;;  %v5649_v35 = vpack.c.bf16 %v3530_v4, %v3529_v48  ;;  %v3844_v37 = vld [vmem:[#allocation4 + $0x198] sm:$0xff]  ;;  %v4152_v57 = vld [vmem:[#allocation4 + $0x310] sm:$0xff]  ;;  %v4154_v43 = vld [vmem:[#allocation4 + $0x320] sm:$0xff] }
 0x398   :  { %5639 = vmatprep.subr.bf16.mxu1 %v8846_v47  ;;  %5711 = vmatprep.subr.bf16.mxu0 %v8846_v47  ;;  %v4279_v22 = vsel %vm3573_vm13, %v4278_v58, %v4277_v17  ;;  %v5652_v24 = vpack.c.bf16 %v3532_v40, %v3531_v11  ;;  %v5724_v1 = vpack.c.bf16 %v3957_v39, %v3956_v54  ;;  %v4155_v27 = vld [vmem:[#allocation4 + $0x328] sm:$0xff]  ;;  %v3847_v25 = vld [vmem:[#allocation4 + $0x1b0] sm:$0xff]  ;;  %v3848_v18 = vld [vmem:[#allocation4 + $0x1b8] sm:$0xff] }
 0x399   :  { %v4281_v38 = vsel %vm3576_vm14, %v4280_v0, %v4279_v22  ;;  %v5655_v32 = vpack.c.bf16 %v3534_v41, %v3533_v30  ;;  %v5727_v55 = vpack.c.bf16 %v3959_v7, %v3958_v26  ;;  %v5682_v2 = vpack.c.bf16 %v3842_v52, %v3841_v53  ;;  %v4156_v58 = vld [vmem:[#allocation4 + $0x330] sm:$0xff]  ;;  %v4157_v0 = vld [vmem:[#allocation4 + $0x338] sm:$0xff]  ;;  %v3850_v33 = vld [vmem:[#allocation4 + $0x1c8] sm:$0xff] }
 0x39a   :  { %v8654_v63 = vsel %vm3579_vm15, %v8596_v20, %v4281_v38  ;;  %v3954_v20 = vld [vmem:[#allocation4 + $0x250] sm:$0xff]  ;;  %v5754_v29 = vpack.c.bf16 %v4151_v62, %v4150_v56  ;;  %v5685_v15 = vpack.c.bf16 %v3844_v37, %v3843_v13  ;;  %v5757_v51 = vpack.c.bf16 %v4153_v23, %v4152_v57  ;;  %v4158_v17 = vld [vmem:[#allocation4 + $0x340] sm:$0xff]  ;;  %v4159_v50 = vld [vmem:[#allocation4 + $0x348] sm:$0xff] }
 0x39b   :  { %5641 = vmatpush3.bf16.msra.mxu1 %v5640_v28  ;;  %5713 = vmatpush3.bf16.msra.mxu0 %v5712_v34  ;;  %v5721_v59 = vpack.c.bf16 %v3955_v21, %v3954_v20  ;;  %v5691_v12 = vpack.c.bf16 %v3848_v18, %v3847_v25  ;;  %v5763_v28 = vpack.c.bf16 %v4157_v0, %v4156_v58  ;;  %v3849_v34 = vld [vmem:[#allocation4 + $0x1c0] sm:$0xff]  ;;  %v3851_v22 = vld [vmem:[#allocation4 + $0x1d0] sm:$0xff]  ;;  %v3852_v38 = vld [vmem:[#allocation4 + $0x1d8] sm:$0xff] }
 0x39c   :  { %5642 = vmatprep.subr.bf16.mxu1 %v8846_v47  ;;  %5714 = vmatprep.subr.bf16.mxu0 %v8846_v47  ;;  %v5694_v8 = vpack.c.bf16 %v3850_v33, %v3849_v34  ;;  %v5766_v49 = vpack.c.bf16 %v4159_v50, %v4158_v17  ;;  %v5697_v14 = vpack.c.bf16 %v3852_v38, %v3851_v22  ;;  %v3853_v42 = vld [vmem:[#allocation4 + $0x1e0] sm:$0xff]  ;;  %v3854_v44 = vld [vmem:[#allocation4 + $0x1e8] sm:$0xff]  ;;  %v3855_v20 = vld [vmem:[#allocation4 + $0x1f0] sm:$0xff] }
 0x39d   :  { %v5700_v48 = vpack.c.bf16 %v3854_v44, %v3853_v42  ;;  %v3856_v21 = vld [vmem:[#allocation4 + $0x1f8] sm:$0xff]  ;;  %v4047_v54 = vld [vmem:[#allocation4 + $0x280] sm:$0xff]  ;;  %v4048_v39 = vld [vmem:[#allocation4 + $0x288] sm:$0xff] }
 0x39e   :  { %v5703_v11 = vpack.c.bf16 %v3856_v21, %v3855_v20  ;;  %v4050_v30 = vld [vmem:[#allocation4 + $0x298] sm:$0xff]  ;;  %v4051_v26 = vld [vmem:[#allocation4 + $0x2a0] sm:$0xff]  ;;  %v4052_v7 = vld [vmem:[#allocation4 + $0x2a8] sm:$0xff] }
 0x39f   :  { %5644 = vmatpush3.bf16.msra.mxu1 %v5643_v36  ;;  %5716 = vmatpush3.bf16.msra.mxu0 %v5715_v46  ;;  %v4160_v36 = vld [vmem:[#allocation4 + $0x350] sm:$0xff]  ;;  %v4161_v46 = vld [vmem:[#allocation4 + $0x358] sm:$0xff]  ;;  %v4055_v53 = vld [vmem:[#allocation4 + $0x2c0] sm:$0xff] }
 0x3a0   :  { %5645 = vmatprep.subr.bf16.mxu1 %v8846_v47  ;;  %5717 = vmatprep.subr.bf16.mxu0 %v8846_v47  ;;  %v5769_v5 = vpack.c.bf16 %v4161_v46, %v4160_v36  ;;  %v4056_v52 = vld [vmem:[#allocation4 + $0x2c8] sm:$0xff]  ;;  %v4057_v62 = vld [vmem:[#allocation4 + $0x2d0] sm:$0xff]  ;;  %v4059_v13 = vld [vmem:[#allocation4 + $0x2e0] sm:$0xff] }
 0x3a1   :  { %v5742_v56 = vpack.c.bf16 %v4056_v52, %v4055_v53  ;;  %v4060_v37 = vld [vmem:[#allocation4 + $0x2e8] sm:$0xff]  ;;  %v4061_v23 = vld [vmem:[#allocation4 + $0x2f0] sm:$0xff]  ;;  %v4257_v25 = vld [vmem:[#allocation4 + $0x3a0] sm:$0xff] }
 0x3a2   :  { %v5748_v57 = vpack.c.bf16 %v4060_v37, %v4059_v13  ;;  %v4258_v18 = vld [vmem:[#allocation4 + $0x3a8] sm:$0xff]  ;;  %v4259_v0 = vld [vmem:[#allocation4 + $0x3b0] sm:$0xff]  ;;  %v4264_v50 = vld [vmem:[#allocation4 + $0x3d8] sm:$0xff] }
 0x3a3   :  { %5647 = vmatpush3.bf16.msra.mxu1 %v5646_v16  ;;  %5719 = vmatpush3.bf16.msra.mxu0 %v5718_v10  ;;  %v4162_v16 = vld [vmem:[#allocation4 + $0x360] sm:$0xff]  ;;  %v4163_v10 = vld [vmem:[#allocation4 + $0x368] sm:$0xff]  ;;  %v5784_v58 = vpack.c.bf16 %v4258_v18, %v4257_v25  ;;  %v4263_v17 = vld [vmem:[#allocation4 + $0x3d0] sm:$0xff] }
 0x3a4   :  { %5648 = vmatprep.subr.bf16.mxu1 %v8846_v47  ;;  %5720 = vmatprep.subr.bf16.mxu0 %v8846_v47  ;;  %v5772_v4 = vpack.c.bf16 %v4163_v10, %v4162_v16  ;;  %v4262_v34 = vld [vmem:[#allocation4 + $0x3c8] sm:$0xff]  ;;  %v4267_v36 = vld [vmem:[#allocation4 + $0x3f0] sm:$0xff]  ;;  %v4268_v46 = vld [vmem:[#allocation4 + $0x3f8] sm:$0xff] }
 0x3a5   :  { %v4266_v22 = vld [vmem:[#allocation4 + $0x3e8] sm:$0xff]  ;;  %v4366_v44 = vld [vmem:[%s8799_s7 + $0x10] sm:$0xff]  ;;  %v4371_v21 = vld [vmem:[%s8799_s7 + $0x38] sm:$0xff] }
 0x3a6   :  { %v4365_v42 = vld [vmem:[%s8799_s7 + $0x8] sm:$0xff]  ;;  %v4370_v20 = vld [vmem:[%s8799_s7 + $0x30] sm:$0xff]  ;;  %v4458_v53 = vld [vmem:[#allocation6] sm:$0xff] }
 0x3a7   :  { %5650 = vmatpush3.bf16.msra.mxu1 %v5649_v35  ;;  %5722 = vmatpush3.bf16.msra.mxu0 %v5721_v59  ;;  %v4164_v35 = vld [vmem:[#allocation4 + $0x370] sm:$0xff]  ;;  %v4165_v59 = vld [vmem:[#allocation4 + $0x378] sm:$0xff]  ;;  %v4459_v52 = vld [vmem:[#allocation6 + $0x8] sm:$0xff] }
 0x3a8   :  { %5651 = vmatprep.subr.bf16.mxu1 %v8846_v47  ;;  %5723 = vmatprep.subr.bf16.mxu0 %v8846_v47  ;;  %v5775_v40 = vpack.c.bf16 %v4165_v59, %v4164_v35  ;;  %v5811_v35 = vpack.c.bf16 %v4371_v21, %v4370_v20  ;;  %v4372_v59 = vld [vmem:[%s8799_s7 + $0x40] sm:$0xff] }
 0x3a9   :  { %v4462_v37 = vld [vmem:[#allocation6 + $0x20] sm:$0xff] }
 0x3aa   :  { %v4470_v18 = vld [vmem:[#allocation6 + $0x60] sm:$0xff] }
 0x3ab   :  { %5653 = vmatpush3.bf16.msra.mxu1 %v5652_v24  ;;  %5725 = vmatpush3.bf16.msra.mxu0 %v5724_v1  ;;  %v5730_v24 = vpack.c.bf16 %v4048_v39, %v4047_v54  ;;  %v4049_v1 = vld [vmem:[#allocation4 + $0x290] sm:$0xff]  ;;  %v4375_v39 = vld [vmem:[%s8799_s7 + $0x58] sm:$0xff]  ;;  %v4852_v21 = vld [vmem:[%s8800_s8] ss:$0 sm:$0xff] }
 0x3ac   :  { %5654 = vmatprep.subr.bf16.mxu1 %v8846_v47  ;;  %5726 = vmatprep.subr.bf16.mxu0 %v8846_v47  ;;  %v5733_v41 = vpack.c.bf16 %v4050_v30, %v4049_v1  ;;  %v4374_v54 = vld [vmem:[%s8799_s7 + $0x50] sm:$0xff] }
 0x3af   :  { %5656 = vmatpush3.bf16.msra.mxu1 %v5655_v32  ;;  %5728 = vmatpush3.bf16.msra.mxu0 %v5727_v55  ;;  %v5736_v32 = vpack.c.bf16 %v4052_v7, %v4051_v26  ;;  %v4053_v55 = vld [vmem:[#allocation4 + $0x2b0] sm:$0xff]  ;;  %v4376_v7 = vld [vmem:[%s8799_s7 + $0x60] sm:$0xff] }
 0x3b0   :  { %5681 = vmatprep.subr.bf16.mxu1 %v8846_v47  ;;  %5753 = vmatprep.subr.bf16.mxu0 %v8846_v47 }
 0x3b2   :  { %5092 = vmatmul.mubr.f32.vlgmr.msra.gmra.mrb[66].mxu1 %v8615_v45  ;;  %5197 = vmatmul.mubr.f32.vlgmr.msra.gmra.mrb[88].mxu0 %v8618_v31  ;;  %v5688_v45 = vpack.c.bf16 %v3846_v6, %v3845_v61  ;;  %v5760_v31 = vpack.c.bf16 %v4155_v27, %v4154_v43  ;;  %v4253_v61 = vld [vmem:[#allocation4 + $0x380] sm:$0xff]  ;;  %v4254_v6 = vld [vmem:[#allocation4 + $0x388] sm:$0xff]  ;;  %v4255_v27 = vld [vmem:[#allocation4 + $0x390] sm:$0xff] }
 0x3b3   :  { %5683 = vmatpush3.bf16.msra.mxu1 %v5682_v2  ;;  %5755 = vmatpush3.bf16.msra.mxu0 %v5754_v29  ;;  %v4058_v2 = vld [vmem:[#allocation4 + $0x2d8] sm:$0xff]  ;;  %v5778_v43 = vpack.c.bf16 %v4254_v6, %v4253_v61  ;;  %v4466_v6 = vld [vmem:[#allocation6 + $0x40] sm:$0xff] }
 0x3b4   :  { %5684 = vmatprep.subr.bf16.mxu1 %v8846_v47  ;;  %5756 = vmatprep.subr.bf16.mxu0 %v8846_v47  ;;  %v5745_v29 = vpack.c.bf16 %v4058_v2, %v4057_v62  ;;  %v5826_v2 = vpack.c.bf16 %v4459_v52, %v4458_v53 }
 0x3b5   :  { %5161 = vmatprep.mubr.msk.f32.mxu1 %vm6200_vm8, %v8929_v60  ;;  %5266 = vmatprep.mubr.msk.f32.mxu0 %vm6200_vm8, %v8929_v60 }
 0x3b7   :  { %5686 = vmatpush3.bf16.msra.mxu1 %v5685_v15  ;;  %5758 = vmatpush3.bf16.msra.mxu0 %v5757_v51  ;;  %v4062_v15 = vld [vmem:[#allocation4 + $0x2f8] sm:$0xff] }
 0x3b8   :  { %5687 = vmatprep.subr.bf16.mxu1 %v8846_v47  ;;  %5759 = vmatprep.subr.bf16.mxu0 %v8846_v47  ;;  %v5751_v51 = vpack.c.bf16 %v4062_v15, %v4061_v23  ;;  %v4464_v15 = vld [vmem:[#allocation6 + $0x30] sm:$0xff] }
 0x3bb   :  { %5689 = vmatpush3.bf16.msra.mxu1 %v5688_v45  ;;  %5761 = vmatpush3.bf16.msra.mxu0 %v5760_v31  ;;  %v4256_v45 = vld [vmem:[#allocation4 + $0x398] sm:$0xff] }
 0x3bc   :  { %5690 = vmatprep.subr.bf16.mxu1 %v8846_v47  ;;  %5762 = vmatprep.subr.bf16.mxu0 %v8846_v47  ;;  %v5781_v31 = vpack.c.bf16 %v4256_v45, %v4255_v27  ;;  %v4468_v45 = vld [vmem:[#allocation6 + $0x50] sm:$0xff] }
 0x3bf   :  { %5692 = vmatpush3.bf16.msra.mxu1 %v5691_v12  ;;  %5764 = vmatpush3.bf16.msra.mxu0 %v5763_v28  ;;  %v4260_v12 = vld [vmem:[#allocation4 + $0x3b8] sm:$0xff] }
 0x3c0   :  { %5693 = vmatprep.subr.bf16.mxu1 %v8846_v47  ;;  %5765 = vmatprep.subr.bf16.mxu0 %v8846_v47  ;;  %v5787_v28 = vpack.c.bf16 %v4260_v12, %v4259_v0 }
 0x3c3   :  { %5695 = vmatpush3.bf16.msra.mxu1 %v5694_v8  ;;  %5767 = vmatpush3.bf16.msra.mxu0 %v5766_v49  ;;  %v5793_v8 = vpack.c.bf16 %v4264_v50, %v4263_v17  ;;  %v4265_v49 = vld [vmem:[#allocation4 + $0x3e0] sm:$0xff] }
 0x3c4   :  { %5696 = vmatprep.subr.bf16.mxu1 %v8846_v47  ;;  %5768 = vmatprep.subr.bf16.mxu0 %v8846_v47  ;;  %v5796_v38 = vpack.c.bf16 %v4266_v22, %v4265_v49 }
 0x3c7   :  { %5698 = vmatpush3.bf16.msra.mxu1 %v5697_v14  ;;  %5770 = vmatpush3.bf16.msra.mxu0 %v5769_v5  ;;  %v5799_v14 = vpack.c.bf16 %v4268_v46, %v4267_v36  ;;  %v4364_v5 = vld [vmem:[%s8799_s7] sm:$0xff] }
 0x3c8   :  { %5699 = vmatprep.subr.bf16.mxu1 %v8846_v47  ;;  %5771 = vmatprep.subr.bf16.mxu0 %v8846_v47  ;;  %v5802_v16 = vpack.c.bf16 %v4365_v42, %v4364_v5 }
 0x3cb   :  { %5701 = vmatpush3.bf16.msra.mxu1 %v5700_v48  ;;  %5773 = vmatpush3.bf16.msra.mxu0 %v5772_v4  ;;  %v4369_v48 = vld [vmem:[%s8799_s7 + $0x28] sm:$0xff] }
 0x3cc   :  { %5702 = vmatprep.subr.bf16.mxu1 %v8846_v47  ;;  %5774 = vmatprep.subr.bf16.mxu0 %v8846_v47 }
 0x3cf   :  { %5704 = vmatpush3.bf16.msra.mxu1 %v5703_v11  ;;  %5776 = vmatpush3.bf16.msra.mxu0 %v5775_v40  ;;  %v4373_v11 = vld [vmem:[%s8799_s7 + $0x48] sm:$0xff] }
 0x3d0   :  { %5729 = vmatprep.subr.bf16.mxu1 %v8846_v47  ;;  %5801 = vmatprep.subr.bf16.mxu0 %v8846_v47  ;;  %v5814_v40 = vpack.c.bf16 %v4373_v11, %v4372_v59 }
 0x3d2   :  { %5162 = vmatmul.mubr.f32.vlgmr.msra.gmra.mrb[68].mxu1 %v8621_v9  ;;  %5267 = vmatmul.mubr.f32.vlgmr.msra.gmra.mrb[90].mxu0 %v8624_v19  ;;  %v4054_v9 = vld [vmem:[#allocation4 + $0x2b8] sm:$0xff] }
 0x3d3   :  { %5731 = vmatpush3.bf16.msra.mxu1 %v5730_v24  ;;  %5231 = vmatprep.mubr.msk.f32.mxu1 %vm6200_vm8, %v8929_v60  ;;  %v5739_v19 = vpack.c.bf16 %v4054_v9, %v4053_v55  ;;  %v5817_v24 = vpack.c.bf16 %v4375_v39, %v4374_v54  ;;  %v4378_v55 = vld [vmem:[%s8799_s7 + $0x70] sm:$0xff]  ;;  %v4853_v54 = vld [vmem:[%s8802_s10] ss:$0 sm:$0xff] }
 0x3d4   :  { %5732 = vmatprep.subr.bf16.mxu1 %v8846_v47  ;;  %5336 = vmatprep.mubr.msk.f32.mxu0 %vm6200_vm8, %v8929_v60 }
 0x3d5   :  { %5803 = vmatpush3.bf16.msra.mxu0 %v5802_v16  ;;  %v4851_v16 = vld [vmem:[%s8798_s6] ss:$0 sm:$0xff] }
 0x3d6   :  { %5804 = vmatprep.subr.bf16.mxu0 %v8846_v47 }
 0x3d7   :  { %5734 = vmatpush3.bf16.msra.mxu1 %v5733_v41 }
 0x3d8   :  { %5735 = vmatprep.subr.bf16.mxu1 %v8846_v47 }
 0x3db   :  { %5737 = vmatpush3.bf16.msra.mxu1 %v5736_v32  ;;  %v4377_v32 = vld [vmem:[%s8799_s7 + $0x68] sm:$0xff] }
 0x3dc   :  { %5738 = vmatprep.subr.bf16.mxu1 %v8846_v47  ;;  %v5820_v9 = vpack.c.bf16 %v4377_v32, %v4376_v7 }
 0x3df   :  { %5740 = vmatpush3.bf16.msra.mxu1 %v5739_v19  ;;  %v4379_v19 = vld [vmem:[%s8799_s7 + $0x78] sm:$0xff] }
 0x3e0   :  { %5741 = vmatprep.subr.bf16.mxu1 %v8846_v47  ;;  %v5823_v62 = vpack.c.bf16 %v4379_v19, %v4378_v55 }
 0x3e3   :  { %5743 = vmatpush3.bf16.msra.mxu1 %v5742_v56  ;;  %v4460_v56 = vld [vmem:[#allocation6 + $0x10] sm:$0xff] }
 0x3e4   :  { %5744 = vmatprep.subr.bf16.mxu1 %v8846_v47 }
 0x3e7   :  { %5746 = vmatpush3.bf16.msra.mxu1 %v5745_v29  ;;  %v4461_v29 = vld [vmem:[#allocation6 + $0x18] sm:$0xff] }
 0x3e8   :  { %5747 = vmatprep.subr.bf16.mxu1 %v8846_v47  ;;  %v5829_v13 = vpack.c.bf16 %v4461_v29, %v4460_v56 }
 0x3eb   :  { %5749 = vmatpush3.bf16.msra.mxu1 %v5748_v57  ;;  %v4463_v57 = vld [vmem:[#allocation6 + $0x28] sm:$0xff] }
 0x3ec   :  { %5750 = vmatprep.subr.bf16.mxu1 %v8846_v47  ;;  %v5832_v23 = vpack.c.bf16 %v4463_v57, %v4462_v37 }
 0x3ef   :  { %5752 = vmatpush3.bf16.msra.mxu1 %v5751_v51  ;;  %v4465_v51 = vld [vmem:[#allocation6 + $0x38] sm:$0xff] }
 0x3f0   :  { %5777 = vmatprep.subr.bf16.mxu1 %v8846_v47  ;;  %v5835_v61 = vpack.c.bf16 %v4465_v51, %v4464_v15 }
 0x3f2   :  { %5232 = vmatmul.mubr.f32.vlgmr.msra.gmra.mrb[70].mxu1 %v8627_v3  ;;  %v4261_v3 = vld [vmem:[#allocation4 + $0x3c0] sm:$0xff] }
 0x3f3   :  { %5779 = vmatpush3.bf16.msra.mxu1 %v5778_v43  ;;  %5301 = vmatprep.mubr.msk.f32.mxu1 %vm6200_vm8, %v8929_v60  ;;  %v5790_v33 = vpack.c.bf16 %v4262_v34, %v4261_v3  ;;  %v4467_v43 = vld [vmem:[#allocation6 + $0x48] sm:$0xff] }
 0x3f4   :  { %5780 = vmatprep.subr.bf16.mxu1 %v8846_v47  ;;  %v5838_v27 = vpack.c.bf16 %v4467_v43, %v4466_v6 }
 0x3f7   :  { %5782 = vmatpush3.bf16.msra.mxu1 %v5781_v31  ;;  %v4469_v31 = vld [vmem:[#allocation6 + $0x58] sm:$0xff] }
 0x3f8   :  { %5783 = vmatprep.subr.bf16.mxu1 %v8846_v47  ;;  %v5841_v25 = vpack.c.bf16 %v4469_v31, %v4468_v45 }
 0x3fb   :  { %5785 = vmatpush3.bf16.msra.mxu1 %v5784_v58  ;;  %v4471_v58 = vld [vmem:[#allocation6 + $0x68] sm:$0xff] }
 0x3fc   :  { %5786 = vmatprep.subr.bf16.mxu1 %v8846_v47  ;;  %v5844_v0 = vpack.c.bf16 %v4471_v58, %v4470_v18 }
 0x3ff   :  { %5788 = vmatpush3.bf16.msra.mxu1 %v5787_v28 }
 0x400   :  { %5789 = vmatprep.subr.bf16.mxu1 %v8846_v47 }
 0x403   :  { %5791 = vmatpush3.bf16.msra.mxu1 %v5790_v33 }
 0x404   :  { %5792 = vmatprep.subr.bf16.mxu1 %v8846_v47 }
 0x407   :  { %5794 = vmatpush3.bf16.msra.mxu1 %v5793_v8 }
 0x408   :  { %5795 = vmatprep.subr.bf16.mxu1 %v8846_v47 }
 0x40b   :  { %5797 = vmatpush3.bf16.msra.mxu1 %v5796_v38 }
 0x40c   :  { %5798 = vmatprep.subr.bf16.mxu1 %v8846_v47 }
 0x40f   :  { %5800 = vmatpush3.bf16.msra.mxu1 %v5799_v14 }
 0x410   :  { %5825 = vmatprep.subr.bf16.mxu1 %v8846_v47 }
 0x412   :  { %5302 = vmatmul.mubr.f32.vlgmr.msra.gmra.mrb[72].mxu1 %v8654_v63  ;;  %v4367_v63 = vld [vmem:[%s8799_s7 + $0x18] sm:$0xff] }
 0x413   :  { %5371 = vmatprep.mubr.msk.f32.mxu1 %vm6200_vm8, %v8929_v60  ;;  %v5805_v10 = vpack.c.bf16 %v4367_v63, %v4366_v44  ;;  %v4368_v60 = vld [vmem:[%s8799_s7 + $0x20] sm:$0xff]  ;;  %5827 = vmatpush3.bf16.msra.mxu1 %v5826_v2 }
 0x414   :  { %v5808_v4 = vpack.c.bf16 %v4369_v48, %v4368_v60  ;;  %5828 = vmatprep.subr.bf16.mxu1 %v8846_v47 }
 0x415   :  { %5806 = vmatpush3.bf16.msra.mxu0 %v5805_v10 }
 0x416   :  { %5807 = vmatprep.subr.bf16.mxu0 %v8846_v47 }
 0x417   :  { %5830 = vmatpush3.bf16.msra.mxu1 %v5829_v13 }
 0x418   :  { %5831 = vmatprep.subr.bf16.mxu1 %v8846_v47 }
 0x419   :  { %5809 = vmatpush3.bf16.msra.mxu0 %v5808_v4  ;;  %v4473_v4 = vld [vmem:[#allocation6 + $0x78] sm:$0xff] }
 0x41a   :  { %5810 = vmatprep.subr.bf16.mxu0 %v8846_v47 }
 0x41b   :  { %5833 = vmatpush3.bf16.msra.mxu1 %v5832_v23 }
 0x41c   :  { %5834 = vmatprep.subr.bf16.mxu1 %v8846_v47 }
 0x41d   :  { %5812 = vmatpush3.bf16.msra.mxu0 %v5811_v35 }
 0x41e   :  { %5813 = vmatprep.subr.bf16.mxu0 %v8846_v47 }
 0x41f   :  { %5836 = vmatpush3.bf16.msra.mxu1 %v5835_v61 }
 0x420   :  { %5837 = vmatprep.subr.bf16.mxu1 %v8846_v47 }
 0x421   :  { %5815 = vmatpush3.bf16.msra.mxu0 %v5814_v40 }
 0x422   :  { %5816 = vmatprep.subr.bf16.mxu0 %v8846_v47 }
 0x423   :  { %5839 = vmatpush3.bf16.msra.mxu1 %v5838_v27 }
 0x424   :  { %5840 = vmatprep.subr.bf16.mxu1 %v8846_v47 }
 0x425   :  { %5818 = vmatpush3.bf16.msra.mxu0 %v5817_v24 }
 0x426   :  { %5819 = vmatprep.subr.bf16.mxu0 %v8846_v47 }
 0x427   :  { %5842 = vmatpush3.bf16.msra.mxu1 %v5841_v25 }
 0x428   :  { %5843 = vmatprep.subr.bf16.mxu1 %v8846_v47 }
 0x429   :  { %5821 = vmatpush3.bf16.msra.mxu0 %v5820_v9 }
 0x42a   :  { %5822 = vmatprep.subr.bf16.mxu0 %v8846_v47 }
 0x42b   :  { %5845 = vmatpush3.bf16.msra.mxu1 %v5844_v0 }
 0x42c   :  { %5846 = vmatprep.subr.bf16.mxu1 %v8846_v47  ;;  %v4472_v47 = vld [vmem:[#allocation6 + $0x70] sm:$0xff] }
 0x42d   :  { %5824 = vmatpush3.bf16.msra.mxu0 %v5823_v62  ;;  %v5847_v20 = vpack.c.bf16 %v4473_v4, %v4472_v47 }
 0x42f   :  { %5848 = vmatpush3.bf16.msra.mxu1 %v5847_v20 }
 0x465   :  { %v3648_v1 = vpop.f32.mrb[64].mxu1  ;;  %v3835_v30 = vpop.f32.mrb[86].mxu0 }
 0x466   :  { %v5058_v41 = vpop.f32.mrb[65].mxu1  ;;  %v5128_v26 = vpop.f32.mrb[87].mxu0 }
 0x485   :  { %v3733_v12 = vpop.f32.mrb[66].mxu1  ;;  %v4041_v28 = vpop.f32.mrb[88].mxu0 }
 0x486   :  { %v3734_v3 = vadd.f32 %v3733_v12, %v3648_v1  ;;  %v5093_v34 = vpop.f32.mrb[67].mxu1  ;;  %v5198_v33 = vpop.f32.mrb[89].mxu0 }
 0x488   :  { %v3839_v17 = vadd.f32 %v3835_v30, %v3734_v3 }
 0x4a5   :  { %v3938_v50 = vpop.f32.mrb[68].mxu1  ;;  %v4247_v8 = vpop.f32.mrb[90].mxu0 }
 0x4a6   :  { %v3942_v49 = vadd.f32 %v3938_v50, %v3839_v17  ;;  %v5163_v22 = vpop.f32.mrb[69].mxu1  ;;  %v5268_v38 = vpop.f32.mrb[91].mxu0 }
 0x4a8   :  { %v4045_v36 = vadd.f32 %v4041_v28, %v3942_v49 }
 0x4c5   :  { %v4144_v46 = vpop.f32.mrb[70].mxu1 }
 0x4c6   :  { %v4148_v14 = vadd.f32 %v4144_v46, %v4045_v36  ;;  %v5233_v5 = vpop.f32.mrb[71].mxu1 }
 0x4c8   :  { %v4251_v42 = vadd.f32 %v4247_v8, %v4148_v14 }
 0x4e5   :  { %v4350_v44 = vpop.f32.mrb[72].mxu1 }
 0x4e6   :  { %v4354_v63 = vadd.f32 %v4350_v44, %v4251_v42  ;;  %v5303_v10 = vpop.f32.mrb[73].mxu1 }
 0x4e8   :  { %v4362_v60 = vadd.f32 %v4851_v16, %v4354_v63 }
 0x4ea   :  { %v4363_v48 = vmax.f32 %v4362_v60, 0.0 }
 0x4ec   :  { %5337 = vmatmul.mubr.f32.vlgmr.msra.gmra.mrb[92].mxu0 %v4363_v48 }
 0x5bf   :  { %v4453_v35 = vpop.f32.mrb[92].mxu0 }
 0x5c0   :  { %v4454_v59 = vadd.f32 %v4852_v21, %v4453_v35  ;;  %v5338_v11 = vpop.f32.mrb[93].mxu0 }
 0x5c2   :  { %v4457_v40 = vmax.f32 %v4454_v59, 0.0 }
 0x5c4   :  { %5372 = vmatmul.mubr.f32.vlgmr.msra.gmra.mrb[74].mxu1 %v4457_v40 }
 0x697   :  { %v4547_v39 = vpop.f32.mrb[74].mxu1 }
 0x698   :  { %v4548_v24 = vadd.f32 %v4853_v54, %v4547_v39  ;;  %v5373_v1 = vpop.f32.mrb[75].mxu1 }
 0x69a   :  { %4551 = vst [vmem:[%s8803_s11] sm:$0xff] %v4548_v24 }
 0x69b   :  { %4556 = vsyncpa [#allocation3], 1 }
 0x69c   :  { %4557 = vsyncpa [#allocation5], 1 }

</bundles_post_ra>
